<compile_context>
chip_gen: v5e
topology: v5e:2x2
jax: 0.10.0
libtpu: 0.0.40
codegen_flags: <defaults>
</compile_context>

<pallas_src>
import functools

import jax
import jax.numpy as jnp
from jax import lax
from jax.experimental import pallas as pl
from jax.experimental.pallas import tpu as pltpu


# ---------------------------------------------------------------------------
# Pallas kernels (lane-dense (H, W*C) tiles, nb batch elements per grid step)
# ---------------------------------------------------------------------------
def _fused_conv_from_pad(wk_ref, o_ref, st_ref, pad_ref, tap_ref, *,
                         nb, hout, wc_in, wc_out):
    """Fused-K 3x3 conv tail. Assumes pad_ref[:, 1:hout+1, :] holds the activation.

    Writes the vertical 'SAME' halo rows, assembles the (nb*hout, 3*wc_in) tap
    operand (ky taps stacked along K), runs ONE MXU matmul against the stacked
    banded Toeplitz weights, and emits the conv output plus packed [sum; ssq]
    batch-norm statistics.
    """
    # Halo rows are rewritten every step: the scratch persists across steps but a
    # core may never see program_id==0 under 'parallel' megacore splitting, so a
    # pl.when(pid==0) one-time init would be unsafe.  Cost: 2 rows per element.
    zrow = jnp.zeros((nb, 1, wc_in), jnp.float32)
    pad_ref[:, 0:1, :] = zrow
    pad_ref[:, hout + 1:hout + 2, :] = zrow

    # K = 3*wc_in tap operand: column block k holds input rows shifted by (k - 1).
    for k in range(3):
        tap_ref[:, k * wc_in:(k + 1) * wc_in] = (
            pad_ref[:, k:k + hout, :].reshape(nb * hout, wc_in).astype(tap_ref.dtype))

    acc = jnp.dot(tap_ref[...], wk_ref[...],
                  preferred_element_type=jnp.float32)            # (nb*hout, wc_out)

    o_ref[...] = acc.reshape(nb, hout, wc_out)
    st_ref[0] = jnp.concatenate(
        [jnp.sum(acc, axis=0, keepdims=True),
         jnp.sum(acc * acc, axis=0, keepdims=True)], axis=0)     # (2, wc_out)


def _up_conv_kernel(x_ref, ah_ref, mw_ref, wk_ref, o_ref, st_ref, pad_ref, tap_ref):
    """Bilinear x2 upsample (2 matmuls) + fused-K 3x3 conv + packed stats.

    x_ref  : (nb, Hin, W*Cin)           f32 lane-dense input tile
    ah_ref : (Hout, Hin)                f32 height-interp matrix
    mw_ref : (W*Cin, Wout*Cin)          f32 width-interp matrix (kron(Aw^T, I_Cin))
    wk_ref : (3*Wout*Cin, Wout*Cout)    banded conv1 weights, ky taps stacked on K
    o_ref  : (nb, Hout, Wout*Cout)      f32 conv output (bias dropped: cancels in BN)
    st_ref : (1, 2, Wout*Cout)          f32 [sum; sum-of-squares] over (nb, Hout)
    pad_ref: VMEM (nb, Hout+2, Wout*Cin) f32  vertical-halo scratch
    tap_ref: VMEM (nb*Hout, 3*Wout*Cin)  compute-dtype fused-K operand
    """
    nb, hin, wcin = x_ref.shape
    hout = ah_ref.shape[0]
    wc_up = mw_ref.shape[1]
    wc_out = wk_ref.shape[1]

    # Separable bilinear upsample on the MXU: width interp on merged (nb*hin) rows,
    # then height interp per element (tiny matmuls, statically unrolled), written
    # straight into the halo-padded scratch (no extra copy of the upsampled value).
    t = jnp.dot(x_ref[...].reshape(nb * hin, wcin), mw_ref[...],
                preferred_element_type=jnp.float32).reshape(nb, hin, wc_up)
    ah = ah_ref[...]
    for e in range(nb):
        pad_ref[e, 1:hout + 1, :] = jnp.dot(ah, t[e],
                                            preferred_element_type=jnp.float32)

    _fused_conv_from_pad(wk_ref, o_ref, st_ref, pad_ref, tap_ref,
                         nb=nb, hout=hout, wc_in=wc_up, wc_out=wc_out)


def _bnrelu_conv_kernel(x_ref, sc_ref, sh_ref, wk_ref, o_ref, st_ref,
                        pad_ref, tap_ref):
    """Fused BN-apply + ReLU prologue (f32), then fused-K 3x3 conv + packed stats.

    x_ref  : (nb, Hout, Wout*Cin)   previous conv output
    sc_ref/sh_ref : (1, Wout*Cin)   folded BN scale/shift, pre-tiled over W
    wk_ref : (3*Wout*Cin, Wout*Cout)
    """
    nb, hout, wc_in = x_ref.shape
    wc_out = wk_ref.shape[1]

    y = jnp.maximum(
        x_ref[...].reshape(nb * hout, wc_in) * sc_ref[...] + sh_ref[...], 0.0)
    pad_ref[:, 1:hout + 1, :] = y.reshape(nb, hout, wc_in)

    _fused_conv_from_pad(wk_ref, o_ref, st_ref, pad_ref, tap_ref,
                         nb=nb, hout=hout, wc_in=wc_in, wc_out=wc_out)


def _bnrelu_apply_kernel(x_ref, sc_ref, sh_ref, o_ref):
    """Final BN-apply + ReLU. x:(nb,Hout,Wout*C), scale/shift:(1,Wout*C)."""
    nb, hout, wc = x_ref.shape
    y = jnp.maximum(
        x_ref[...].reshape(nb * hout, wc) * sc_ref[...] + sh_ref[...], 0.0)
    o_ref[...] = y.reshape(nb, hout, wc)


# ---------------------------------------------------------------------------
# Host-side matrix builders (tiny, run once per forward)
# ---------------------------------------------------------------------------
def _upsample_matrix(l_in, l_out):
    """Interpolation matrix A (l_out, l_in) for bilinear, align_corners=True."""
    i = jnp.arange(l_out, dtype=jnp.float32)
    s = i * (l_in - 1) / (l_out - 1)
    i0 = jnp.clip(jnp.floor(s).astype(jnp.int32), 0, l_in - 2)
    t = s - i0.astype(jnp.float32)
    rows = jnp.arange(l_out)
    a = jnp.zeros((l_out, l_in), jnp.float32)
    a = a.at[rows, i0].add(1.0 - t)
    a = a.at[rows, i0 + 1].add(t)
    return a


def _toeplitz_weights_stacked(w_hwio, w_dim, dtype):
    """(3,3,Cin,Cout) HWIO -> (3*w_dim*Cin, w_dim*Cout), ky taps stacked along K.

    Row block k (ky = k) at [q*Cin+ci, j*Cout+co] = w[k, q-j+1, ci, co] when
    q-j+1 in {0,1,2}, else 0 — i.e. horizontal 'SAME' zero padding is folded in.
    TODO(synk): W-tile this matrix (per-tile bands with a 1-px horizontal halo)
    before using large decoder widths.
    """
    _, _, cin, cout = w_hwio.shape
    q = jnp.arange(w_dim)[:, None]
    j = jnp.arange(w_dim)[None, :]
    dx = q - j + 1
    valid = (dx >= 0) & (dx <= 2)
    dxc = jnp.clip(dx, 0, 2)

    def per_dy(w_dy):                          # (3, Cin, Cout)
        blocks = jnp.where(valid[:, :, None, None], w_dy[dxc], 0.0)  # (W,W,Cin,Cout)
        return jnp.transpose(blocks, (0, 2, 1, 3)).reshape(w_dim * cin, w_dim * cout)

    return jnp.concatenate([per_dy(w_hwio[k]) for k in range(3)],
                           axis=0).astype(dtype)


def _bn_scale_shift(stats, gamma, beta, count, w_out, c, eps=1e-5):
    """(nsteps, 2, Wout*C) packed [sum; ssq] -> folded per-channel scale/shift,
    pre-tiled over W to match the lane-dense layout."""
    tot = stats.sum(axis=0)                                   # (2, Wout*C)
    s = tot[0].reshape(w_out, c).sum(axis=0)
    q = tot[1].reshape(w_out, c).sum(axis=0)
    mean = s / count
    var = jnp.maximum(q / count - mean * mean, 0.0)
    scale = gamma * lax.rsqrt(var + eps)
    shift = beta - mean * scale
    return (jnp.tile(scale, w_out).reshape(1, w_out * c),
            jnp.tile(shift, w_out).reshape(1, w_out * c))


# ---------------------------------------------------------------------------
# pallas_call wrappers
# ---------------------------------------------------------------------------
_COMPILER_PARAMS = pltpu.CompilerParams(
    dimension_semantics=("parallel",),
    # v5e/v6e have 128 MiB physical VMEM; 64 MiB leaves headroom for bigger tiles.
    # TODO(synk): drop to ~32-48 MiB when targeting v7x (64 MiB physical).
    vmem_limit_bytes=64 * 1024 * 1024,
)


def _up_conv_stats(x_flat, ah, mw, wk, nb, compute_dtype):
    n, hin, wcin = x_flat.shape
    hout = ah.shape[0]
    wc_up = mw.shape[1]
    wc_out = wk.shape[1]
    nsteps = n // nb
    return pl.pallas_call(
        _up_conv_kernel,
        out_shape=(jax.ShapeDtypeStruct((n, hout, wc_out), jnp.float32),
                   jax.ShapeDtypeStruct((nsteps, 2, wc_out), jnp.float32)),
        grid_spec=pltpu.PrefetchScalarGridSpec(
            num_scalar_prefetch=0,
            grid=(nsteps,),
            in_specs=[
                pl.BlockSpec((nb, hin, wcin), lambda i: (i, 0, 0)),
                pl.BlockSpec((hout, hin), lambda i: (0, 0)),
                pl.BlockSpec((wcin, wc_up), lambda i: (0, 0)),
                pl.BlockSpec((3 * wc_up, wc_out), lambda i: (0, 0)),
            ],
            out_specs=[
                pl.BlockSpec((nb, hout, wc_out), lambda i: (i, 0, 0)),
                pl.BlockSpec((1, 2, wc_out), lambda i: (i, 0, 0)),
            ],
            scratch_shapes=[
                pltpu.VMEM((nb, hout + 2, wc_up), jnp.float32),
                pltpu.VMEM((nb * hout, 3 * wc_up), compute_dtype),
            ],
        ),
        compiler_params=_COMPILER_PARAMS,
    )(x_flat, ah, mw, wk)


def _bnrelu_conv_stats(x_flat, scale_t, shift_t, wk, nb, compute_dtype):
    n, hout, wc_in = x_flat.shape
    wc_out = wk.shape[1]
    nsteps = n // nb
    return pl.pallas_call(
        _bnrelu_conv_kernel,
        out_shape=(jax.ShapeDtypeStruct((n, hout, wc_out), jnp.float32),
                   jax.ShapeDtypeStruct((nsteps, 2, wc_out), jnp.float32)),
        grid_spec=pltpu.PrefetchScalarGridSpec(
            num_scalar_prefetch=0,
            grid=(nsteps,),
            in_specs=[
                pl.BlockSpec((nb, hout, wc_in), lambda i: (i, 0, 0)),
                pl.BlockSpec((1, wc_in), lambda i: (0, 0)),
                pl.BlockSpec((1, wc_in), lambda i: (0, 0)),
                pl.BlockSpec((3 * wc_in, wc_out), lambda i: (0, 0)),
            ],
            out_specs=[
                pl.BlockSpec((nb, hout, wc_out), lambda i: (i, 0, 0)),
                pl.BlockSpec((1, 2, wc_out), lambda i: (i, 0, 0)),
            ],
            scratch_shapes=[
                pltpu.VMEM((nb, hout + 2, wc_in), jnp.float32),
                pltpu.VMEM((nb * hout, 3 * wc_in), compute_dtype),
            ],
        ),
        compiler_params=_COMPILER_PARAMS,
    )(x_flat, scale_t, shift_t, wk)


def _bnrelu_apply(x_flat, scale_t, shift_t, nb):
    n, hout, wc = x_flat.shape
    nsteps = n // nb
    return pl.pallas_call(
        _bnrelu_apply_kernel,
        out_shape=jax.ShapeDtypeStruct((n, hout, wc), jnp.float32),
        grid_spec=pltpu.PrefetchScalarGridSpec(
            num_scalar_prefetch=0,
            grid=(nsteps,),
            in_specs=[
                pl.BlockSpec((nb, hout, wc), lambda i: (i, 0, 0)),
                pl.BlockSpec((1, wc), lambda i: (0, 0)),
                pl.BlockSpec((1, wc), lambda i: (0, 0)),
            ],
            out_specs=pl.BlockSpec((nb, hout, wc), lambda i: (i, 0, 0)),
        ),
        compiler_params=_COMPILER_PARAMS,
    )(x_flat, scale_t, shift_t)


# ---------------------------------------------------------------------------
# Parameters & forward
# ---------------------------------------------------------------------------
def init_params(key, in_ch, out_ch):
    """Deterministic init; shapes follow the PyTorch module."""
    k1, k2 = jax.random.split(key, 2)

    def conv_init(k, cin, cout):
        fan_in = cin * 9
        bound = 1.0 / jnp.sqrt(fan_in)
        kw, kb = jax.random.split(k)
        w = jax.random.uniform(kw, (3, 3, cin, cout), jnp.float32, -bound, bound)
        b = jax.random.uniform(kb, (cout,), jnp.float32, -bound, bound)
        return w, b

    w1, b1 = conv_init(k1, in_ch, out_ch)
    w2, b2 = conv_init(k2, out_ch, out_ch)
    return dict(w1=w1, b1=b1, g1=jnp.ones((out_ch,), jnp.float32),
                be1=jnp.zeros((out_ch,), jnp.float32),
                w2=w2, b2=b2, g2=jnp.ones((out_ch,), jnp.float32),
                be2=jnp.zeros((out_ch,), jnp.float32))


def _choose_nb(n, hout, target_m=256):
    """Fold nb batch elements per grid step so the conv matmul M = nb*hout ~ target."""
    nb = max(1, min(n, max(1, target_m // max(hout, 1))))
    while n % nb:
        nb -= 1
    return nb


def skip_up_forward_nhwc(x_nhwc, params, eps=1e-5, compute_dtype=jnp.bfloat16):
    """skip_up forward on NHWC input, NHWC output (preferred lane-dense entry).

    Conv biases b1/b2 are not applied explicitly: under training-mode BatchNorm
    they cancel exactly (mean shifts by b, variance unchanged), so the result is
    identical to the PyTorch module's forward.
    """
    n, h, w, cin = x_nhwc.shape
    cout = params["w1"].shape[-1]
    hout, wout = 2 * h, 2 * w
    nb = _choose_nb(n, hout)

    x = x_nhwc.astype(jnp.float32).reshape(n, h, w * cin)        # lane-dense

    # Host-built (tiny) interpolation / banded-conv matrices.
    aw = _upsample_matrix(w, wout)                               # (Wout, W)
    ah = _upsample_matrix(h, hout)                               # (Hout, H)
    mw = jnp.kron(aw.T, jnp.eye(cin, dtype=jnp.float32))         # (W*Cin, Wout*Cin)
    wk1 = _toeplitz_weights_stacked(params["w1"], wout, compute_dtype)
    wk2 = _toeplitz_weights_stacked(params["w2"], wout, compute_dtype)

    count = n * hout * wout

    # upsample + conv1 (+ packed stats)
    c1, st1 = _up_conv_stats(x, ah, mw, wk1, nb, compute_dtype)
    scale1, shift1 = _bn_scale_shift(st1, params["g1"], params["be1"],
                                     count, wout, cout, eps)
    # BN1+ReLU fused into conv2's prologue, conv2 (+ packed stats)
    c2, st2 = _bnrelu_conv_stats(c1, scale1, shift1, wk2, nb, compute_dtype)
    scale2, shift2 = _bn_scale_shift(st2, params["g2"], params["be2"],
                                     count, wout, cout, eps)
    # final BN2+ReLU apply
    y = _bnrelu_apply(c2, scale2, shift2, nb)                    # (N, Hout, Wout*Cout)
    return y.reshape(n, hout, wout, cout)


def skip_up_forward(x_nchw, params, eps=1e-5, compute_dtype=jnp.bfloat16):
    """NCHW wrapper for PyTorch parity (prefer skip_up_forward_nhwc: it avoids the
    two extra full-array HBM transposes outside the kernels)."""
    x_nhwc = jnp.transpose(x_nchw, (0, 2, 3, 1))
    y = skip_up_forward_nhwc(x_nhwc, params, eps, compute_dtype)
    return jnp.transpose(y, (0, 3, 1, 2))


# ---------------------------------------------------------------------------
# Pure-JAX reference for correctness check
# ---------------------------------------------------------------------------
def _upsample_ref(x_nhwc):
    n, h, w, c = x_nhwc.shape
    del n, c

    def coords(l_in):
        s = jnp.arange(2 * l_in, dtype=jnp.float32) * (l_in - 1) / (2 * l_in - 1)
        i0 = jnp.clip(jnp.floor(s).astype(jnp.int32), 0, l_in - 2)
        return i0, s - i0.astype(jnp.float32)

    h0, th = coords(h)
    w0, tw = coords(w)
    xh = (x_nhwc[:, h0] * (1.0 - th)[None, :, None, None]
          + x_nhwc[:, h0 + 1] * th[None, :, None, None])
    return (xh[:, :, w0] * (1.0 - tw)[None, None, :, None]
            + xh[:, :, w0 + 1] * tw[None, None, :, None])


def _ref_forward(x_nchw, params, eps=1e-5):
    x = jnp.transpose(x_nchw, (0, 2, 3, 1)).astype(jnp.float32)
    x = _upsample_ref(x)

    def block(xx, w, b, g, be):
        c = lax.conv_general_dilated(
            xx, w, (1, 1), "SAME",
            dimension_numbers=("NHWC", "HWIO", "NHWC")) + b[None, None, None, :]
        mean = jnp.mean(c, axis=(0, 1, 2))
        var = jnp.mean(jnp.square(c - mean), axis=(0, 1, 2))
        y = (c - mean) * lax.rsqrt(var + eps) * g + be
        return jnp.maximum(y, 0.0)

    y = block(x, params["w1"], params["b1"], params["g1"], params["be1"])
    y = block(y, params["w2"], params["b2"], params["g2"], params["be2"])
    return jnp.transpose(y, (0, 3, 1, 2))


if __name__ == "__main__":
    key = jax.random.PRNGKey(0)
    in_ch, out_ch = 4, 8
    N, H, W = 2, 16, 16

    kx, kp = jax.random.split(key)
    x = jax.random.normal(kx, (N, in_ch, H, W), jnp.float32)
    params = init_params(kp, in_ch, out_ch)

    ref = _ref_forward(x, params)

    # Exact-arithmetic path (f32 MXU operands): tight check of the algorithm.
    fwd_f32 = jax.jit(functools.partial(skip_up_forward, compute_dtype=jnp.float32))
    out_f32 = jax.block_until_ready(fwd_f32(x, params))
    assert out_f32.shape == (N, out_ch, 2 * H, 2 * W)
    assert jnp.allclose(out_f32, ref, atol=2e-3, rtol=2e-3), "f32 path mismatch"

    # Default bf16-MXU path: looser tolerance (bf16 operand rounding ~0.4% rel,
    # brought to ~unit scale by the BatchNorms).
    fwd_bf16 = jax.jit(skip_up_forward)
    out_bf16 = jax.block_until_ready(fwd_bf16(x, params))
    assert out_bf16.shape == (N, out_ch, 2 * H, 2 * W)
    assert jnp.allclose(out_bf16, ref, atol=5e-2, rtol=5e-2), "bf16 path mismatch"

    print("KERNEL_OK")
</pallas_src>

<mosaic_0001>
module attributes {stable_mosaic.version = 11 : i64} {
  func.func @_up_conv_kernel(%arg0: i32, %arg1: memref<2x16x64xf32, #tpu.memory_space<vmem>>, %arg2: memref<32x16xf32, #tpu.memory_space<vmem>>, %arg3: memref<64x128xf32, #tpu.memory_space<vmem>>, %arg4: memref<384x256xf32, #tpu.memory_space<vmem>>, %arg5: memref<2x32x256xf32, #tpu.memory_space<vmem>>, %arg6: memref<1x2x256xf32, #tpu.memory_space<vmem>>, %arg7: memref<2x34x128xf32, #tpu.memory_space<vmem>>, %arg8: memref<64x384xf32, #tpu.memory_space<vmem>>) attributes {dimension_semantics = [#tpu.dimension_semantics<parallel>], iteration_bounds = array<i64: 1>, scalar_prefetch = 0 : i64, scratch_operands = 2 : i64, tpu.core_type = #tpu.core_type<tc>, window_params = [{transform_indices = @transform_0, window_bounds = array<i64: 2, 16, 64>}, {pipeline_mode = #tpu.pipeline_mode<synchronous>, transform_indices = @transform_1, window_bounds = array<i64: 32, 16>}, {pipeline_mode = #tpu.pipeline_mode<synchronous>, transform_indices = @transform_2, window_bounds = array<i64: 64, 128>}, {pipeline_mode = #tpu.pipeline_mode<synchronous>, transform_indices = @transform_3, window_bounds = array<i64: 384, 256>}, {transform_indices = @transform_4, window_bounds = array<i64: 2, 32, 256>}, {transform_indices = @transform_5, window_bounds = array<i64: 1, 2, 256>}]} {
    %c0 = arith.constant 0 : index
    %c0_0 = arith.constant 0 : index
    %c0_1 = arith.constant 0 : index
    %0 = vector.load %arg1[%c0, %c0_0, %c0_1] : memref<2x16x64xf32, #tpu.memory_space<vmem>>, vector<2x16x64xf32>
    %1 = vector.shape_cast %0 : vector<2x16x64xf32> to vector<32x64xf32>
    %c0_2 = arith.constant 0 : index
    %c0_3 = arith.constant 0 : index
    %2 = vector.load %arg3[%c0_2, %c0_3] : memref<64x128xf32, #tpu.memory_space<vmem>>, vector<64x128xf32>
    %cst = arith.constant dense<0.000000e+00> : vector<32x128xf32>
    %3 = tpu.matmul %1, %2, %cst {dimension_numbers = #tpu.dot_dimension_numbers<[1], [0], [0], [1], [0, 0, 1, 1], [], []>} : vector<32x64xf32>, vector<64x128xf32>, vector<32x128xf32> -> vector<32x128xf32>
    %4 = vector.shape_cast %3 : vector<32x128xf32> to vector<2x16x128xf32>
    %c0_4 = arith.constant 0 : index
    %c0_5 = arith.constant 0 : index
    %5 = vector.load %arg2[%c0_4, %c0_5] : memref<32x16xf32, #tpu.memory_space<vmem>>, vector<32x16xf32>
    %6 = vector.extract_strided_slice %4 {offsets = [0, 0, 0], sizes = [1, 16, 128], strides = [1, 1, 1]} : vector<2x16x128xf32> to vector<1x16x128xf32>
    %7 = vector.shape_cast %6 : vector<1x16x128xf32> to vector<16x128xf32>
    %cst_6 = arith.constant dense<0.000000e+00> : vector<32x128xf32>
    %8 = tpu.matmul %5, %7, %cst_6 {dimension_numbers = #tpu.dot_dimension_numbers<[1], [0], [0], [1], [0, 0, 1, 1], [], []>} : vector<32x16xf32>, vector<16x128xf32>, vector<32x128xf32> -> vector<32x128xf32>
    %c0_7 = arith.constant 0 : index
    %c1 = arith.constant 1 : index
    %c0_8 = arith.constant 0 : index
    %9 = vector.load %arg7[%c0_7, %c1, %c0_8] : memref<2x34x128xf32, #tpu.memory_space<vmem>>, vector<1x32x128xf32>
    %10 = vector.shape_cast %9 : vector<1x32x128xf32> to vector<32x128xf32>
    %11 = vector.shape_cast %8 : vector<32x128xf32> to vector<1x32x128xf32>
    tpu.vector_store %arg7[%c0_7, %c1, %c0_8], %11 {strides = array<i32>} : memref<2x34x128xf32, #tpu.memory_space<vmem>>, vector<1x32x128xf32>,
    %12 = vector.extract_strided_slice %4 {offsets = [1, 0, 0], sizes = [1, 16, 128], strides = [1, 1, 1]} : vector<2x16x128xf32> to vector<1x16x128xf32>
    %13 = vector.shape_cast %12 : vector<1x16x128xf32> to vector<16x128xf32>
    %cst_9 = arith.constant dense<0.000000e+00> : vector<32x128xf32>
    %14 = tpu.matmul %5, %13, %cst_9 {dimension_numbers = #tpu.dot_dimension_numbers<[1], [0], [0], [1], [0, 0, 1, 1], [], []>} : vector<32x16xf32>, vector<16x128xf32>, vector<32x128xf32> -> vector<32x128xf32>
    %c1_10 = arith.constant 1 : index
    %c1_11 = arith.constant 1 : index
    %c0_12 = arith.constant 0 : index
    %15 = vector.load %arg7[%c1_10, %c1_11, %c0_12] : memref<2x34x128xf32, #tpu.memory_space<vmem>>, vector<1x32x128xf32>
    %16 = vector.shape_cast %15 : vector<1x32x128xf32> to vector<32x128xf32>
    %17 = vector.shape_cast %14 : vector<32x128xf32> to vector<1x32x128xf32>
    tpu.vector_store %arg7[%c1_10, %c1_11, %c0_12], %17 {strides = array<i32>} : memref<2x34x128xf32, #tpu.memory_space<vmem>>, vector<1x32x128xf32>,
    %cst_13 = arith.constant 0.000000e+00 : f32
    %18 = vector.broadcast %cst_13 : f32 to vector<2x1x128xf32>
    %c0_14 = arith.constant 0 : index
    %c0_15 = arith.constant 0 : index
    %c0_16 = arith.constant 0 : index
    %19 = vector.load %arg7[%c0_14, %c0_15, %c0_16] : memref<2x34x128xf32, #tpu.memory_space<vmem>>, vector<2x1x128xf32>
    tpu.vector_store %arg7[%c0_14, %c0_15, %c0_16], %18 {strides = array<i32>} : memref<2x34x128xf32, #tpu.memory_space<vmem>>, vector<2x1x128xf32>,
    %c0_17 = arith.constant 0 : index
    %c33 = arith.constant 33 : index
    %c0_18 = arith.constant 0 : index
    %20 = vector.load %arg7[%c0_17, %c33, %c0_18] : memref<2x34x128xf32, #tpu.memory_space<vmem>>, vector<2x1x128xf32>
    tpu.vector_store %arg7[%c0_17, %c33, %c0_18], %18 {strides = array<i32>} : memref<2x34x128xf32, #tpu.memory_space<vmem>>, vector<2x1x128xf32>,
    %c0_19 = arith.constant 0 : index
    %c0_20 = arith.constant 0 : index
    %c0_21 = arith.constant 0 : index
    %21 = vector.load %arg7[%c0_19, %c0_20, %c0_21] : memref<2x34x128xf32, #tpu.memory_space<vmem>>, vector<2x32x128xf32>
    %22 = vector.shape_cast %21 : vector<2x32x128xf32> to vector<64x128xf32>
    %c0_22 = arith.constant 0 : index
    %c0_23 = arith.constant 0 : index
    %23 = vector.load %arg8[%c0_22, %c0_23] : memref<64x384xf32, #tpu.memory_space<vmem>>, vector<64x128xf32>
    tpu.vector_store %arg8[%c0_22, %c0_23], %22 {strides = array<i32>} : memref<64x384xf32, #tpu.memory_space<vmem>>, vector<64x128xf32>,
    %c0_24 = arith.constant 0 : index
    %c1_25 = arith.constant 1 : index
    %c0_26 = arith.constant 0 : index
    %24 = vector.load %arg7[%c0_24, %c1_25, %c0_26] : memref<2x34x128xf32, #tpu.memory_space<vmem>>, vector<2x32x128xf32>
    %25 = vector.shape_cast %24 : vector<2x32x128xf32> to vector<64x128xf32>
    %c0_27 = arith.constant 0 : index
    %c128 = arith.constant 128 : index
    %26 = vector.load %arg8[%c0_27, %c128] : memref<64x384xf32, #tpu.memory_space<vmem>>, vector<64x128xf32>
    tpu.vector_store %arg8[%c0_27, %c128], %25 {strides = array<i32>} : memref<64x384xf32, #tpu.memory_space<vmem>>, vector<64x128xf32>,
    %c0_28 = arith.constant 0 : index
    %c2 = arith.constant 2 : index
    %c0_29 = arith.constant 0 : index
    %27 = vector.load %arg7[%c0_28, %c2, %c0_29] : memref<2x34x128xf32, #tpu.memory_space<vmem>>, vector<2x32x128xf32>
    %28 = vector.shape_cast %27 : vector<2x32x128xf32> to vector<64x128xf32>
    %c0_30 = arith.constant 0 : index
    %c256 = arith.constant 256 : index
    %29 = vector.load %arg8[%c0_30, %c256] : memref<64x384xf32, #tpu.memory_space<vmem>>, vector<64x128xf32>
    tpu.vector_store %arg8[%c0_30, %c256], %28 {strides = array<i32>} : memref<64x384xf32, #tpu.memory_space<vmem>>, vector<64x128xf32>,
    %c0_31 = arith.constant 0 : index
    %c0_32 = arith.constant 0 : index
    %30 = vector.load %arg8[%c0_31, %c0_32] : memref<64x384xf32, #tpu.memory_space<vmem>>, vector<64x384xf32>
    %c0_33 = arith.constant 0 : index
    %c0_34 = arith.constant 0 : index
    %31 = vector.load %arg4[%c0_33, %c0_34] : memref<384x256xf32, #tpu.memory_space<vmem>>, vector<384x256xf32>
    %cst_35 = arith.constant dense<0.000000e+00> : vector<64x256xf32>
    %32 = tpu.matmul %30, %31, %cst_35 {dimension_numbers = #tpu.dot_dimension_numbers<[1], [0], [0], [1], [0, 0, 1, 1], [], []>} : vector<64x384xf32>, vector<384x256xf32>, vector<64x256xf32> -> vector<64x256xf32>
    %33 = vector.shape_cast %32 : vector<64x256xf32> to vector<2x32x256xf32>
    %c0_36 = arith.constant 0 : index
    %c0_37 = arith.constant 0 : index
    %c0_38 = arith.constant 0 : index
    %34 = vector.load %arg5[%c0_36, %c0_37, %c0_38] : memref<2x32x256xf32, #tpu.memory_space<vmem>>, vector<2x32x256xf32>
    tpu.vector_store %arg5[%c0_36, %c0_37, %c0_38], %33 {strides = array<i32>} : memref<2x32x256xf32, #tpu.memory_space<vmem>>, vector<2x32x256xf32>,
    %cst_39 = arith.constant dense<0.000000e+00> : vector<256xf32>
    %35 = vector.multi_reduction <add>, %32, %cst_39 [0] : vector<64x256xf32> to vector<256xf32>
    %36 = vector.shape_cast %35 : vector<256xf32> to vector<1x256xf32>
    %37 = arith.mulf %32, %32 : vector<64x256xf32>
    %cst_40 = arith.constant dense<0.000000e+00> : vector<256xf32>
    %38 = vector.multi_reduction <add>, %37, %cst_40 [0] : vector<64x256xf32> to vector<256xf32>
    %39 = vector.shape_cast %38 : vector<256xf32> to vector<1x256xf32>
    %40 = tpu.concatenate %36, %39 in 0 : vector<1x256xf32>, vector<1x256xf32> -> vector<2x256xf32>
    %c0_41 = arith.constant 0 : index
    %c0_42 = arith.constant 0 : index
    %c0_43 = arith.constant 0 : index
    %41 = vector.load %arg6[%c0_41, %c0_42, %c0_43] : memref<1x2x256xf32, #tpu.memory_space<vmem>>, vector<1x2x256xf32>
    %42 = vector.shape_cast %41 : vector<1x2x256xf32> to vector<2x256xf32>
    %43 = vector.shape_cast %40 : vector<2x256xf32> to vector<1x2x256xf32>
    tpu.vector_store %arg6[%c0_41, %c0_42, %c0_43], %43 {strides = array<i32>} : memref<1x2x256xf32, #tpu.memory_space<vmem>>, vector<1x2x256xf32>,
    return
  }
  func.func @transform_0(%arg0: i32) -> (i32, i32, i32) {
    %c0_i32 = arith.constant 0 : i32
    %c0_i32_0 = arith.constant 0 : i32
    %c0_i32_1 = arith.constant 0 : i32
    return %arg0, %c0_i32, %c0_i32_0 : i32, i32, i32
  }
  func.func @transform_1(%arg0: i32) -> (i32, i32) {
    %c0_i32 = arith.constant 0 : i32
    %c0_i32_0 = arith.constant 0 : i32
    %c0_i32_1 = arith.constant 0 : i32
    return %c0_i32, %c0_i32_0 : i32, i32
  }
  func.func @transform_2(%arg0: i32) -> (i32, i32) {
    %c0_i32 = arith.constant 0 : i32
    %c0_i32_0 = arith.constant 0 : i32
    %c0_i32_1 = arith.constant 0 : i32
    return %c0_i32, %c0_i32_0 : i32, i32
  }
  func.func @transform_3(%arg0: i32) -> (i32, i32) {
    %c0_i32 = arith.constant 0 : i32
    %c0_i32_0 = arith.constant 0 : i32
    %c0_i32_1 = arith.constant 0 : i32
    return %c0_i32, %c0_i32_0 : i32, i32
  }
  func.func @transform_4(%arg0: i32) -> (i32, i32, i32) {
    %c0_i32 = arith.constant 0 : i32
    %c0_i32_0 = arith.constant 0 : i32
    %c0_i32_1 = arith.constant 0 : i32
    return %arg0, %c0_i32, %c0_i32_0 : i32, i32, i32
  }
  func.func @transform_5(%arg0: i32) -> (i32, i32, i32) {
    %c0_i32 = arith.constant 0 : i32
    %c0_i32_0 = arith.constant 0 : i32
    %c0_i32_1 = arith.constant 0 : i32
    return %arg0, %c0_i32, %c0_i32_0 : i32, i32, i32
  }
}

module attributes {stable_mosaic.version = 11 : i64} {
  func.func @_bnrelu_conv_kernel(%arg0: i32, %arg1: memref<2x32x256xf32, #tpu.memory_space<vmem>>, %arg2: memref<1x256xf32, #tpu.memory_space<vmem>>, %arg3: memref<1x256xf32, #tpu.memory_space<vmem>>, %arg4: memref<768x256xf32, #tpu.memory_space<vmem>>, %arg5: memref<2x32x256xf32, #tpu.memory_space<vmem>>, %arg6: memref<1x2x256xf32, #tpu.memory_space<vmem>>, %arg7: memref<2x34x256xf32, #tpu.memory_space<vmem>>, %arg8: memref<64x768xf32, #tpu.memory_space<vmem>>) attributes {dimension_semantics = [#tpu.dimension_semantics<parallel>], iteration_bounds = array<i64: 1>, scalar_prefetch = 0 : i64, scratch_operands = 2 : i64, tpu.core_type = #tpu.core_type<tc>, window_params = [{transform_indices = @transform_0, window_bounds = array<i64: 2, 32, 256>}, {pipeline_mode = #tpu.pipeline_mode<synchronous>, transform_indices = @transform_1, window_bounds = array<i64: 1, 256>}, {pipeline_mode = #tpu.pipeline_mode<synchronous>, transform_indices = @transform_2, window_bounds = array<i64: 1, 256>}, {pipeline_mode = #tpu.pipeline_mode<synchronous>, transform_indices = @transform_3, window_bounds = array<i64: 768, 256>}, {transform_indices = @transform_4, window_bounds = array<i64: 2, 32, 256>}, {transform_indices = @transform_5, window_bounds = array<i64: 1, 2, 256>}]} {
    %c0 = arith.constant 0 : index
    %c0_0 = arith.constant 0 : index
    %c0_1 = arith.constant 0 : index
    %0 = vector.load %arg1[%c0, %c0_0, %c0_1] : memref<2x32x256xf32, #tpu.memory_space<vmem>>, vector<2x32x256xf32>
    %1 = vector.shape_cast %0 : vector<2x32x256xf32> to vector<64x256xf32>
    %c0_2 = arith.constant 0 : index
    %c0_3 = arith.constant 0 : index
    %2 = vector.load %arg2[%c0_2, %c0_3] : memref<1x256xf32, #tpu.memory_space<vmem>>, vector<1x256xf32>
    %3 = vector.broadcast %2 : vector<1x256xf32> to vector<64x256xf32>
    %4 = arith.mulf %1, %3 : vector<64x256xf32>
    %c0_4 = arith.constant 0 : index
    %c0_5 = arith.constant 0 : index
    %5 = vector.load %arg3[%c0_4, %c0_5] : memref<1x256xf32, #tpu.memory_space<vmem>>, vector<1x256xf32>
    %6 = vector.broadcast %5 : vector<1x256xf32> to vector<64x256xf32>
    %7 = arith.addf %4, %6 : vector<64x256xf32>
    %cst = arith.constant 0.000000e+00 : f32
    %8 = vector.broadcast %cst : f32 to vector<64x256xf32>
    %9 = arith.maximumf %7, %8 : vector<64x256xf32>
    %10 = vector.shape_cast %9 : vector<64x256xf32> to vector<2x32x256xf32>
    %c0_6 = arith.constant 0 : index
    %c1 = arith.constant 1 : index
    %c0_7 = arith.constant 0 : index
    %11 = vector.load %arg7[%c0_6, %c1, %c0_7] : memref<2x34x256xf32, #tpu.memory_space<vmem>>, vector<2x32x256xf32>
    tpu.vector_store %arg7[%c0_6, %c1, %c0_7], %10 {strides = array<i32>} : memref<2x34x256xf32, #tpu.memory_space<vmem>>, vector<2x32x256xf32>,
    %cst_8 = arith.constant 0.000000e+00 : f32
    %12 = vector.broadcast %cst_8 : f32 to vector<2x1x256xf32>
    %c0_9 = arith.constant 0 : index
    %c0_10 = arith.constant 0 : index
    %c0_11 = arith.constant 0 : index
    %13 = vector.load %arg7[%c0_9, %c0_10, %c0_11] : memref<2x34x256xf32, #tpu.memory_space<vmem>>, vector<2x1x256xf32>
    tpu.vector_store %arg7[%c0_9, %c0_10, %c0_11], %12 {strides = array<i32>} : memref<2x34x256xf32, #tpu.memory_space<vmem>>, vector<2x1x256xf32>,
    %c0_12 = arith.constant 0 : index
    %c33 = arith.constant 33 : index
    %c0_13 = arith.constant 0 : index
    %14 = vector.load %arg7[%c0_12, %c33, %c0_13] : memref<2x34x256xf32, #tpu.memory_space<vmem>>, vector<2x1x256xf32>
    tpu.vector_store %arg7[%c0_12, %c33, %c0_13], %12 {strides = array<i32>} : memref<2x34x256xf32, #tpu.memory_space<vmem>>, vector<2x1x256xf32>,
    %c0_14 = arith.constant 0 : index
    %c0_15 = arith.constant 0 : index
    %c0_16 = arith.constant 0 : index
    %15 = vector.load %arg7[%c0_14, %c0_15, %c0_16] : memref<2x34x256xf32, #tpu.memory_space<vmem>>, vector<2x32x256xf32>
    %16 = vector.shape_cast %15 : vector<2x32x256xf32> to vector<64x256xf32>
    %c0_17 = arith.constant 0 : index
    %c0_18 = arith.constant 0 : index
    %17 = vector.load %arg8[%c0_17, %c0_18] : memref<64x768xf32, #tpu.memory_space<vmem>>, vector<64x256xf32>
    tpu.vector_store %arg8[%c0_17, %c0_18], %16 {strides = array<i32>} : memref<64x768xf32, #tpu.memory_space<vmem>>, vector<64x256xf32>,
    %c0_19 = arith.constant 0 : index
    %c1_20 = arith.constant 1 : index
    %c0_21 = arith.constant 0 : index
    %18 = vector.load %arg7[%c0_19, %c1_20, %c0_21] : memref<2x34x256xf32, #tpu.memory_space<vmem>>, vector<2x32x256xf32>
    %19 = vector.shape_cast %18 : vector<2x32x256xf32> to vector<64x256xf32>
    %c0_22 = arith.constant 0 : index
    %c256 = arith.constant 256 : index
    %20 = vector.load %arg8[%c0_22, %c256] : memref<64x768xf32, #tpu.memory_space<vmem>>, vector<64x256xf32>
    tpu.vector_store %arg8[%c0_22, %c256], %19 {strides = array<i32>} : memref<64x768xf32, #tpu.memory_space<vmem>>, vector<64x256xf32>,
    %c0_23 = arith.constant 0 : index
    %c2 = arith.constant 2 : index
    %c0_24 = arith.constant 0 : index
    %21 = vector.load %arg7[%c0_23, %c2, %c0_24] : memref<2x34x256xf32, #tpu.memory_space<vmem>>, vector<2x32x256xf32>
    %22 = vector.shape_cast %21 : vector<2x32x256xf32> to vector<64x256xf32>
    %c0_25 = arith.constant 0 : index
    %c512 = arith.constant 512 : index
    %23 = vector.load %arg8[%c0_25, %c512] : memref<64x768xf32, #tpu.memory_space<vmem>>, vector<64x256xf32>
    tpu.vector_store %arg8[%c0_25, %c512], %22 {strides = array<i32>} : memref<64x768xf32, #tpu.memory_space<vmem>>, vector<64x256xf32>,
    %c0_26 = arith.constant 0 : index
    %c0_27 = arith.constant 0 : index
    %24 = vector.load %arg8[%c0_26, %c0_27] : memref<64x768xf32, #tpu.memory_space<vmem>>, vector<64x768xf32>
    %c0_28 = arith.constant 0 : index
    %c0_29 = arith.constant 0 : index
    %25 = vector.load %arg4[%c0_28, %c0_29] : memref<768x256xf32, #tpu.memory_space<vmem>>, vector<768x256xf32>
    %cst_30 = arith.constant dense<0.000000e+00> : vector<64x256xf32>
    %26 = tpu.matmul %24, %25, %cst_30 {dimension_numbers = #tpu.dot_dimension_numbers<[1], [0], [0], [1], [0, 0, 1, 1], [], []>} : vector<64x768xf32>, vector<768x256xf32>, vector<64x256xf32> -> vector<64x256xf32>
    %27 = vector.shape_cast %26 : vector<64x256xf32> to vector<2x32x256xf32>
    %c0_31 = arith.constant 0 : index
    %c0_32 = arith.constant 0 : index
    %c0_33 = arith.constant 0 : index
    %28 = vector.load %arg5[%c0_31, %c0_32, %c0_33] : memref<2x32x256xf32, #tpu.memory_space<vmem>>, vector<2x32x256xf32>
    tpu.vector_store %arg5[%c0_31, %c0_32, %c0_33], %27 {strides = array<i32>} : memref<2x32x256xf32, #tpu.memory_space<vmem>>, vector<2x32x256xf32>,
    %cst_34 = arith.constant dense<0.000000e+00> : vector<256xf32>
    %29 = vector.multi_reduction <add>, %26, %cst_34 [0] : vector<64x256xf32> to vector<256xf32>
    %30 = vector.shape_cast %29 : vector<256xf32> to vector<1x256xf32>
    %31 = arith.mulf %26, %26 : vector<64x256xf32>
    %cst_35 = arith.constant dense<0.000000e+00> : vector<256xf32>
    %32 = vector.multi_reduction <add>, %31, %cst_35 [0] : vector<64x256xf32> to vector<256xf32>
    %33 = vector.shape_cast %32 : vector<256xf32> to vector<1x256xf32>
    %34 = tpu.concatenate %30, %33 in 0 : vector<1x256xf32>, vector<1x256xf32> -> vector<2x256xf32>
    %c0_36 = arith.constant 0 : index
    %c0_37 = arith.constant 0 : index
    %c0_38 = arith.constant 0 : index
    %35 = vector.load %arg6[%c0_36, %c0_37, %c0_38] : memref<1x2x256xf32, #tpu.memory_space<vmem>>, vector<1x2x256xf32>
    %36 = vector.shape_cast %35 : vector<1x2x256xf32> to vector<2x256xf32>
    %37 = vector.shape_cast %34 : vector<2x256xf32> to vector<1x2x256xf32>
    tpu.vector_store %arg6[%c0_36, %c0_37, %c0_38], %37 {strides = array<i32>} : memref<1x2x256xf32, #tpu.memory_space<vmem>>, vector<1x2x256xf32>,
    return
  }
  func.func @transform_0(%arg0: i32) -> (i32, i32, i32) {
    %c0_i32 = arith.constant 0 : i32
    %c0_i32_0 = arith.constant 0 : i32
    %c0_i32_1 = arith.constant 0 : i32
    return %arg0, %c0_i32, %c0_i32_0 : i32, i32, i32
  }
  func.func @transform_1(%arg0: i32) -> (i32, i32) {
    %c0_i32 = arith.constant 0 : i32
    %c0_i32_0 = arith.constant 0 : i32
    %c0_i32_1 = arith.constant 0 : i32
    return %c0_i32, %c0_i32_0 : i32, i32
  }
  func.func @transform_2(%arg0: i32) -> (i32, i32) {
    %c0_i32 = arith.constant 0 : i32
    %c0_i32_0 = arith.constant 0 : i32
    %c0_i32_1 = arith.constant 0 : i32
    return %c0_i32, %c0_i32_0 : i32, i32
  }
  func.func @transform_3(%arg0: i32) -> (i32, i32) {
    %c0_i32 = arith.constant 0 : i32
    %c0_i32_0 = arith.constant 0 : i32
    %c0_i32_1 = arith.constant 0 : i32
    return %c0_i32, %c0_i32_0 : i32, i32
  }
  func.func @transform_4(%arg0: i32) -> (i32, i32, i32) {
    %c0_i32 = arith.constant 0 : i32
    %c0_i32_0 = arith.constant 0 : i32
    %c0_i32_1 = arith.constant 0 : i32
    return %arg0, %c0_i32, %c0_i32_0 : i32, i32, i32
  }
  func.func @transform_5(%arg0: i32) -> (i32, i32, i32) {
    %c0_i32 = arith.constant 0 : i32
    %c0_i32_0 = arith.constant 0 : i32
    %c0_i32_1 = arith.constant 0 : i32
    return %arg0, %c0_i32, %c0_i32_0 : i32, i32, i32
  }
}

module attributes {stable_mosaic.version = 11 : i64} {
  func.func @_bnrelu_apply_kernel(%arg0: i32, %arg1: memref<2x32x256xf32, #tpu.memory_space<vmem>>, %arg2: memref<1x256xf32, #tpu.memory_space<vmem>>, %arg3: memref<1x256xf32, #tpu.memory_space<vmem>>, %arg4: memref<2x32x256xf32, #tpu.memory_space<vmem>>) attributes {dimension_semantics = [#tpu.dimension_semantics<parallel>], iteration_bounds = array<i64: 1>, scalar_prefetch = 0 : i64, scratch_operands = 0 : i64, tpu.core_type = #tpu.core_type<tc>, window_params = [{transform_indices = @transform_0, window_bounds = array<i64: 2, 32, 256>}, {pipeline_mode = #tpu.pipeline_mode<synchronous>, transform_indices = @transform_1, window_bounds = array<i64: 1, 256>}, {pipeline_mode = #tpu.pipeline_mode<synchronous>, transform_indices = @transform_2, window_bounds = array<i64: 1, 256>}, {transform_indices = @transform_3, window_bounds = array<i64: 2, 32, 256>}]} {
    %c0 = arith.constant 0 : index
    %c0_0 = arith.constant 0 : index
    %c0_1 = arith.constant 0 : index
    %0 = vector.load %arg1[%c0, %c0_0, %c0_1] : memref<2x32x256xf32, #tpu.memory_space<vmem>>, vector<2x32x256xf32>
    %1 = vector.shape_cast %0 : vector<2x32x256xf32> to vector<64x256xf32>
    %c0_2 = arith.constant 0 : index
    %c0_3 = arith.constant 0 : index
    %2 = vector.load %arg2[%c0_2, %c0_3] : memref<1x256xf32, #tpu.memory_space<vmem>>, vector<1x256xf32>
    %3 = vector.broadcast %2 : vector<1x256xf32> to vector<64x256xf32>
    %4 = arith.mulf %1, %3 : vector<64x256xf32>
    %c0_4 = arith.constant 0 : index
    %c0_5 = arith.constant 0 : index
    %5 = vector.load %arg3[%c0_4, %c0_5] : memref<1x256xf32, #tpu.memory_space<vmem>>, vector<1x256xf32>
    %6 = vector.broadcast %5 : vector<1x256xf32> to vector<64x256xf32>
    %7 = arith.addf %4, %6 : vector<64x256xf32>
    %cst = arith.constant 0.000000e+00 : f32
    %8 = vector.broadcast %cst : f32 to vector<64x256xf32>
    %9 = arith.maximumf %7, %8 : vector<64x256xf32>
    %10 = vector.shape_cast %9 : vector<64x256xf32> to vector<2x32x256xf32>
    %c0_6 = arith.constant 0 : index
    %c0_7 = arith.constant 0 : index
    %c0_8 = arith.constant 0 : index
    %11 = vector.load %arg4[%c0_6, %c0_7, %c0_8] : memref<2x32x256xf32, #tpu.memory_space<vmem>>, vector<2x32x256xf32>
    tpu.vector_store %arg4[%c0_6, %c0_7, %c0_8], %10 {strides = array<i32>} : memref<2x32x256xf32, #tpu.memory_space<vmem>>, vector<2x32x256xf32>,
    return
  }
  func.func @transform_0(%arg0: i32) -> (i32, i32, i32) {
    %c0_i32 = arith.constant 0 : i32
    %c0_i32_0 = arith.constant 0 : i32
    %c0_i32_1 = arith.constant 0 : i32
    return %arg0, %c0_i32, %c0_i32_0 : i32, i32, i32
  }
  func.func @transform_1(%arg0: i32) -> (i32, i32) {
    %c0_i32 = arith.constant 0 : i32
    %c0_i32_0 = arith.constant 0 : i32
    %c0_i32_1 = arith.constant 0 : i32
    return %c0_i32, %c0_i32_0 : i32, i32
  }
  func.func @transform_2(%arg0: i32) -> (i32, i32) {
    %c0_i32 = arith.constant 0 : i32
    %c0_i32_0 = arith.constant 0 : i32
    %c0_i32_1 = arith.constant 0 : i32
    return %c0_i32, %c0_i32_0 : i32, i32
  }
  func.func @transform_3(%arg0: i32) -> (i32, i32, i32) {
    %c0_i32 = arith.constant 0 : i32
    %c0_i32_0 = arith.constant 0 : i32
    %c0_i32_1 = arith.constant 0 : i32
    return %arg0, %c0_i32, %c0_i32_0 : i32, i32, i32
  }
}

</mosaic_0001>

<bundles_post_ra>
// kernel: skip_up_forward.3
= control target key start
LH: loop header
LB: loop body
LE: loop exit
PB: predicated region body
PF: predicated region fallthrough
CT: control target
= control target key end

     0   :  { %vm31_vm0 = vcmask 523264   ;;  %vm77_vm1 = vcmask 130048   ;;  %v722_v63 = vmov 0.0   ;;  %vm659_vm2 = vcmask 1040384   ;;  %s1206_s2 = inlined_call_operand.vmem [shape: f32[64,128], index: 2, kind: input, shape index: {}]   ;;  %s1207_s0 = inlined_call_operand.vmem [shape: f32[2,16,64], index: 0, kind: input, shape index: {}]   ;;  %s1208_s1 = inlined_call_operand.vmem [shape: f32[32,16], index: 1, kind: input, shape index: {}]   ;;  %s1209_s3 = inlined_call_operand.vmem [shape: f32[384,256], index: 3, kind: input, shape index: {}]   ;;  %s1210_s4 = inlined_call_operand.vmem [shape: f32[2,32,256], index: 4, kind: output, shape index: {0}]   ;;  %s1211_s5 = inlined_call_operand.vmem [shape: f32[1,2,256], index: 5, kind: output, shape index: {1}]  }
   0x1   :  { %v30_v0 = vld [vmem:[%s1206_s2 + $0x38] sm:$0xff]  ;;  %v29_v1 = vld [vmem:[%s1206_s2 + $0x30] sm:$0xff]  ;;  %v28_v2 = vld [vmem:[%s1206_s2 + $0x28] sm:$0xff]  ;;  %157 = vst [vmem:[#allocation2] sm:$0x1] %v722_v63  ;;  %vm665_vm3 = vcmask 1041408  }
   0x2   :  { %52 = vmatpush.msra.mxu0 %v30_v0  ;;  %v27_v3 = vld [vmem:[%s1206_s2 + $0x20] sm:$0xff]  ;;  %v26_v4 = vld [vmem:[%s1206_s2 + $0x18] sm:$0xff]  ;;  %v25_v5 = vld [vmem:[%s1206_s2 + $0x10] sm:$0xff]  ;;  %158 = vst [vmem:[#allocation2 + $0x28] sm:$0x1] %v722_v63 }
   0x3   :  { %v24_v6 = vld [vmem:[%s1206_s2 + $0x8] sm:$0xff]  ;;  %v23_v7 = vld [vmem:[%s1206_s2] sm:$0xff]  ;;  %v21_v10 = vld [vmem:[%s1207_s0 + $0x10] sm:$0xff]  ;;  %159 = vst [vmem:[#allocation2 + $0x21] sm:$0x1] %v722_v63 }
   0x4   :  { %53 = vmatpush.msra.mxu0 %v29_v1  ;;  %v19_v8 = vld [vmem:[%s1207_s0] sm:$0xff]  ;;  %v20_v9 = vld [vmem:[%s1207_s0 + $0x8] sm:$0xff]  ;;  %v22_v11 = vld [vmem:[%s1207_s0 + $0x18] sm:$0xff]  ;;  %160 = vst [vmem:[#allocation2 + $0x49] sm:$0x1] %v722_v63 }
   0x5   :  { %v73_v14 = vld [vmem:[%s1208_s1] sm:$0xff]  ;;  %v74_v16 = vld [vmem:[%s1208_s1 + $0x8] sm:$0xff]  ;;  %v263_v17 = vld [vmem:[%s1209_s3 + $0xf0] sm:$0xff] }
   0x6   :  { %54 = vmatpush.msra.mxu0 %v28_v2  ;;  %v295_v18 = vld [vmem:[%s1209_s3 + $0x1f0] sm:$0xff]  ;;  %v264_v19 = vld [vmem:[%s1209_s3 + $0xf8] sm:$0xff]  ;;  %329 = vmatpush.msra.mxu3 %v263_v17  ;;  %v261_v20 = vld [vmem:[%s1209_s3 + $0xe0] sm:$0xff] }
   0x7   :  { %v293_v21 = vld [vmem:[%s1209_s3 + $0x1e0] sm:$0xff]  ;;  %v262_v22 = vld [vmem:[%s1209_s3 + $0xe8] sm:$0xff]  ;;  %v259_v23 = vld [vmem:[%s1209_s3 + $0xd0] sm:$0xff] }
   0x8   :  { %55 = vmatpush.msra.mxu0 %v27_v3  ;;  %330 = vmatpush.msra.mxu3 %v261_v20  ;;  %v291_v24 = vld [vmem:[%s1209_s3 + $0x1d0] sm:$0xff]  ;;  %v260_v25 = vld [vmem:[%s1209_s3 + $0xd8] sm:$0xff]  ;;  %v257_v27 = vld [vmem:[%s1209_s3 + $0xc0] sm:$0xff] }
   0x9   :  { %v75_v28 = vld [vmem:[%s1208_s1 + $0x10] sm:$0xff]  ;;  %v289_v29 = vld [vmem:[%s1209_s3 + $0x1c0] sm:$0xff]  ;;  %v258_v30 = vld [vmem:[%s1209_s3 + $0xc8] sm:$0xff] }
   0xa   :  { %56 = vmatpush.msra.mxu0 %v26_v4  ;;  %331 = vmatpush.msra.mxu3 %v259_v23  ;;  %v255_v31 = vld [vmem:[%s1209_s3 + $0xb0] sm:$0xff]  ;;  %v256_v33 = vld [vmem:[%s1209_s3 + $0xb8] sm:$0xff]  ;;  %v253_v34 = vld [vmem:[%s1209_s3 + $0xa0] sm:$0xff] }
   0xb   :  { %v287_v32 = vld [vmem:[%s1209_s3 + $0x1b0] sm:$0xff]  ;;  %v285_v35 = vld [vmem:[%s1209_s3 + $0x1a0] sm:$0xff]  ;;  %v254_v36 = vld [vmem:[%s1209_s3 + $0xa8] sm:$0xff] }
   0xc   :  { %57 = vmatpush.msra.mxu0 %v25_v5  ;;  %332 = vmatpush.msra.mxu3 %v257_v27  ;;  %v251_v37 = vld [vmem:[%s1209_s3 + $0x90] sm:$0xff]  ;;  %v252_v39 = vld [vmem:[%s1209_s3 + $0x98] sm:$0xff]  ;;  %v249_v41 = vld [vmem:[%s1209_s3 + $0x80] sm:$0xff] }
   0xd   :  { %v283_v38 = vld [vmem:[%s1209_s3 + $0x190] sm:$0xff]  ;;  %v76_v40 = vld [vmem:[%s1208_s1 + $0x18] sm:$0xff]  ;;  %v281_v42 = vld [vmem:[%s1209_s3 + $0x180] sm:$0xff] }
   0xe   :  { %58 = vmatpush.msra.mxu0 %v24_v6  ;;  %333 = vmatpush.msra.mxu3 %v255_v31  ;;  %v250_v43 = vld [vmem:[%s1209_s3 + $0x88] sm:$0xff]  ;;  %v247_v44 = vld [vmem:[%s1209_s3 + $0x70] sm:$0xff]  ;;  %v248_v46 = vld [vmem:[%s1209_s3 + $0x78] sm:$0xff] }
   0xf   :  { %v279_v45 = vld [vmem:[%s1209_s3 + $0x170] sm:$0xff]  ;;  %v245_v47 = vld [vmem:[%s1209_s3 + $0x60] sm:$0xff]  ;;  %v246_v49 = vld [vmem:[%s1209_s3 + $0x68] sm:$0xff] }
  0x10   :  { %59 = vmatpush.msra.mxu0 %v23_v7  ;;  %334 = vmatpush.msra.mxu3 %v253_v34  ;;  %v277_v48 = vld [vmem:[%s1209_s3 + $0x160] sm:$0xff]  ;;  %v243_v50 = vld [vmem:[%s1209_s3 + $0x50] sm:$0xff]  ;;  %v244_v52 = vld [vmem:[%s1209_s3 + $0x58] sm:$0xff] }
  0x11   :  { %677 = vmatmul.msk.f32.vlgmr.msra.gmra.mxu0 %vm31_vm0, %v19_v8  ;;  %v275_v51 = vld [vmem:[%s1209_s3 + $0x150] sm:$0xff]  ;;  %v273_v53 = vld [vmem:[%s1209_s3 + $0x140] sm:$0xff]  ;;  %v242_v58 = vld [vmem:[%s1209_s3 + $0x48] sm:$0xff] }
  0x12   :  { %452 = vmatpush.msrb.mxu0 %v264_v19  ;;  %335 = vmatpush.msra.mxu3 %v251_v37  ;;  %v271_v54 = vld [vmem:[%s1209_s3 + $0x130] sm:$0xff]  ;;  %v269_v55 = vld [vmem:[%s1209_s3 + $0x120] sm:$0xff]  ;;  %v240_v61 = vld [vmem:[%s1209_s3 + $0x38] sm:$0xff] }
  0x13   :  { %v267_v56 = vld [vmem:[%s1209_s3 + $0x110] sm:$0xff]  ;;  %v241_v57 = vld [vmem:[%s1209_s3 + $0x40] sm:$0xff]  ;;  %v238_v0 = vld [vmem:[%s1209_s3 + $0x28] sm:$0xff] }
  0x14   :  { %453 = vmatpush.msrb.mxu0 %v262_v22  ;;  %336 = vmatpush.msra.mxu3 %v249_v41  ;;  %v265_v59 = vld [vmem:[%s1209_s3 + $0x100] sm:$0xff]  ;;  %v239_v60 = vld [vmem:[%s1209_s3 + $0x30] sm:$0xff]  ;;  %v236_v2 = vld [vmem:[%s1209_s3 + $0x18] sm:$0xff] }
  0x15   :  { %v237_v62 = vld [vmem:[%s1209_s3 + $0x20] sm:$0xff]  ;;  %v235_v1 = vld [vmem:[%s1209_s3 + $0x10] sm:$0xff]  ;;  %v328_v3 = vld [vmem:[%s1209_s3 + $0x2f8] sm:$0xff] }
  0x16   :  { %454 = vmatpush.msrb.mxu0 %v260_v25  ;;  %337 = vmatpush.msra.mxu3 %v247_v44  ;;  %v326_v4 = vld [vmem:[%s1209_s3 + $0x2e8] sm:$0xff]  ;;  %v324_v5 = vld [vmem:[%s1209_s3 + $0x2d8] sm:$0xff]  ;;  %v233_v6 = vld [vmem:[%s1209_s3] sm:$0xff] }
  0x17   :  { %v234_v7 = vld [vmem:[%s1209_s3 + $0x8] sm:$0xff]  ;;  %v292_v20 = vld [vmem:[%s1209_s3 + $0x1d8] sm:$0xff]  ;;  %v323_v23 = vld [vmem:[%s1209_s3 + $0x2d0] sm:$0xff] }
  0x18   :  { %455 = vmatpush.msrb.mxu0 %v258_v30  ;;  %338 = vmatpush.msra.mxu3 %v245_v47  ;;  %v322_v8 = vld [vmem:[%s1209_s3 + $0x2c8] sm:$0xff]  ;;  %v304_v22 = vld [vmem:[%s1209_s3 + $0x238] sm:$0xff]  ;;  %v321_v25 = vld [vmem:[%s1209_s3 + $0x2c0] sm:$0xff] }
  0x19   :  { %678 = vmatmul.msk.f32.gmra.mxu0 %vm31_vm0, %v20_v9  ;;  %v320_v9 = vld [vmem:[%s1209_s3 + $0x2b8] sm:$0xff]  ;;  %v294_v17 = vld [vmem:[%s1209_s3 + $0x1e8] sm:$0xff]  ;;  %v313_v34 = vld [vmem:[%s1209_s3 + $0x280] sm:$0xff] }
  0x1a   :  { %456 = vmatpush.msrb.mxu0 %v256_v33  ;;  %339 = vmatpush.msra.mxu3 %v243_v50  ;;  %v306_v19 = vld [vmem:[%s1209_s3 + $0x248] sm:$0xff]  ;;  %v300_v27 = vld [vmem:[%s1209_s3 + $0x218] sm:$0xff]  ;;  %v315_v33 = vld [vmem:[%s1209_s3 + $0x290] sm:$0xff] }
  0x1b   :  { %v288_v30 = vld [vmem:[%s1209_s3 + $0x1b8] sm:$0xff]  ;;  %v298_v31 = vld [vmem:[%s1209_s3 + $0x208] sm:$0xff]  ;;  %v307_v41 = vld [vmem:[%s1209_s3 + $0x250] sm:$0xff] }
  0x1c   :  { %457 = vmatpush.msrb.mxu0 %v254_v36  ;;  %340 = vmatpush.msra.mxu3 %v241_v57  ;;  %v278_v47 = vld [vmem:[%s1209_s3 + $0x168] sm:$0xff] }
  0x1d   :  { %v266_v63 = vld [vmem:[%s1209_s3 + $0x108] sm:$0xff] }
  0x1e   :  { %458 = vmatpush.msrb.mxu0 %v252_v39  ;;  %341 = vmatpush.msra.mxu3 %v239_v60  ;;  %v284_v39 = vld [vmem:[%s1209_s3 + $0x198] sm:$0xff] }
  0x1f   :  { %v272_v60 = vld [vmem:[%s1209_s3 + $0x138] sm:$0xff] }
  0x20   :  { %459 = vmatpush.msrb.mxu0 %v250_v43  ;;  %342 = vmatpush.msra.mxu3 %v237_v62  ;;  %v268_v62 = vld [vmem:[%s1209_s3 + $0x118] sm:$0xff] }
  0x21   :  { %679 = vmatmul.msk.f32.gmra.mxu0 %vm31_vm0, %v21_v10  ;;  %v318_v10 = vld [vmem:[%s1209_s3 + $0x2a8] sm:$0xff] }
  0x22   :  { %460 = vmatpush.msrb.mxu0 %v248_v46  ;;  %343 = vmatpush.msra.mxu3 %v235_v1  ;;  %v280_v46 = vld [vmem:[%s1209_s3 + $0x178] sm:$0xff] }
  0x24   :  { %461 = vmatpush.msrb.mxu0 %v246_v49  ;;  %344 = vmatpush.msra.mxu3 %v233_v6  ;;  %v301_v49 = vld [vmem:[%s1209_s3 + $0x220] sm:$0xff] }
  0x26   :  { %462 = vmatpush.msrb.mxu0 %v244_v52 }
  0x28   :  { %463 = vmatpush.msrb.mxu0 %v242_v58 }
  0x29   :  { %680 = vmatmul.msk.f32.gmra.mxu0 %vm31_vm0, %v22_v11  ;;  %v316_v11 = vld [vmem:[%s1209_s3 + $0x298] sm:$0xff] }
  0x2a   :  { %464 = vmatpush.msrb.mxu0 %v240_v61  ;;  %v270_v61 = vld [vmem:[%s1209_s3 + $0x128] sm:$0xff] }
  0x2c   :  { %465 = vmatpush.msrb.mxu0 %v238_v0 }
  0x2e   :  { %466 = vmatpush.msrb.mxu0 %v236_v2 }
  0x30   :  { %467 = vmatpush.msrb.mxu0 %v234_v7 }
  0x8e   :  { %v61_v12 = vpop.f32.mrf.mxu0 }
  0x96   :  { %v64_v13 = vpop.f32.mrf.mxu0 }
  0x97   :  { %104 = vmatpush.msra.mxu1 %v64_v13  ;;  %v296_v13 = vld [vmem:[%s1209_s3 + $0x1f8] sm:$0xff] }
  0x98   :  { %705 = vmatpush.msrb.mxu3 %v296_v13  ;;  %493 = vmatpush.msra.mxu0 %v296_v13 }
  0x99   :  { %105 = vmatpush.msra.mxu1 %v61_v12  ;;  %v314_v12 = vld [vmem:[%s1209_s3 + $0x288] sm:$0xff] }
  0x9a   :  { %681 = vmatmul.msk.f32.vlgmr.msra.gmra.mxu1 %vm77_vm1, %v73_v14  ;;  %706 = vmatpush.msrb.mxu3 %v294_v17 }
  0x9b   :  { %370 = vmatpush.msrb.mxu1 %v295_v18  ;;  %494 = vmatpush.msra.mxu0 %v294_v17 }
  0x9c   :  { %707 = vmatpush.msrb.mxu3 %v292_v20 }
  0x9d   :  { %371 = vmatpush.msrb.mxu1 %v293_v21  ;;  %495 = vmatpush.msra.mxu0 %v292_v20 }
  0x9e   :  { %v67_v15 = vpop.f32.mrf.mxu0 }
  0x9f   :  { %372 = vmatpush.msrb.mxu1 %v291_v24 }
  0xa1   :  { %373 = vmatpush.msrb.mxu1 %v289_v29 }
  0xa2   :  { %682 = vmatmul.msk.f32.gmra.mxu1 %vm77_vm1, %v74_v16 }
  0xa3   :  { %374 = vmatpush.msrb.mxu1 %v287_v32 }
  0xa5   :  { %375 = vmatpush.msrb.mxu1 %v285_v35 }
  0xa6   :  { %v70_v26 = vpop.f32.mrf.mxu0 }
  0xa7   :  { %137 = vmatpush.msra.mxu2 %v70_v26  ;;  %376 = vmatpush.msrb.mxu1 %v283_v38  ;;  %v290_v26 = vld [vmem:[%s1209_s3 + $0x1c8] sm:$0xff] }
  0xa8   :  { %708 = vmatpush.msrb.mxu3 %v290_v26  ;;  %496 = vmatpush.msra.mxu0 %v290_v26 }
  0xa9   :  { %138 = vmatpush.msra.mxu2 %v67_v15  ;;  %377 = vmatpush.msrb.mxu1 %v281_v42  ;;  %v310_v15 = vld [vmem:[%s1209_s3 + $0x268] sm:$0xff] }
  0xaa   :  { %683 = vmatmul.msk.f32.gmra.mxu1 %vm77_vm1, %v75_v28  ;;  %685 = vmatmul.msk.f32.vlgmr.msra.gmra.mxu2 %vm77_vm1, %v73_v14  ;;  %v312_v14 = vld [vmem:[%s1209_s3 + $0x278] sm:$0xff] }
  0xab   :  { %689 = vmatpush.msrb.mxu2 %v295_v18  ;;  %378 = vmatpush.msrb.mxu1 %v279_v45  ;;  %v327_v18 = vld [vmem:[%s1209_s3 + $0x2f0] sm:$0xff] }
  0xac   :  { %709 = vmatpush.msrb.mxu3 %v288_v30  ;;  %497 = vmatpush.msra.mxu0 %v288_v30 }
  0xad   :  { %690 = vmatpush.msrb.mxu2 %v293_v21  ;;  %379 = vmatpush.msrb.mxu1 %v277_v48  ;;  %v325_v21 = vld [vmem:[%s1209_s3 + $0x2e0] sm:$0xff] }
  0xaf   :  { %691 = vmatpush.msrb.mxu2 %v291_v24  ;;  %380 = vmatpush.msrb.mxu1 %v275_v51  ;;  %v302_v24 = vld [vmem:[%s1209_s3 + $0x228] sm:$0xff] }
  0xb1   :  { %692 = vmatpush.msrb.mxu2 %v289_v29  ;;  %381 = vmatpush.msrb.mxu1 %v273_v53  ;;  %v319_v29 = vld [vmem:[%s1209_s3 + $0x2b0] sm:$0xff] }
  0xb2   :  { %684 = vmatmul.msk.f32.gmra.mxu1 %vm77_vm1, %v76_v40  ;;  %686 = vmatmul.msk.f32.gmra.mxu2 %vm77_vm1, %v74_v16  ;;  %v308_v16 = vld [vmem:[%s1209_s3 + $0x258] sm:$0xff] }
  0xb3   :  { %693 = vmatpush.msrb.mxu2 %v287_v32  ;;  %382 = vmatpush.msrb.mxu1 %v271_v54  ;;  %v317_v32 = vld [vmem:[%s1209_s3 + $0x2a0] sm:$0xff] }
  0xb5   :  { %694 = vmatpush.msrb.mxu2 %v285_v35  ;;  %383 = vmatpush.msrb.mxu1 %v269_v55  ;;  %v286_v35 = vld [vmem:[%s1209_s3 + $0x1a8] sm:$0xff] }
  0xb6   :  { %710 = vmatpush.msrb.mxu3 %v286_v35  ;;  %498 = vmatpush.msra.mxu0 %v286_v35 }
  0xb7   :  { %695 = vmatpush.msrb.mxu2 %v283_v38  ;;  %384 = vmatpush.msrb.mxu1 %v267_v56  ;;  %v311_v38 = vld [vmem:[%s1209_s3 + $0x270] sm:$0xff] }
  0xb8   :  { %711 = vmatpush.msrb.mxu3 %v284_v39  ;;  %499 = vmatpush.msra.mxu0 %v284_v39 }
  0xb9   :  { %696 = vmatpush.msrb.mxu2 %v281_v42  ;;  %385 = vmatpush.msrb.mxu1 %v265_v59  ;;  %v282_v42 = vld [vmem:[%s1209_s3 + $0x188] sm:$0xff] }
  0xba   :  { %687 = vmatmul.msk.f32.gmra.mxu2 %vm77_vm1, %v75_v28  ;;  %712 = vmatpush.msrb.mxu3 %v282_v42 }
  0xbb   :  { %697 = vmatpush.msrb.mxu2 %v279_v45  ;;  %534 = vmatpush.msra.mxu1 %v328_v3  ;;  %v305_v45 = vld [vmem:[%s1209_s3 + $0x240] sm:$0xff] }
  0xbc   :  { %500 = vmatpush.msra.mxu0 %v282_v42  ;;  %713 = vmatpush.msrb.mxu3 %v280_v46 }
  0xbd   :  { %698 = vmatpush.msrb.mxu2 %v277_v48  ;;  %535 = vmatpush.msra.mxu1 %v326_v4  ;;  %v303_v48 = vld [vmem:[%s1209_s3 + $0x230] sm:$0xff] }
  0xbe   :  { %501 = vmatpush.msra.mxu0 %v280_v46  ;;  %714 = vmatpush.msrb.mxu3 %v278_v47 }
  0xbf   :  { %699 = vmatpush.msrb.mxu2 %v275_v51  ;;  %536 = vmatpush.msra.mxu1 %v324_v5  ;;  %v299_v51 = vld [vmem:[%s1209_s3 + $0x210] sm:$0xff] }
  0xc0   :  { %502 = vmatpush.msra.mxu0 %v278_v47 }
  0xc1   :  { %700 = vmatpush.msrb.mxu2 %v273_v53  ;;  %537 = vmatpush.msra.mxu1 %v322_v8 }
  0xc2   :  { %688 = vmatmul.msk.f32.gmra.mxu2 %vm77_vm1, %v76_v40  ;;  %v309_v40 = vld [vmem:[%s1209_s3 + $0x260] sm:$0xff] }
  0xc3   :  { %701 = vmatpush.msrb.mxu2 %v271_v54  ;;  %538 = vmatpush.msra.mxu1 %v320_v9  ;;  %v276_v54 = vld [vmem:[%s1209_s3 + $0x158] sm:$0xff] }
  0xc4   :  { %715 = vmatpush.msrb.mxu3 %v276_v54  ;;  %503 = vmatpush.msra.mxu0 %v276_v54 }
  0xc5   :  { %702 = vmatpush.msrb.mxu2 %v269_v55  ;;  %539 = vmatpush.msra.mxu1 %v318_v10  ;;  %v297_v55 = vld [vmem:[%s1209_s3 + $0x200] sm:$0xff] }
  0xc7   :  { %703 = vmatpush.msrb.mxu2 %v267_v56  ;;  %540 = vmatpush.msra.mxu1 %v316_v11  ;;  %v274_v56 = vld [vmem:[%s1209_s3 + $0x148] sm:$0xff] }
  0xc8   :  { %716 = vmatpush.msrb.mxu3 %v274_v56  ;;  %504 = vmatpush.msra.mxu0 %v274_v56 }
  0xc9   :  { %704 = vmatpush.msrb.mxu2 %v265_v59  ;;  %541 = vmatpush.msra.mxu1 %v314_v12 }
  0xca   :  { %505 = vmatpush.msra.mxu0 %v272_v60  ;;  %717 = vmatpush.msrb.mxu3 %v272_v60 }
  0xcb   :  { %542 = vmatpush.msra.mxu1 %v312_v14  ;;  %411 = vmatpush.msra.mxu2 %v327_v18 }
  0xcc   :  { %506 = vmatpush.msra.mxu0 %v270_v61  ;;  %718 = vmatpush.msrb.mxu3 %v270_v61 }
  0xcd   :  { %543 = vmatpush.msra.mxu1 %v310_v15  ;;  %412 = vmatpush.msra.mxu2 %v325_v21 }
  0xce   :  { %507 = vmatpush.msra.mxu0 %v268_v62  ;;  %719 = vmatpush.msrb.mxu3 %v268_v62 }
  0xcf   :  { %544 = vmatpush.msra.mxu1 %v308_v16  ;;  %413 = vmatpush.msra.mxu2 %v323_v23 }
  0xd0   :  { %508 = vmatpush.msra.mxu0 %v266_v63  ;;  %720 = vmatpush.msrb.mxu3 %v266_v63 }
  0xd1   :  { %545 = vmatpush.msra.mxu1 %v306_v19  ;;  %414 = vmatpush.msra.mxu2 %v321_v25 }
  0xd3   :  { %546 = vmatpush.msra.mxu1 %v304_v22  ;;  %415 = vmatpush.msra.mxu2 %v319_v29 }
  0xd5   :  { %547 = vmatpush.msra.mxu1 %v302_v24  ;;  %416 = vmatpush.msra.mxu2 %v317_v32 }
  0xd7   :  { %548 = vmatpush.msra.mxu1 %v300_v27  ;;  %417 = vmatpush.msra.mxu2 %v315_v33 }
  0xd9   :  { %549 = vmatpush.msra.mxu1 %v298_v31  ;;  %418 = vmatpush.msra.mxu2 %v313_v34 }
  0xdb   :  { %419 = vmatpush.msra.mxu2 %v311_v38 }
  0xdd   :  { %420 = vmatpush.msra.mxu2 %v309_v40 }
  0xdf   :  { %421 = vmatpush.msra.mxu2 %v307_v41 }
  0xe1   :  { %422 = vmatpush.msra.mxu2 %v305_v45 }
  0xe3   :  { %423 = vmatpush.msra.mxu2 %v303_v48 }
  0xe5   :  { %424 = vmatpush.msra.mxu2 %v301_v49 }
  0xe7   :  { %425 = vmatpush.msra.mxu2 %v299_v51 }
  0xe9   :  { %426 = vmatpush.msra.mxu2 %v297_v55 }
 0x117   :  { %v1022_v28 = vpop.f32.mrf.mxu1 }
 0x118   :  { %119 = vst [vmem:[#allocation2 + $0x1] sm:$0xff] %v1022_v28  ;;  %386 = vmatmul.f32.vlgmr.msrb.gmra.mxu1 %v1022_v28 }
 0x11f   :  { %v1047_v36 = vpop.f32.mrf.mxu1  ;;  %v161_v37 = vld [vmem:[#allocation2] sm:$0xff] }
 0x120   :  { %120 = vst [vmem:[#allocation2 + $0x9] sm:$0xff] %v1047_v36  ;;  %345 = vmatmul.f32.vlgmr.msra.gmra.mxu3 %v161_v37  ;;  %468 = vmatmul.f32.vlgmr.msrb.gmra.mxu0 %v161_v37 }
 0x121   :  { %389 = vmatmul.f32.gmra.mxu1 %v1047_v36 }
 0x127   :  { %v1066_v43 = vpop.f32.mrf.mxu1  ;;  %v162_v44 = vld [vmem:[#allocation2 + $0x8] sm:$0xff] }
 0x128   :  { %121 = vst [vmem:[#allocation2 + $0x11] sm:$0xff] %v1066_v43  ;;  %348 = vmatmul.f32.gmra.mxu3 %v162_v44  ;;  %471 = vmatmul.f32.gmra.mxu0 %v162_v44  ;;  %v193_v59 = vld [vmem:[#allocation2 + $0x2] sm:$0xff] }
 0x129   :  { %392 = vmatmul.f32.gmra.mxu1 %v1066_v43 }
 0x12d   :  { %v1085_v50 = vpop.f32.mrf.mxu2 }
 0x12e   :  { %153 = vst [vmem:[#allocation2 + $0x29] sm:$0xff] %v1085_v50  ;;  %398 = vmatmul.f32.vlgmr.msrb.gmra.mxu2 %v1085_v50 }
 0x12f   :  { %v1092_v52 = vpop.f32.mrf.mxu1  ;;  %v163_v53 = vld [vmem:[#allocation2 + $0x10] sm:$0xff] }
 0x130   :  { %122 = vst [vmem:[#allocation2 + $0x19] sm:$0xff] %v1092_v52  ;;  %351 = vmatmul.f32.gmra.mxu3 %v163_v53  ;;  %474 = vmatmul.f32.gmra.mxu0 %v163_v53  ;;  %v194_v2 = vld [vmem:[#allocation2 + $0xa] sm:$0xff] }
 0x131   :  { %395 = vmatmul.f32.gmra.mxu1 %v1092_v52 }
 0x135   :  { %v143_v57 = vpop.f32.mrf.mxu2  ;;  %v165_v1 = vld [vmem:[#allocation2 + $0x28] sm:$0xff] }
 0x136   :  { %154 = vst [vmem:[#allocation2 + $0x31] sm:$0xff] %v143_v57  ;;  %401 = vmatmul.f32.gmra.mxu2 %v143_v57 }
 0x137   :  { %v164_v58 = vld [vmem:[#allocation2 + $0x18] sm:$0xff] }
 0x138   :  { %354 = vmatmul.f32.gmra.mxu3 %v164_v58  ;;  %477 = vmatmul.f32.gmra.mxu0 %v164_v58  ;;  %v195_v5 = vld [vmem:[#allocation2 + $0x12] sm:$0xff]  ;;  %v196_v7 = vld [vmem:[#allocation2 + $0x1a] sm:$0xff] }
 0x139   :  { %550 = vmatmul.f32.vlgmr.msra.gmra.mxu1 %v193_v59 }
 0x13d   :  { %v146_v0 = vpop.f32.mrf.mxu2  ;;  %v166_v4 = vld [vmem:[#allocation2 + $0x30] sm:$0xff] }
 0x13e   :  { %155 = vst [vmem:[#allocation2 + $0x39] sm:$0xff] %v146_v0  ;;  %404 = vmatmul.f32.gmra.mxu2 %v146_v0  ;;  %v197_v9 = vld [vmem:[#allocation2 + $0x2a] sm:$0xff] }
 0x140   :  { %357 = vmatmul.f32.gmra.mxu3 %v165_v1  ;;  %480 = vmatmul.f32.gmra.mxu0 %v165_v1 }
 0x141   :  { %553 = vmatmul.f32.gmra.mxu1 %v194_v2 }
 0x145   :  { %v149_v3 = vpop.f32.mrf.mxu2  ;;  %v167_v6 = vld [vmem:[#allocation2 + $0x38] sm:$0xff] }
 0x146   :  { %156 = vst [vmem:[#allocation2 + $0x41] sm:$0xff] %v149_v3  ;;  %407 = vmatmul.f32.gmra.mxu2 %v149_v3  ;;  %v198_v10 = vld [vmem:[#allocation2 + $0x32] sm:$0xff] }
 0x148   :  { %360 = vmatmul.f32.gmra.mxu3 %v166_v4  ;;  %483 = vmatmul.f32.gmra.mxu0 %v166_v4 }
 0x149   :  { %556 = vmatmul.f32.gmra.mxu1 %v195_v5 }
 0x14d   :  { %v168_v8 = vld [vmem:[#allocation2 + $0x40] sm:$0xff] }
 0x14e   :  { %427 = vmatmul.f32.vlgmr.msra.gmra.mxu2 %v193_v59  ;;  %v199_v11 = vld [vmem:[#allocation2 + $0x3a] sm:$0xff]  ;;  %v200_v12 = vld [vmem:[#allocation2 + $0x42] sm:$0xff] }
 0x150   :  { %363 = vmatmul.f32.gmra.mxu3 %v167_v6  ;;  %486 = vmatmul.f32.gmra.mxu0 %v167_v6 }
 0x151   :  { %559 = vmatmul.f32.gmra.mxu1 %v196_v7 }
 0x156   :  { %430 = vmatmul.f32.gmra.mxu2 %v194_v2 }
 0x158   :  { %366 = vmatmul.f32.gmra.mxu3 %v168_v8  ;;  %489 = vmatmul.f32.gmra.mxu0 %v168_v8 }
 0x159   :  { %562 = vmatmul.f32.gmra.mxu1 %v197_v9 }
 0x15e   :  { %433 = vmatmul.f32.gmra.mxu2 %v195_v5 }
 0x160   :  { %509 = vmatmul.f32.vlgmr.msra.gmra.mxu0 %v1022_v28  ;;  %518 = vmatmul.f32.vlgmr.msrb.gmra.mxu3 %v1092_v52 }
 0x161   :  { %565 = vmatmul.f32.gmra.mxu1 %v198_v10 }
 0x166   :  { %436 = vmatmul.f32.gmra.mxu2 %v196_v7 }
 0x168   :  { %512 = vmatmul.f32.gmra.mxu0 %v1047_v36  ;;  %521 = vmatmul.f32.gmra.mxu3 %v1085_v50 }
 0x169   :  { %568 = vmatmul.f32.gmra.mxu1 %v199_v11 }
 0x16e   :  { %439 = vmatmul.f32.gmra.mxu2 %v197_v9 }
 0x170   :  { %515 = vmatmul.f32.gmra.mxu0 %v1066_v43  ;;  %524 = vmatmul.f32.gmra.mxu3 %v143_v57 }
 0x171   :  { %571 = vmatmul.f32.gmra.mxu1 %v200_v12 }
 0x176   :  { %442 = vmatmul.f32.gmra.mxu2 %v198_v10 }
 0x178   :  { %527 = vmatmul.f32.gmra.mxu3 %v146_v0 }
 0x17e   :  { %445 = vmatmul.f32.gmra.mxu2 %v199_v11 }
 0x180   :  { %530 = vmatmul.f32.gmra.mxu3 %v149_v3 }
 0x186   :  { %448 = vmatmul.f32.gmra.mxu2 %v200_v12 }
 0x195   :  { %v387_v13 = vpop.f32.mrf.mxu1 }
 0x19d   :  { %v469_v14 = vpop.f32.mrf.mxu0 }
 0x19e   :  { %v390_v15 = vpop.f32.mrf.mxu1 }
 0x1a3   :  { %v346_v16 = vpop.f32.mrf.mxu3 }
 0x1a4   :  { %v388_v36 = vadd.f32 %v387_v13, %v346_v16 }
 0x1a5   :  { %v472_v17 = vpop.f32.mrf.mxu0 }
 0x1a6   :  { %v393_v19 = vpop.f32.mrf.mxu1 }
 0x1ab   :  { %v349_v18 = vpop.f32.mrf.mxu3 }
 0x1ac   :  { %v391_v42 = vadd.f32 %v390_v15, %v349_v18 }
 0x1ad   :  { %v475_v20 = vpop.f32.mrf.mxu0 }
 0x1ae   :  { %v396_v23 = vpop.f32.mrf.mxu1 }
 0x1b1   :  { %v399_v21 = vpop.f32.mrf.mxu2 }
 0x1b3   :  { %v352_v22 = vpop.f32.mrf.mxu3 }
 0x1b4   :  { %v394_v49 = vadd.f32 %v393_v19, %v352_v22 }
 0x1b5   :  { %v478_v24 = vpop.f32.mrf.mxu0 }
 0x1b6   :  { %v551_v28 = vpop.f32.mrf.mxu1 }
 0x1b9   :  { %v1122_v25 = vpop.f32.mrf.mxu2 }
 0x1bb   :  { %v355_v26 = vpop.f32.mrf.mxu3 }
 0x1bc   :  { %v397_v59 = vadd.f32 %v396_v23, %v355_v26 }
 0x1bd   :  { %v481_v27 = vpop.f32.mrf.mxu0 }
 0x1be   :  { %v554_v32 = vpop.f32.mrf.mxu1 }
 0x1c1   :  { %v1124_v29 = vpop.f32.mrf.mxu2 }
 0x1c3   :  { %v358_v30 = vpop.f32.mrf.mxu3 }
 0x1c4   :  { %v400_v8 = vadd.f32 %v399_v21, %v358_v30 }
 0x1c5   :  { %v484_v31 = vpop.f32.mrf.mxu0 }
 0x1c6   :  { %v557_v39 = vpop.f32.mrf.mxu1 }
 0x1c9   :  { %v1126_v33 = vpop.f32.mrf.mxu2 }
 0x1cb   :  { %v361_v34 = vpop.f32.mrf.mxu3 }
 0x1cc   :  { %v403_v19 = vadd.f32 %v1122_v25, %v361_v34 }
 0x1cd   :  { %v1128_v35 = vpop.f32.mrf.mxu0 }
 0x1ce   :  { %v560_v46 = vpop.f32.mrf.mxu1 }
 0x1d1   :  { %v428_v37 = vpop.f32.mrf.mxu2 }
 0x1d2   :  { %v1130_v38 = vadd.f32 %v428_v37, %v388_v36 }
 0x1d3   :  { %v1132_v40 = vpop.f32.mrf.mxu3 }
 0x1d4   :  { %575 = vst [vmem:[%s1210_s4] sm:$0xff] %v1130_v38  ;;  %v406_v34 = vadd.f32 %v1124_v29, %v1132_v40 }
 0x1d5   :  { %v1138_v41 = vpop.f32.mrf.mxu0 }
 0x1d6   :  { %v563_v58 = vpop.f32.mrf.mxu1 }
 0x1d9   :  { %v431_v43 = vpop.f32.mrf.mxu2 }
 0x1da   :  { %v1140_v44 = vadd.f32 %v431_v43, %v391_v42 }
 0x1db   :  { %v1142_v45 = vpop.f32.mrf.mxu3 }
 0x1dc   :  { %577 = vst [vmem:[%s1210_s4 + $0x10] sm:$0xff] %v1140_v44  ;;  %v591_v36 = vadd.f32 %v1140_v44, %v1130_v38 }
 0x1dd   :  { %v510_v47 = vpop.f32.mrf.mxu0 }
 0x1de   :  { %v511_v48 = vadd.f32 %v510_v47, %v469_v14  ;;  %v566_v10 = vpop.f32.mrf.mxu1 }
 0x1e0   :  { %v552_v50 = vadd.f32 %v551_v28, %v511_v48  ;;  %v619_v28 = vmul.f32 %v1140_v44, %v1140_v44 }
 0x1e1   :  { %v434_v51 = vpop.f32.mrf.mxu2 }
 0x1e2   :  { %576 = vst [vmem:[%s1210_s4 + $0x8] sm:$0xff] %v552_v50  ;;  %v435_v52 = vadd.f32 %v434_v51, %v394_v49  ;;  %v618_v62 = vmul.f32 %v552_v50, %v552_v50 }
 0x1e3   :  { %v519_v53 = vpop.f32.mrf.mxu3 }
 0x1e4   :  { %v520_v54 = vadd.f32 %v519_v53, %v478_v24  ;;  %579 = vst [vmem:[%s1210_s4 + $0x20] sm:$0xff] %v435_v52 }
 0x1e5   :  { %v513_v55 = vpop.f32.mrf.mxu0 }
 0x1e6   :  { %v561_v56 = vadd.f32 %v560_v46, %v520_v54  ;;  %v514_v57 = vadd.f32 %v513_v55, %v472_v17  ;;  %v569_v22 = vpop.f32.mrf.mxu1  ;;  %v592_v46 = vadd.f32 %v591_v36, %v435_v52 }
 0x1e8   :  { %582 = vst [vmem:[%s1210_s4 + $0x38] sm:$0xff] %v561_v56  ;;  %v555_v60 = vadd.f32 %v554_v32, %v514_v57  ;;  %v624_v24 = vmul.f32 %v561_v56, %v561_v56  ;;  %v621_v32 = vmul.f32 %v435_v52, %v435_v52 }
 0x1e9   :  { %v437_v61 = vpop.f32.mrf.mxu2 }
 0x1ea   :  { %578 = vst [vmem:[%s1210_s4 + $0x18] sm:$0xff] %v555_v60  ;;  %v604_v63 = vadd.f32 %v555_v60, %v552_v50  ;;  %v620_v0 = vmul.f32 %v555_v60, %v555_v60  ;;  %v438_v1 = vadd.f32 %v437_v61, %v397_v59  ;;  %v409_v60 = vadd.f32 %v1126_v33, %v1142_v45 }
 0x1eb   :  { %v522_v2 = vpop.f32.mrf.mxu3 }
 0x1ec   :  { %v646_v3 = vadd.f32 %v620_v0, %v618_v62  ;;  %v523_v4 = vadd.f32 %v522_v2, %v481_v27  ;;  %581 = vst [vmem:[%s1210_s4 + $0x30] sm:$0xff] %v438_v1  ;;  %v623_v42 = vmul.f32 %v438_v1, %v438_v1  ;;  %v593_v29 = vadd.f32 %v592_v46, %v438_v1 }
 0x1ed   :  { %v516_v5 = vpop.f32.mrf.mxu0 }
 0x1ee   :  { %v564_v6 = vadd.f32 %v563_v58, %v523_v4  ;;  %v517_v7 = vadd.f32 %v516_v5, %v475_v20  ;;  %v572_v55 = vpop.f32.mrf.mxu1 }
 0x1f0   :  { %584 = vst [vmem:[%s1210_s4 + $0x48] sm:$0xff] %v564_v6  ;;  %v558_v9 = vadd.f32 %v557_v39, %v517_v7 }
 0x1f1   :  { %v440_v11 = vpop.f32.mrf.mxu2 }
 0x1f2   :  { %580 = vst [vmem:[%s1210_s4 + $0x28] sm:$0xff] %v558_v9  ;;  %v605_v12 = vadd.f32 %v604_v63, %v558_v9  ;;  %v622_v13 = vmul.f32 %v558_v9, %v558_v9  ;;  %v441_v14 = vadd.f32 %v440_v11, %v400_v8 }
 0x1f3   :  { %v525_v15 = vpop.f32.mrf.mxu3 }
 0x1f4   :  { %v647_v16 = vadd.f32 %v646_v3, %v622_v13  ;;  %v526_v17 = vadd.f32 %v525_v15, %v484_v31  ;;  %583 = vst [vmem:[%s1210_s4 + $0x40] sm:$0xff] %v441_v14  ;;  %v606_v26 = vadd.f32 %v605_v12, %v561_v56  ;;  %v617_v31 = vmul.f32 %v1130_v38, %v1130_v38 }
 0x1f5   :  { %v625_v51 = vmul.f32 %v441_v14, %v441_v14  ;;  %v594_v52 = vadd.f32 %v593_v29, %v441_v14 }
 0x1f6   :  { %v567_v18 = vadd.f32 %v566_v10, %v526_v17  ;;  %v648_v25 = vadd.f32 %v647_v16, %v624_v24  ;;  %v607_v37 = vadd.f32 %v606_v26, %v564_v6  ;;  %v633_v39 = vadd.f32 %v619_v28, %v617_v31 }
 0x1f8   :  { %586 = vst [vmem:[%s1210_s4 + $0x58] sm:$0xff] %v567_v18  ;;  %v628_v47 = vmul.f32 %v567_v18, %v567_v18  ;;  %v634_v50 = vadd.f32 %v633_v39, %v621_v32  ;;  %v608_v40 = vadd.f32 %v607_v37, %v567_v18 }
 0x1f9   :  { %v443_v20 = vpop.f32.mrf.mxu2 }
 0x1fa   :  { %v444_v21 = vadd.f32 %v443_v20, %v403_v19  ;;  %v635_v44 = vadd.f32 %v634_v50, %v623_v42 }
 0x1fb   :  { %v528_v23 = vpop.f32.mrf.mxu3 }
 0x1fc   :  { %v529_v27 = vadd.f32 %v528_v23, %v1128_v35  ;;  %585 = vst [vmem:[%s1210_s4 + $0x50] sm:$0xff] %v444_v21  ;;  %v626_v35 = vmul.f32 %v564_v6, %v564_v6  ;;  %v627_v56 = vmul.f32 %v444_v21, %v444_v21  ;;  %v636_v61 = vadd.f32 %v635_v44, %v625_v51 }
 0x1fd   :  { %v595_v0 = vadd.f32 %v594_v52, %v444_v21 }
 0x1fe   :  { %v570_v30 = vadd.f32 %v569_v22, %v529_v27  ;;  %v649_v48 = vadd.f32 %v648_v25, %v626_v35  ;;  %v637_v2 = vadd.f32 %v636_v61, %v627_v56 }
 0x200   :  { %588 = vst [vmem:[%s1210_s4 + $0x68] sm:$0xff] %v570_v30  ;;  %v630_v54 = vmul.f32 %v570_v30, %v570_v30  ;;  %v650_v57 = vadd.f32 %v649_v48, %v628_v47  ;;  %v609_v58 = vadd.f32 %v608_v40, %v570_v30 }
 0x201   :  { %v446_v43 = vpop.f32.mrf.mxu2 }
 0x202   :  { %v447_v49 = vadd.f32 %v446_v43, %v406_v34  ;;  %v651_v63 = vadd.f32 %v650_v57, %v630_v54 }
 0x203   :  { %v531_v53 = vpop.f32.mrf.mxu3 }
 0x204   :  { %v532_v38 = vadd.f32 %v531_v53, %v1138_v41  ;;  %587 = vst [vmem:[%s1210_s4 + $0x60] sm:$0xff] %v447_v49  ;;  %v629_v62 = vmul.f32 %v447_v49, %v447_v49  ;;  %v596_v6 = vadd.f32 %v595_v0, %v447_v49 }
 0x206   :  { %v573_v59 = vadd.f32 %v572_v55, %v532_v38  ;;  %v638_v8 = vadd.f32 %v637_v2, %v629_v62 }
 0x208   :  { %590 = vst [vmem:[%s1210_s4 + $0x78] sm:$0xff] %v573_v59  ;;  %v610_v41 = vadd.f32 %v609_v58, %v573_v59  ;;  %v632_v1 = vmul.f32 %v573_v59, %v573_v59 }
 0x209   :  { %v449_v3 = vpop.f32.mrf.mxu2 }
 0x20a   :  { %v611_v4 = vrot.slane %v610_v41, 4  ;;  %v652_v5 = vadd.f32 %v651_v63, %v632_v1  ;;  %v450_v7 = vadd.f32 %v449_v3, %v409_v60 }
 0x20c   :  { %v612_v9 = vadd.f32 %v611_v4, %v610_v41  ;;  %v653_v10 = vrot.slane %v652_v5, 4  ;;  %589 = vst [vmem:[%s1210_s4 + $0x70] sm:$0xff] %v450_v7  ;;  %v597_v33 = vadd.f32 %v596_v6, %v450_v7  ;;  %v631_v45 = vmul.f32 %v450_v7, %v450_v7 }
 0x20e   :  { %v613_v11 = vrot.slane %v612_v9, 2  ;;  %v654_v12 = vadd.f32 %v653_v10, %v652_v5  ;;  %v598_v13 = vrot.slane %v597_v33, 4  ;;  %v639_v14 = vadd.f32 %v638_v8, %v631_v45 }
 0x210   :  { %v614_v15 = vadd.f32 %v613_v11, %v612_v9  ;;  %v655_v16 = vrot.slane %v654_v12, 2  ;;  %v599_v17 = vadd.f32 %v598_v13, %v597_v33  ;;  %v640_v18 = vrot.slane %v639_v14, 4 }
 0x212   :  { %v615_v19 = vrot.slane %v614_v15, 1  ;;  %v656_v20 = vadd.f32 %v655_v16, %v654_v12  ;;  %v600_v21 = vrot.slane %v599_v17, 2  ;;  %v641_v22 = vadd.f32 %v640_v18, %v639_v14 }
 0x214   :  { %v657_v23 = vrot.slane %v656_v20, 1  ;;  %v601_v24 = vadd.f32 %v600_v21, %v599_v17  ;;  %v642_v26 = vrot.slane %v641_v22, 2  ;;  %v616_v27 = vadd.f32 %v615_v19, %v614_v15 }
 0x216   :  { %v658_v28 = vadd.f32 %v657_v23, %v656_v20  ;;  %v602_v25 = vrot.slane %v601_v24, 1  ;;  %v643_v30 = vadd.f32 %v642_v26, %v641_v22 }
 0x218   :  { %v661_v31 = vsel %vm659_vm2, %v616_v27, %v658_v28  ;;  %v644_v32 = vrot.slane %v643_v30, 1  ;;  %v603_v34 = vadd.f32 %v602_v25, %v601_v24 }
 0x219   :  { %v664_v35 = vrot.slane %v661_v31, 6 }
 0x21a   :  { %v645_v36 = vadd.f32 %v644_v32, %v643_v30 }
 0x21c   :  { %v660_v37 = vsel %vm659_vm2, %v603_v34, %v645_v36 }
 0x21d   :  { %v666_v39 = vsel %vm665_vm3, %v660_v37, %v664_v35 }
 0x21e   :  { %668 = vst [vmem:[%s1211_s5] sm:$0xf] %v666_v39 }

// kernel: squeeze.16
= control target key start
LH: loop header
LB: loop body
LE: loop exit
PB: predicated region body
PF: predicated region fallthrough
CT: control target
= control target key end

     0   :  { %s130_s8 = smov 120   ;;  %s131_s9 = smov 88   ;;  %vm7_vm0 = vcmask 64512   ;;  %s221_s0 = inlined_call_operand.vmem [shape: f32[256], index: 0, kind: input, shape index: {}]   ;;  %s222_s1 = inlined_call_operand.vmem [shape: f32[32,8], index: 1, kind: output, shape index: {}]  }
   0x1   :  { %v4_v0 = vld [vmem:[%s221_s0] sm:$0x3]  ;;  %s129_s0 = smov 104   ;;  %s132_s10 = smov 96  }
   0x2   :  { %5 = vst [vmem:[#allocation0] sm:$0x3] %v4_v0  ;;  %s133_s11 = smov 112   ;;  %s134_s12 = smov 80  }
   0x3   :  { %s135_s13 = smov 64   ;;  %s136_s14 = smov 72  }
   0x4   :  { %s137_s15 = smov 56   ;;  %s138_s16 = smov 40  }
   0x5   :  { %s139_s17 = smov 48   ;;  %s140_s18 = smov 32  }
   0x6   :  { %s141_s19 = smov 16   ;;  %s142_s20 = smov 24  }
   0x7   :  { %s143_s21 = smov 8  }
   0x9   :  { %v21_v1 = vld [vmem:[#allocation0] sm:$0x3]  }
   0xa   :  { %v9_v2 = vld [vmem:[#allocation0] sm:$0x3]   ;;  %22 = vrot.lane.b32.xlu1 %v21_v1, %s129_s0 }
   0xb   :  { %10 = vrot.lane.b32.xlu0 %v9_v2, %s130_s8  ;;  %v33_v3 = vld [vmem:[#allocation0] sm:$0x3]  }
   0xc   :  { %34 = vrot.lane.b32.xlu2 %v33_v3, %s131_s9  ;;  %v27_v4 = vld [vmem:[#allocation0] sm:$0x3]  }
   0xd   :  { %v15_v5 = vld [vmem:[#allocation0] sm:$0x3]  }
   0xe   :  { %v39_v6 = vld [vmem:[#allocation0] sm:$0x3]  }
   0xf   :  { %v51_v7 = vld [vmem:[#allocation0] sm:$0x3]  }
  0x10   :  { %v45_v8 = vld [vmem:[#allocation0] sm:$0x3]  }
  0x11   :  { %v57_v9 = vld [vmem:[#allocation0] sm:$0x3]  }
  0x12   :  { %28 = vrot.lane.b32.xlu1 %v27_v4, %s132_s10  ;;  %v69_v10 = vld [vmem:[#allocation0] sm:$0x3]  }
  0x13   :  { %16 = vrot.lane.b32.xlu0 %v15_v5, %s133_s11  ;;  %v63_v11 = vld [vmem:[#allocation0] sm:$0x3]  }
  0x14   :  { %40 = vrot.lane.b32.xlu2 %v39_v6, %s134_s12  ;;  %v75_v12 = vld [vmem:[#allocation0] sm:$0x3]  }
  0x15   :  { %v87_v13 = vld [vmem:[#allocation0] sm:$0x3]  }
  0x16   :  { %v81_v14 = vld [vmem:[#allocation0] sm:$0x3]  }
  0x17   :  { %v93_v15 = vld [vmem:[#allocation0] sm:$0x3]  }
  0x18   :  { %v6_v21 = vld [vmem:[#allocation0] sm:$0x3]  }
  0x19   :  { %8 = vst.msk [vmem:[%s222_s1] ss:$16 sm:$0x3] %vm7_vm0, %v6_v21  }
  0x1a   :  { %52 = vrot.lane.b32.xlu1 %v51_v7, %s135_s13 }
  0x1b   :  { %46 = vrot.lane.b32.xlu0 %v45_v8, %s136_s14 }
  0x1c   :  { %58 = vrot.lane.b32.xlu2 %v57_v9, %s137_s15 }
  0x22   :  { %70 = vrot.lane.b32.xlu1 %v69_v10, %s138_s16 }
  0x23   :  { %64 = vrot.lane.b32.xlu0 %v63_v11, %s139_s17 }
  0x24   :  { %76 = vrot.lane.b32.xlu2 %v75_v12, %s140_s18 }
  0x2a   :  { %88 = vrot.lane.b32.xlu1 %v87_v13, %s141_s19 }
  0x2b   :  { %82 = vrot.lane.b32.xlu0 %v81_v14, %s142_s20 }
  0x2c   :  { %94 = vrot.lane.b32.xlu2 %v93_v15, %s143_s21 }
  0x66   :  { %v35_v16 = vpop.permute.xlu2 %34  }
  0x67   :  { %103 = vst.msk [vmem:[%s222_s1 + $0x5] ss:$16 sm:$0x3] %vm7_vm0, %v35_v16  }
  0x6e   :  { %v41_v17 = vpop.permute.xlu2 %40  }
  0x6f   :  { %104 = vst.msk [vmem:[%s222_s1 + $0x6] ss:$16 sm:$0x3] %vm7_vm0, %v41_v17  }
  0x76   :  { %v59_v18 = vpop.permute.xlu2 %58  }
  0x77   :  { %107 = vst.msk [vmem:[%s222_s1 + $0x9] ss:$16 sm:$0x3] %vm7_vm0, %v59_v18  }
  0x7c   :  { %v23_v19 = vpop.permute.xlu1 %22  }
  0x7d   :  { %v11_v20 = vpop.permute.xlu0 %10   ;;  %101 = vst.msk [vmem:[%s222_s1 + $0x3] ss:$16 sm:$0x3] %vm7_vm0, %v23_v19  }
  0x7e   :  { %99 = vst.msk [vmem:[%s222_s1 + $0x1] ss:$16 sm:$0x3] %vm7_vm0, %v11_v20   ;;  %v77_v22 = vpop.permute.xlu2 %76  }
  0x7f   :  { %110 = vst.msk [vmem:[%s222_s1 + $0xc] ss:$16 sm:$0x3] %vm7_vm0, %v77_v22  }
  0x84   :  { %v29_v23 = vpop.permute.xlu1 %28  }
  0x85   :  { %v17_v24 = vpop.permute.xlu0 %16   ;;  %102 = vst.msk [vmem:[%s222_s1 + $0x4] ss:$16 sm:$0x3] %vm7_vm0, %v29_v23  }
  0x86   :  { %100 = vst.msk [vmem:[%s222_s1 + $0x2] ss:$16 sm:$0x3] %vm7_vm0, %v17_v24   ;;  %v95_v25 = vpop.permute.xlu2 %94  }
  0x87   :  { %113 = vst.msk [vmem:[%s222_s1 + $0xf] ss:$16 sm:$0x3] %vm7_vm0, %v95_v25  }
  0x8c   :  { %v53_v26 = vpop.permute.xlu1 %52  }
  0x8d   :  { %v47_v27 = vpop.permute.xlu0 %46   ;;  %106 = vst.msk [vmem:[%s222_s1 + $0x8] ss:$16 sm:$0x3] %vm7_vm0, %v53_v26  }
  0x8e   :  { %105 = vst.msk [vmem:[%s222_s1 + $0x7] ss:$16 sm:$0x3] %vm7_vm0, %v47_v27  }
  0x94   :  { %v71_v28 = vpop.permute.xlu1 %70  }
  0x95   :  { %v65_v29 = vpop.permute.xlu0 %64   ;;  %109 = vst.msk [vmem:[%s222_s1 + $0xb] ss:$16 sm:$0x3] %vm7_vm0, %v71_v28  }
  0x96   :  { %108 = vst.msk [vmem:[%s222_s1 + $0xa] ss:$16 sm:$0x3] %vm7_vm0, %v65_v29  }
  0x9c   :  { %v89_v30 = vpop.permute.xlu1 %88  }
  0x9d   :  { %v83_v31 = vpop.permute.xlu0 %82   ;;  %112 = vst.msk [vmem:[%s222_s1 + $0xe] ss:$16 sm:$0x3] %vm7_vm0, %v89_v30  }
  0x9e   :  { %111 = vst.msk [vmem:[%s222_s1 + $0xd] ss:$16 sm:$0x3] %vm7_vm0, %v83_v31  }

// kernel: tile.28
= control target key start
LH: loop header
LB: loop body
LE: loop exit
PB: predicated region body
PF: predicated region fallthrough
CT: control target
= control target key end

     0   :  { %s40_s0 = inlined_call_operand.vmem [shape: f32[8], index: 0, kind: input, shape index: {}]   ;;  %s41_s1 = inlined_call_operand.vmem [shape: f32[32,8], index: 1, kind: output, shape index: {}]  }
   0x1   :  { %v4_v0 = vld [vmem:[%s40_s0] ss:$0 sm:$0xff] }
   0x2   :  { %5 = vst [vmem:[%s41_s1] sm:$0xff] %v4_v0 }
   0x3   :  { %12 = vst [vmem:[%s41_s1 + $0x8] sm:$0xff] %v4_v0 }
   0x4   :  { %13 = vst [vmem:[%s41_s1 + $0x10] sm:$0xff] %v4_v0 }
   0x5   :  { %14 = vst [vmem:[%s41_s1 + $0x18] sm:$0xff] %v4_v0 }

// kernel: tile.29
= control target key start
LH: loop header
LB: loop body
LE: loop exit
PB: predicated region body
PF: predicated region fallthrough
CT: control target
= control target key end

     0   :  { %s7_s6 = smov 3  ;;  %s21_s9 = smov 3  ;;  %vm4_vm0 = vcmask 64512   ;;  %vm11_vm1 = vcmask 1048512   ;;  %vm18_vm2 = vcmask 982912   ;;  %vm25_vm3 = vcmask 917312   ;;  %s233_s0 = inlined_call_operand.vmem [shape: f32[32,8], index: 0, kind: input, shape index: {}]   ;;  %s234_s1 = inlined_call_operand.vmem [shape: f32[1,256], index: 1, kind: output, shape index: {}]  }
   0x1   :  { %v123_v0 = vld [vmem:[%s233_s0 + $0xf] ss:$16 sm:%s7_s6]   ;;  %s154_s10 = smov 120   ;;  %v125_v1 = vld [vmem:[%s233_s0 + $0xd] ss:$16 sm:%s21_s9]   ;;  %s155_s13 = smov 104  }
   0x2   :  { %9 = vrot.lane.b32.xlu0 %v123_v0, %s154_s10  ;;  %23 = vrot.lane.b32.xlu1 %v125_v1, %s155_s13  ;;  %s14_s14 = smov 3  ;;  %s28_s15 = smov 3  ;;  %vm32_vm4 = vcmask 851712   ;;  %vm39_vm5 = vcmask 786112   ;;  %vm46_vm6 = vcmask 720512   ;;  %vm53_vm7 = vcmask 654912  }
   0x3   :  { %v124_v2 = vld [vmem:[%s233_s0 + $0xe] ss:$16 sm:%s14_s14]   ;;  %v126_v3 = vld [vmem:[%s233_s0 + $0xc] ss:$16 sm:%s28_s15]   ;;  %s35_s20 = smov 3  ;;  %s156_s23 = smov 112  }
   0x4   :  { %v127_v4 = vld [vmem:[%s233_s0 + $0xb] ss:$16 sm:%s35_s20]   ;;  %s157_s24 = smov 88   ;;  %s158_s25 = smov 96   ;;  %vm60_vm8 = vcmask 589312   ;;  %vm67_vm9 = vcmask 523712  }
   0x5   :  { %37 = vrot.lane.b32.xlu2 %v127_v4, %s157_s24  ;;  %s49_s26 = smov 3  ;;  %s42_s27 = smov 3  ;;  %vm74_vm10 = vcmask 458112   ;;  %vm81_vm11 = vcmask 392512   ;;  %vm88_vm12 = vcmask 326912   ;;  %vm95_vm13 = vcmask 261312  }
   0x6   :  { %s56_s28 = smov 3  ;;  %v129_v5 = vld [vmem:[%s233_s0 + $0x9] ss:$16 sm:%s49_s26]   ;;  %v128_v6 = vld [vmem:[%s233_s0 + $0xa] ss:$16 sm:%s42_s27]   ;;  %s159_s6 = smov 72  }
   0x7   :  { %v130_v7 = vld [vmem:[%s233_s0 + $0x8] ss:$16 sm:%s56_s28]   ;;  %s160_s7 = smov 80   ;;  %s161_s8 = smov 64   ;;  %vm102_vm14 = vcmask 195712   ;;  %vm109_vm15 = vcmask 130112  }
   0x8   :  { %s70_s9 = smov 3  ;;  %s63_s10 = smov 3 }
   0x9   :  { %s77_s11 = smov 3  ;;  %v132_v8 = vld [vmem:[%s233_s0 + $0x6] ss:$16 sm:%s70_s9]   ;;  %v131_v9 = vld [vmem:[%s233_s0 + $0x7] ss:$16 sm:%s63_s10]   ;;  %s162_s18 = smov 48  }
   0xa   :  { %16 = vrot.lane.b32.xlu0 %v124_v2, %s156_s23  ;;  %30 = vrot.lane.b32.xlu1 %v126_v3, %s158_s25  ;;  %v133_v10 = vld [vmem:[%s233_s0 + $0x5] ss:$16 sm:%s77_s11]   ;;  %s163_s19 = smov 56   ;;  %s164_s20 = smov 40  }
   0xb   :  { %s91_s21 = smov 3  ;;  %s84_s22 = smov 3 }
   0xc   :  { %s98_s23 = smov 3  ;;  %v135_v11 = vld [vmem:[%s233_s0 + $0x3] ss:$16 sm:%s91_s21]   ;;  %v134_v12 = vld [vmem:[%s233_s0 + $0x4] ss:$16 sm:%s84_s22]   ;;  %s165_s30 = smov 24  }
   0xd   :  { %44 = vrot.lane.b32.xlu2 %v128_v6, %s160_s7  ;;  %v136_v13 = vld [vmem:[%s233_s0 + $0x2] ss:$16 sm:%s98_s23]   ;;  %s166_s2 = smov 32   ;;  %s167_s3 = smov 16  }
   0xe   :  { %s105_s4 = smov 3  ;;  %s168_s7 = smov 8  }
   0xf   :  { %v137_v14 = vld [vmem:[%s233_s0 + $0x1] ss:$16 sm:%s105_s4]  }
  0x12   :  { %51 = vrot.lane.b32.xlu0 %v129_v5, %s159_s6  ;;  %58 = vrot.lane.b32.xlu1 %v130_v7, %s161_s8  ;;  %s2_s8 = smov 3 }
  0x13   :  { %v3_v15 = vld [vmem:[%s233_s0] ss:$16 sm:%s2_s8]  }
  0x14   :  { %5 = vst.msk [vmem:[#allocation0] ss:$8 sm:$0x3] %vm4_vm0, %v3_v15  }
  0x15   :  { %65 = vrot.lane.b32.xlu2 %v131_v9, %s163_s19 }
  0x1a   :  { %72 = vrot.lane.b32.xlu0 %v132_v8, %s162_s18  ;;  %79 = vrot.lane.b32.xlu1 %v133_v10, %s164_s20 }
  0x1d   :  { %86 = vrot.lane.b32.xlu2 %v134_v12, %s166_s2 }
  0x22   :  { %93 = vrot.lane.b32.xlu0 %v135_v11, %s165_s30  ;;  %100 = vrot.lane.b32.xlu1 %v136_v13, %s167_s3 }
  0x25   :  { %107 = vrot.lane.b32.xlu2 %v137_v14, %s168_s7 }
  0x5f   :  { %v38_v16 = vpop.permute.xlu2 %37  }
  0x67   :  { %v45_v17 = vpop.permute.xlu2 %44  }
  0x6f   :  { %v66_v19 = vpop.permute.xlu2 %65  }
  0x74   :  { %v10_v18 = vpop.permute.xlu0 %9   ;;  %v24_v20 = vpop.permute.xlu1 %23  }
  0x75   :  { %12 = vst.msk [vmem:[#allocation0] ss:$8 sm:$0x3] %vm11_vm1, %v10_v18  }
  0x77   :  { %v87_v22 = vpop.permute.xlu2 %86  }
  0x7c   :  { %v17_v21 = vpop.permute.xlu0 %16   ;;  %v31_v23 = vpop.permute.xlu1 %30  }
  0x7d   :  { %19 = vst.msk [vmem:[#allocation0] ss:$8 sm:$0x3] %vm18_vm2, %v17_v21  }
  0x7e   :  { %26 = vst.msk [vmem:[#allocation0] ss:$8 sm:$0x3] %vm25_vm3, %v24_v20  }
  0x7f   :  { %33 = vst.msk [vmem:[#allocation0] ss:$8 sm:$0x3] %vm32_vm4, %v31_v23   ;;  %v108_v25 = vpop.permute.xlu2 %107  }
  0x80   :  { %40 = vst.msk [vmem:[#allocation0] ss:$8 sm:$0x3] %vm39_vm5, %v38_v16  }
  0x81   :  { %47 = vst.msk [vmem:[#allocation0] ss:$8 sm:$0x3] %vm46_vm6, %v45_v17  }
  0x84   :  { %v52_v24 = vpop.permute.xlu0 %51   ;;  %v59_v26 = vpop.permute.xlu1 %58  }
  0x85   :  { %54 = vst.msk [vmem:[#allocation0] ss:$8 sm:$0x3] %vm53_vm7, %v52_v24  }
  0x86   :  { %61 = vst.msk [vmem:[#allocation0] ss:$8 sm:$0x3] %vm60_vm8, %v59_v26  }
  0x87   :  { %68 = vst.msk [vmem:[#allocation0] ss:$8 sm:$0x3] %vm67_vm9, %v66_v19  }
  0x8c   :  { %v73_v27 = vpop.permute.xlu0 %72   ;;  %v80_v28 = vpop.permute.xlu1 %79  }
  0x8d   :  { %75 = vst.msk [vmem:[#allocation0] ss:$8 sm:$0x3] %vm74_vm10, %v73_v27  }
  0x8e   :  { %82 = vst.msk [vmem:[#allocation0] ss:$8 sm:$0x3] %vm81_vm11, %v80_v28  }
  0x8f   :  { %89 = vst.msk [vmem:[#allocation0] ss:$8 sm:$0x3] %vm88_vm12, %v87_v22  }
  0x94   :  { %v94_v29 = vpop.permute.xlu0 %93   ;;  %v101_v30 = vpop.permute.xlu1 %100  }
  0x95   :  { %96 = vst.msk [vmem:[#allocation0] ss:$8 sm:$0x3] %vm95_vm13, %v94_v29  }
  0x96   :  { %103 = vst.msk [vmem:[#allocation0] ss:$8 sm:$0x3] %vm102_vm14, %v101_v30  }
  0x97   :  { %110 = vst.msk [vmem:[#allocation0] ss:$8 sm:$0x3] %vm109_vm15, %v108_v25  }
  0x9e   :  { %v113_v31 = vld [vmem:[#allocation0] sm:$0x1]  ;;  %v118_v32 = vld [vmem:[#allocation0 + $0x8] sm:$0x1] }
  0x9f   :  { %116 = vst [vmem:[%s234_s1] sm:$0x1] %v113_v31 }
  0xa0   :  { %138 = vst [vmem:[%s234_s1 + $0x1] sm:$0x1] %v118_v32 }

// kernel: skip_up_forward.4
= control target key start
LH: loop header
LB: loop body
LE: loop exit
PB: predicated region body
PF: predicated region fallthrough
CT: control target
= control target key end

     0   :  { %v180_v3 = vlaneseq  ;;  %v1279_v13 = vmov 0.0   ;;  %vm111_vm1 = vcmask 1040384   ;;  %vm267_vm2 = vcmask 1046528   ;;  %s2438_s3 = inlined_call_operand.vmem [shape: f32[768,256], index: 3, kind: input, shape index: {}]   ;;  %s2439_s0 = inlined_call_operand.vmem [shape: f32[2,32,256], index: 0, kind: input, shape index: {}]   ;;  %s2440_s1 = inlined_call_operand.vmem [shape: f32[1,256], index: 1, kind: input, shape index: {}]   ;;  %s2441_s2 = inlined_call_operand.vmem [shape: f32[1,256], index: 2, kind: input, shape index: {}]   ;;  %s2442_s4 = inlined_call_operand.vmem [shape: f32[2,32,256], index: 4, kind: output, shape index: {0}]   ;;  %s2443_s5 = inlined_call_operand.vmem [shape: f32[1,2,256], index: 5, kind: output, shape index: {1}]  }
   0x1   :  { %v523_v0 = vld [vmem:[%s2438_s3 + $0xf0] sm:$0xff]  ;;  %v521_v4 = vld [vmem:[%s2438_s3 + $0xe0] sm:$0xff]  ;;  %v20_v61 = vld [vmem:[%s2439_s0 + $0x8] sm:$0xff]  ;;  %vm376_vm3 = vcmask 1045504   ;;  %vm1266_vm4 = vcmask 1041408  }
   0x2   :  { %v587_v1 = vld [vmem:[%s2438_s3 + $0x2f0] sm:$0xff]  ;;  %685 = vmatpush.msra.mxu0 %v523_v0  ;;  %v585_v6 = vld [vmem:[%s2438_s3 + $0x2e0] sm:$0xff]  ;;  %vm1337_vm0 = vcmp.lt.s32.totalorder %v180_v3, 256  ;;  %v22_v0 = vld [vmem:[%s2439_s0 + $0x18] sm:$0xff] }
   0x3   :  { %v619_v2 = vld [vmem:[%s2438_s3 + $0x3f0] sm:$0xff]  ;;  %767 = vmatpush.msra.mxu2 %v587_v1  ;;  %v617_v7 = vld [vmem:[%s2438_s3 + $0x3e0] sm:$0xff]  ;;  %184 = vst.msk [vmem:[#allocation2] ss:$8 sm:$0x3] %vm1337_vm0, %v1279_v13 }
   0x4   :  { %v555_v5 = vld [vmem:[%s2438_s3 + $0x1f0] sm:$0xff]  ;;  %808 = vmatpush.msra.mxu3 %v619_v2  ;;  %v553_v9 = vld [vmem:[%s2438_s3 + $0x1e0] sm:$0xff]  ;;  %686 = vmatpush.msra.mxu0 %v521_v4  ;;  %187 = vst.msk [vmem:[#allocation2 + $0x50] ss:$8 sm:$0x3] %vm1337_vm0, %v1279_v13 }
   0x5   :  { %726 = vmatpush.msra.mxu1 %v555_v5  ;;  %v519_v8 = vld [vmem:[%s2438_s3 + $0xd0] sm:$0xff]  ;;  %768 = vmatpush.msra.mxu2 %v585_v6  ;;  %v517_v14 = vld [vmem:[%s2438_s3 + $0xc0] sm:$0xff]  ;;  %190 = vst.msk [vmem:[#allocation2 + $0x41] ss:$8 sm:$0x3] %vm1337_vm0, %v1279_v13 }
   0x6   :  { %v583_v11 = vld [vmem:[%s2438_s3 + $0x2d0] sm:$0xff]  ;;  %809 = vmatpush.msra.mxu3 %v617_v7  ;;  %v581_v16 = vld [vmem:[%s2438_s3 + $0x2c0] sm:$0xff]  ;;  %687 = vmatpush.msra.mxu0 %v519_v8  ;;  %193 = vst.msk [vmem:[#allocation2 + $0x91] ss:$8 sm:$0x3] %vm1337_vm0, %v1279_v13 }
   0x7   :  { %v615_v12 = vld [vmem:[%s2438_s3 + $0x3d0] sm:$0xff]  ;;  %727 = vmatpush.msra.mxu1 %v553_v9  ;;  %769 = vmatpush.msra.mxu2 %v583_v11  ;;  %v613_v17 = vld [vmem:[%s2438_s3 + $0x3c0] sm:$0xff] }
   0x8   :  { %v551_v15 = vld [vmem:[%s2438_s3 + $0x1d0] sm:$0xff]  ;;  %v549_v18 = vld [vmem:[%s2438_s3 + $0x1c0] sm:$0xff]  ;;  %810 = vmatpush.msra.mxu3 %v615_v12  ;;  %688 = vmatpush.msra.mxu0 %v517_v14 }
   0x9   :  { %728 = vmatpush.msra.mxu1 %v551_v15  ;;  %v515_v19 = vld [vmem:[%s2438_s3 + $0xb0] sm:$0xff]  ;;  %770 = vmatpush.msra.mxu2 %v581_v16  ;;  %v513_v23 = vld [vmem:[%s2438_s3 + $0xa0] sm:$0xff]  ;;  %v24_v15 = vld [vmem:[%s2439_s0 + $0x28] sm:$0xff] }
   0xa   :  { %v579_v20 = vld [vmem:[%s2438_s3 + $0x2b0] sm:$0xff]  ;;  %811 = vmatpush.msra.mxu3 %v613_v17  ;;  %v577_v24 = vld [vmem:[%s2438_s3 + $0x2a0] sm:$0xff]  ;;  %689 = vmatpush.msra.mxu0 %v515_v19 }
   0xb   :  { %v611_v21 = vld [vmem:[%s2438_s3 + $0x3b0] sm:$0xff]  ;;  %729 = vmatpush.msra.mxu1 %v549_v18  ;;  %771 = vmatpush.msra.mxu2 %v579_v20  ;;  %v609_v25 = vld [vmem:[%s2438_s3 + $0x3a0] sm:$0xff] }
   0xc   :  { %v547_v22 = vld [vmem:[%s2438_s3 + $0x1b0] sm:$0xff]  ;;  %v545_v26 = vld [vmem:[%s2438_s3 + $0x1a0] sm:$0xff]  ;;  %812 = vmatpush.msra.mxu3 %v611_v21  ;;  %690 = vmatpush.msra.mxu0 %v513_v23 }
   0xd   :  { %730 = vmatpush.msra.mxu1 %v547_v22  ;;  %v511_v27 = vld [vmem:[%s2438_s3 + $0x90] sm:$0xff]  ;;  %772 = vmatpush.msra.mxu2 %v577_v24  ;;  %v509_v31 = vld [vmem:[%s2438_s3 + $0x80] sm:$0xff] }
   0xe   :  { %v575_v28 = vld [vmem:[%s2438_s3 + $0x290] sm:$0xff]  ;;  %813 = vmatpush.msra.mxu3 %v609_v25  ;;  %v573_v32 = vld [vmem:[%s2438_s3 + $0x280] sm:$0xff]  ;;  %691 = vmatpush.msra.mxu0 %v511_v27 }
   0xf   :  { %v607_v29 = vld [vmem:[%s2438_s3 + $0x390] sm:$0xff]  ;;  %731 = vmatpush.msra.mxu1 %v545_v26  ;;  %773 = vmatpush.msra.mxu2 %v575_v28  ;;  %v605_v33 = vld [vmem:[%s2438_s3 + $0x380] sm:$0xff]  ;;  %v524_v28 = vld [vmem:[%s2438_s3 + $0xf8] sm:$0xff] }
  0x10   :  { %v543_v30 = vld [vmem:[%s2438_s3 + $0x190] sm:$0xff]  ;;  %v541_v34 = vld [vmem:[%s2438_s3 + $0x180] sm:$0xff]  ;;  %814 = vmatpush.msra.mxu3 %v607_v29  ;;  %692 = vmatpush.msra.mxu0 %v509_v31 }
  0x11   :  { %732 = vmatpush.msra.mxu1 %v543_v30  ;;  %v507_v35 = vld [vmem:[%s2438_s3 + $0x70] sm:$0xff]  ;;  %774 = vmatpush.msra.mxu2 %v573_v32  ;;  %v505_v39 = vld [vmem:[%s2438_s3 + $0x60] sm:$0xff]  ;;  %v26_v32 = vld [vmem:[%s2439_s0 + $0x38] sm:$0xff] }
  0x12   :  { %v571_v36 = vld [vmem:[%s2438_s3 + $0x270] sm:$0xff]  ;;  %815 = vmatpush.msra.mxu3 %v605_v33  ;;  %v569_v40 = vld [vmem:[%s2438_s3 + $0x260] sm:$0xff]  ;;  %693 = vmatpush.msra.mxu0 %v507_v35 }
  0x13   :  { %v603_v37 = vld [vmem:[%s2438_s3 + $0x370] sm:$0xff]  ;;  %733 = vmatpush.msra.mxu1 %v541_v34  ;;  %775 = vmatpush.msra.mxu2 %v571_v36  ;;  %v601_v41 = vld [vmem:[%s2438_s3 + $0x360] sm:$0xff] }
  0x14   :  { %v539_v38 = vld [vmem:[%s2438_s3 + $0x170] sm:$0xff]  ;;  %v537_v43 = vld [vmem:[%s2438_s3 + $0x160] sm:$0xff]  ;;  %816 = vmatpush.msra.mxu3 %v603_v37  ;;  %694 = vmatpush.msra.mxu0 %v505_v39 }
  0x15   :  { %v503_v42 = vld [vmem:[%s2438_s3 + $0x50] sm:$0xff]  ;;  %734 = vmatpush.msra.mxu1 %v539_v38  ;;  %v501_v46 = vld [vmem:[%s2438_s3 + $0x40] sm:$0xff]  ;;  %776 = vmatpush.msra.mxu2 %v569_v40  ;;  %v556_v40 = vld [vmem:[%s2438_s3 + $0x1f8] sm:$0xff] }
  0x16   :  { %v567_v44 = vld [vmem:[%s2438_s3 + $0x250] sm:$0xff]  ;;  %v565_v48 = vld [vmem:[%s2438_s3 + $0x240] sm:$0xff]  ;;  %817 = vmatpush.msra.mxu3 %v601_v41  ;;  %695 = vmatpush.msra.mxu0 %v503_v42 }
  0x17   :  { %v599_v45 = vld [vmem:[%s2438_s3 + $0x350] sm:$0xff]  ;;  %v597_v49 = vld [vmem:[%s2438_s3 + $0x340] sm:$0xff]  ;;  %735 = vmatpush.msra.mxu1 %v537_v43  ;;  %777 = vmatpush.msra.mxu2 %v567_v44 }
  0x18   :  { %v535_v47 = vld [vmem:[%s2438_s3 + $0x150] sm:$0xff]  ;;  %v533_v51 = vld [vmem:[%s2438_s3 + $0x140] sm:$0xff]  ;;  %818 = vmatpush.msra.mxu3 %v599_v45  ;;  %696 = vmatpush.msra.mxu0 %v501_v46  ;;  %v522_v46 = vld [vmem:[%s2438_s3 + $0xe8] sm:$0xff] }
  0x19   :  { %v499_v50 = vld [vmem:[%s2438_s3 + $0x30] sm:$0xff]  ;;  %v19_v53 = vld [vmem:[%s2439_s0] sm:$0xff]  ;;  %736 = vmatpush.msra.mxu1 %v535_v47  ;;  %778 = vmatpush.msra.mxu2 %v565_v48 }
  0x1a   :  { %v563_v52 = vld [vmem:[%s2438_s3 + $0x230] sm:$0xff]  ;;  %v35_v54 = vld [vmem:[%s2440_s1] sm:$0x3]  ;;  %819 = vmatpush.msra.mxu3 %v597_v49  ;;  %697 = vmatpush.msra.mxu0 %v499_v50 }
  0x1b   :  { %v57_v55 = vld [vmem:[%s2441_s2] sm:$0x3]  ;;  %v1481_v56 = vperm.slane %v35_v54, 0  ;;  %v1483_v57 = vperm.slane %v35_v54, 1  ;;  %v21_v60 = vld [vmem:[%s2439_s0 + $0x10] sm:$0xff]  ;;  %737 = vmatpush.msra.mxu1 %v533_v51  ;;  %779 = vmatpush.msra.mxu2 %v563_v52  ;;  %v554_v51 = vld [vmem:[%s2438_s3 + $0x1e8] sm:$0xff] }
  0x1c   :  { %v1485_v58 = vperm.slane %v57_v55, 0  ;;  %v1487_v59 = vperm.slane %v57_v55, 1  ;;  %v595_v62 = vld [vmem:[%s2438_s3 + $0x330] sm:$0xff]  ;;  %v497_v1 = vld [vmem:[%s2438_s3 + $0x20] sm:$0xff] }
  0x1d   :  { %v531_v63 = vld [vmem:[%s2438_s3 + $0x130] sm:$0xff]  ;;  %v561_v2 = vld [vmem:[%s2438_s3 + $0x220] sm:$0xff]  ;;  %v41_v3 = vmul.f32 %v1481_v56, %v19_v53  ;;  %v43_v4 = vmul.f32 %v1481_v56, %v21_v60  ;;  %v42_v5 = vmul.f32 %v1483_v57, %v20_v61  ;;  %v44_v9 = vmul.f32 %v1483_v57, %v22_v0  ;;  %820 = vmatpush.msra.mxu3 %v595_v62  ;;  %v520_v60 = vld [vmem:[%s2438_s3 + $0xd8] sm:$0xff] }
  0x1e   :  { %v593_v6 = vld [vmem:[%s2438_s3 + $0x320] sm:$0xff]  ;;  %v495_v7 = vld [vmem:[%s2438_s3 + $0x10] sm:$0xff]  ;;  %738 = vmatpush.msra.mxu1 %v531_v63  ;;  %698 = vmatpush.msra.mxu0 %v497_v1  ;;  %v46_v20 = vmul.f32 %v1483_v57, %v24_v15  ;;  %v48_v44 = vmul.f32 %v1483_v57, %v26_v32  ;;  %v28_v1 = vld [vmem:[%s2439_s0 + $0x48] sm:$0xff] }
  0x1f   :  { %v529_v8 = vld [vmem:[%s2438_s3 + $0x120] sm:$0xff]  ;;  %v559_v10 = vld [vmem:[%s2438_s3 + $0x210] sm:$0xff]  ;;  %v63_v11 = vadd.f32 %v1485_v58, %v41_v3  ;;  %v65_v12 = vadd.f32 %v1485_v58, %v43_v4  ;;  %v64_v13 = vadd.f32 %v1487_v59, %v42_v5  ;;  %780 = vmatpush.msra.mxu2 %v561_v2  ;;  %v66_v18 = vadd.f32 %v1487_v59, %v44_v9  ;;  %v552_v3 = vld [vmem:[%s2438_s3 + $0x1d8] sm:$0xff] }
  0x20   :  { %v23_v14 = vld [vmem:[%s2439_s0 + $0x20] sm:$0xff]  ;;  %v591_v16 = vld [vmem:[%s2438_s3 + $0x310] sm:$0xff]  ;;  %821 = vmatpush.msra.mxu3 %v593_v6  ;;  %739 = vmatpush.msra.mxu1 %v529_v8  ;;  %v68_v30 = vadd.f32 %v1487_v59, %v46_v20  ;;  %v70_v63 = vadd.f32 %v1487_v59, %v48_v44 }
  0x21   :  { %v527_v17 = vld [vmem:[%s2438_s3 + $0x110] sm:$0xff]  ;;  %v45_v19 = vmul.f32 %v1481_v56, %v23_v14  ;;  %v493_v21 = vld [vmem:[%s2438_s3] sm:$0xff]  ;;  %v79_v24 = vmax.f32 %v63_v11, 0.0  ;;  %v81_v25 = vmax.f32 %v65_v12, 0.0  ;;  %v80_v26 = vmax.f32 %v64_v13, 0.0  ;;  %699 = vmatpush.msra.mxu0 %v495_v7  ;;  %781 = vmatpush.msra.mxu2 %v559_v10  ;;  %v518_v7 = vld [vmem:[%s2438_s3 + $0xc8] sm:$0xff] }
  0x22   :  { %v557_v22 = vld [vmem:[%s2438_s3 + $0x200] sm:$0xff]  ;;  %v82_v27 = vmax.f32 %v66_v18, 0.0  ;;  %v25_v31 = vld [vmem:[%s2439_s0 + $0x30] sm:$0xff]  ;;  %822 = vmatpush.msra.mxu3 %v591_v16  ;;  %740 = vmatpush.msra.mxu1 %v527_v17  ;;  %v84_v43 = vmax.f32 %v68_v30, 0.0  ;;  %v86_v10 = vmax.f32 %v70_v63, 0.0  ;;  %v30_v11 = vld [vmem:[%s2439_s0 + $0x58] sm:$0xff]  ;;  %v50_v16 = vmul.f32 %v1483_v57, %v28_v1 }
  0x23   :  { %v589_v23 = vld [vmem:[%s2438_s3 + $0x300] sm:$0xff]  ;;  %v67_v29 = vadd.f32 %v1485_v58, %v45_v19  ;;  %v112_v33 = vrot.slane %v79_v24, 7  ;;  %v114_v34 = vrot.slane %v81_v25, 7  ;;  %v113_v35 = vrot.slane %v80_v26, 7  ;;  %v651_v37 = vld [vmem:[%s2438_s3 + $0x4f0] sm:$0xff]  ;;  %700 = vmatpush.msra.mxu0 %v493_v21  ;;  %782 = vmatpush.msra.mxu2 %v557_v22  ;;  %v550_v12 = vld [vmem:[%s2438_s3 + $0x1c8] sm:$0xff] }
  0x24   :  { %v525_v36 = vld [vmem:[%s2438_s3 + $0x100] sm:$0xff]  ;;  %v47_v38 = vmul.f32 %v1481_v56, %v25_v31  ;;  %v116_v39 = vrot.slane %v82_v27, 7  ;;  %v683_v41 = vld [vmem:[%s2438_s3 + $0x5f0] sm:$0xff]  ;;  %823 = vmatpush.msra.mxu3 %v589_v23  ;;  %v120_v53 = vrot.slane %v84_v43, 7  ;;  %v516_v19 = vld [vmem:[%s2438_s3 + $0xb8] sm:$0xff]  ;;  %v124_v24 = vrot.slane %v86_v10, 7 }
  0x25   :  { %v83_v42 = vmax.f32 %v67_v29, 0.0  ;;  %160 = vst [vmem:[#allocation2] sm:$0xfe] %v112_v33  ;;  %v1579_v45 = vsel %vm111_vm1, %v112_v33, %v114_v34  ;;  %931 = vmatpush.msrb.mxu2 %v524_v28  ;;  %v649_v47 = vld [vmem:[%s2438_s3 + $0x4e0] sm:$0xff]  ;;  %741 = vmatpush.msra.mxu1 %v525_v36  ;;  %v29_v55 = vld [vmem:[%s2439_s0 + $0x50] sm:$0xff]  ;;  %v548_v21 = vld [vmem:[%s2438_s3 + $0x1b8] sm:$0xff]  ;;  %v52_v26 = vmul.f32 %v1483_v57, %v30_v11 }
  0x26   :  { %v69_v48 = vadd.f32 %v1485_v58, %v47_v38  ;;  %v27_v49 = vld [vmem:[%s2439_s0 + $0x40] sm:$0xff]  ;;  %v1592_v50 = vsel %vm111_vm1, %v113_v35, %v116_v39  ;;  %849 = vmatpush.msrb.mxu0 %v651_v37  ;;  %161 = vst [vmem:[#allocation2 + $0x8] sm:$0xfe] %v113_v35  ;;  %972 = vmatpush.msrb.mxu3 %v556_v40  ;;  %v647_v61 = vld [vmem:[%s2438_s3 + $0x4d0] sm:$0xff]  ;;  %v269_v17 = vrot.slane %v1579_v45, 1  ;;  %v514_v30 = vld [vmem:[%s2438_s3 + $0xa8] sm:$0xff] }
  0x27   :  { %v118_v52 = vrot.slane %v83_v42, 7  ;;  %v681_v54 = vld [vmem:[%s2438_s3 + $0x5e0] sm:$0xff]  ;;  %890 = vmatpush.msrb.mxu1 %v683_v41  ;;  %v49_v0 = vmul.f32 %v1481_v56, %v27_v49  ;;  %932 = vmatpush.msrb.mxu2 %v522_v46  ;;  %v679_v4 = vld [vmem:[%s2438_s3 + $0x5d0] sm:$0xff]  ;;  %v51_v5 = vmul.f32 %v1481_v56, %v29_v55  ;;  %v1625_v6 = vsel %vm111_vm1, %v116_v39, %v120_v53  ;;  %v32_v38 = vld [vmem:[%s2439_s0 + $0x68] sm:$0xff] }
  0x28   :  { %v85_v62 = vmax.f32 %v69_v48, 0.0  ;;  %850 = vmatpush.msrb.mxu0 %v649_v47  ;;  %973 = vmatpush.msrb.mxu3 %v554_v51  ;;  %v645_v8 = vld [vmem:[%s2438_s3 + $0x4c0] sm:$0xff]  ;;  %v643_v20 = vld [vmem:[%s2438_s3 + $0x4b0] sm:$0xff]  ;;  %v72_v27 = vadd.f32 %v1487_v59, %v50_v16  ;;  %v272_v29 = vrot.slane %v1592_v50, 1  ;;  %v1676_v36 = vsel %vm111_vm1, %v120_v53, %v124_v24  ;;  %169 = vst [vmem:[#allocation2 + $0x48] sm:$0x1] %v124_v24 }
  0x29   :  { %v1615_v2 = vsel %vm111_vm1, %v114_v34, %v118_v52  ;;  %891 = vmatpush.msrb.mxu1 %v681_v54  ;;  %933 = vmatpush.msrb.mxu2 %v520_v60  ;;  %v677_v13 = vld [vmem:[%s2438_s3 + $0x5c0] sm:$0xff]  ;;  %v71_v14 = vadd.f32 %v1485_v58, %v49_v0  ;;  %v73_v15 = vadd.f32 %v1485_v58, %v51_v5  ;;  %v675_v25 = vld [vmem:[%s2438_s3 + $0x5b0] sm:$0xff]  ;;  %v546_v43 = vld [vmem:[%s2438_s3 + $0x1a8] sm:$0xff]  ;;  %v276_v1 = vrot.slane %v1625_v6, 1 }
  0x2a   :  { %v122_v9 = vrot.slane %v85_v62, 7  ;;  %851 = vmatpush.msrb.mxu0 %v647_v61  ;;  %974 = vmatpush.msrb.mxu3 %v552_v3  ;;  %v31_v33 = vld [vmem:[%s2439_s0 + $0x60] sm:$0xff]  ;;  %v74_v37 = vadd.f32 %v1487_v59, %v52_v26  ;;  %v88_v47 = vmax.f32 %v72_v27, 0.0  ;;  %v512_v53 = vld [vmem:[%s2438_s3 + $0x98] sm:$0xff]  ;;  %v639_v54 = vld [vmem:[%s2438_s3 + $0x490] sm:$0xff]  ;;  %v54_v55 = vmul.f32 %v1483_v57, %v32_v38 }
  0x2b   :  { %892 = vmatpush.msrb.mxu1 %v679_v4  ;;  %934 = vmatpush.msrb.mxu2 %v518_v7  ;;  %v87_v31 = vmax.f32 %v71_v14, 0.0  ;;  %v89_v32 = vmax.f32 %v73_v15, 0.0  ;;  %v641_v41 = vld [vmem:[%s2438_s3 + $0x4a0] sm:$0xff]  ;;  %v53_v49 = vmul.f32 %v1481_v56, %v31_v33  ;;  %v544_v60 = vld [vmem:[%s2438_s3 + $0x198] sm:$0xff]  ;;  %v671_v3 = vld [vmem:[%s2438_s3 + $0x590] sm:$0xff]  ;;  %v280_v33 = vrot.slane %v1676_v36, 1 }
  0x2c   :  { %v1647_v18 = vsel %vm111_vm1, %v118_v52, %v122_v9  ;;  %168 = vst [vmem:[#allocation2 + $0x40] sm:$0x1] %v122_v9  ;;  %v1658_v22 = vld [vmem:[#allocation2] sm:$0xff]  ;;  %852 = vmatpush.msrb.mxu0 %v645_v8  ;;  %975 = vmatpush.msrb.mxu3 %v550_v12  ;;  %v90_v48 = vmax.f32 %v74_v37, 0.0  ;;  %v274_v52 = vrot.slane %v1615_v2, 1  ;;  %v127_v62 = vrot.slane %v88_v47, 7 }
  0x2d   :  { %v227_v23 = vld [vmem:[#allocation2] sm:$0xfe]  ;;  %701 = vmatmul.f32.vlgmr.msra.gmra.mxu0 %v1658_v22  ;;  %v228_v34 = vld [vmem:[#allocation2 + $0x8] sm:$0xfe]  ;;  %893 = vmatpush.msrb.mxu1 %v677_v13  ;;  %v126_v42 = vrot.slane %v87_v31, 7  ;;  %v128_v46 = vrot.slane %v89_v32, 7  ;;  %v75_v0 = vadd.f32 %v1485_v58, %v53_v49  ;;  %v76_v5 = vadd.f32 %v1487_v59, %v54_v55 }
  0x2e   :  { %v268_v28 = vrot.slane %v227_v23, 1  ;;  %v1673_v35 = vld [vmem:[#allocation2 + $0x8] sm:$0xff]  ;;  %935 = vmatpush.msrb.mxu2 %v516_v19  ;;  %v271_v40 = vrot.slane %v228_v34, 1  ;;  %853 = vmatpush.msrb.mxu0 %v643_v20  ;;  %v673_v44 = vld [vmem:[%s2438_s3 + $0x5a0] sm:$0xff]  ;;  %v130_v63 = vrot.slane %v90_v48, 7  ;;  %v1740_v10 = vsel %vm267_vm2, %v269_v17, %v274_v52  ;;  %v33_v13 = vld [vmem:[%s2439_s0 + $0x70] sm:$0xff] }
  0x2f   :  { %742 = vmatmul.f32.vlgmr.msra.gmra.mxu1 %v1673_v35  ;;  %976 = vmatpush.msrb.mxu3 %v548_v21  ;;  %170 = vst [vmem:[#allocation2 + $0x50] sm:$0xfe] %v126_v42  ;;  %v1717_v61 = vsel %vm111_vm1, %v126_v42, %v128_v46  ;;  %v510_v4 = vld [vmem:[%s2438_s3 + $0x88] sm:$0xff]  ;;  %v637_v7 = vld [vmem:[%s2438_s3 + $0x480] sm:$0xff]  ;;  %v91_v9 = vmax.f32 %v75_v0, 0.0  ;;  %v92_v12 = vmax.f32 %v76_v5, 0.0  ;;  %v1763_v20 = vsel %vm267_vm2, %v272_v29, %v276_v1 }
  0x30   :  { %v1685_v39 = vsel %vm267_vm2, %v268_v28, %v269_v17  ;;  %v1702_v51 = vsel %vm267_vm2, %v271_v40, %v272_v29  ;;  %894 = vmatpush.msrb.mxu1 %v675_v25  ;;  %936 = vmatpush.msrb.mxu2 %v514_v30  ;;  %v1732_v8 = vsel %vm111_vm1, %v127_v62, %v130_v63  ;;  %v542_v11 = vld [vmem:[%s2438_s3 + $0x188] sm:$0xff]  ;;  %v669_v14 = vld [vmem:[%s2438_s3 + $0x580] sm:$0xff]  ;;  %v508_v15 = vld [vmem:[%s2438_s3 + $0x78] sm:$0xff]  ;;  %v278_v28 = vrot.slane %v1647_v18, 1 }
  0x31   :  { %783 = vmatmul.f32.vlgmr.msra.gmra.mxu2 %v1685_v39  ;;  %824 = vmatmul.f32.vlgmr.msra.gmra.mxu3 %v1702_v51  ;;  %171 = vst [vmem:[#allocation2 + $0x58] sm:$0xfe] %v127_v62  ;;  %v132_v16 = vrot.slane %v91_v9, 7  ;;  %v55_v17 = vmul.f32 %v1481_v56, %v33_v13  ;;  %v34_v19 = vld [vmem:[%s2439_s0 + $0x78] sm:$0xff]  ;;  %v635_v21 = vld [vmem:[%s2438_s3 + $0x470] sm:$0xff]  ;;  %v134_v23 = vrot.slane %v92_v12, 7  ;;  %v1827_v49 = vsel %vm267_vm2, %v276_v1, %v280_v33 }
  0x32   :  { %854 = vmatpush.msrb.mxu0 %v641_v41  ;;  %977 = vmatpush.msrb.mxu3 %v546_v43  ;;  %v56_v56 = vmul.f32 %v1483_v57, %v34_v19  ;;  %v540_v24 = vld [vmem:[%s2438_s3 + $0x178] sm:$0xff]  ;;  %v667_v25 = vld [vmem:[%s2438_s3 + $0x570] sm:$0xff]  ;;  %v506_v57 = vld [vmem:[%s2438_s3 + $0x68] sm:$0xff]  ;;  %v1810_v41 = vsel %vm267_vm2, %v274_v52, %v278_v28 }
  0x33   :  { %895 = vmatpush.msrb.mxu1 %v673_v44  ;;  %937 = vmatpush.msrb.mxu2 %v512_v53  ;;  %v1778_v26 = vsel %vm111_vm1, %v128_v46, %v132_v16  ;;  %v77_v27 = vadd.f32 %v1485_v58, %v55_v17  ;;  %v633_v29 = vld [vmem:[%s2438_s3 + $0x460] sm:$0xff]  ;;  %v1789_v30 = vsel %vm111_vm1, %v130_v63, %v134_v23  ;;  %v538_v58 = vld [vmem:[%s2438_s3 + $0x168] sm:$0xff]  ;;  %v631_v38 = vld [vmem:[%s2438_s3 + $0x450] sm:$0xff]  ;;  %v287_v17 = vrot.slane %v1717_v61, 1 }
  0x34   :  { %855 = vmatpush.msrb.mxu0 %v639_v54  ;;  %978 = vmatpush.msrb.mxu3 %v544_v60  ;;  %v78_v31 = vadd.f32 %v1487_v59, %v56_v56  ;;  %v665_v34 = vld [vmem:[%s2438_s3 + $0x560] sm:$0xff]  ;;  %v504_v59 = vld [vmem:[%s2438_s3 + $0x58] sm:$0xff]  ;;  %v663_v46 = vld [vmem:[%s2438_s3 + $0x550] sm:$0xff] }
  0x35   :  { %704 = vmatmul.f32.gmra.mxu0 %v1579_v45  ;;  %896 = vmatpush.msrb.mxu1 %v671_v3  ;;  %v93_v32 = vmax.f32 %v77_v27, 0.0  ;;  %v536_v42 = vld [vmem:[%s2438_s3 + $0x158] sm:$0xff]  ;;  %v235_v44 = vld [vmem:[#allocation2 + $0x40] sm:$0x1]  ;;  %v502_v47 = vld [vmem:[%s2438_s3 + $0x48] sm:$0xff] }
  0x36   :  { %938 = vmatpush.msrb.mxu2 %v510_v4  ;;  %856 = vmatpush.msrb.mxu0 %v637_v7  ;;  %v94_v37 = vmax.f32 %v78_v31, 0.0  ;;  %v629_v52 = vld [vmem:[%s2438_s3 + $0x440] sm:$0xff]  ;;  %v236_v54 = vld [vmem:[#allocation2 + $0x48] sm:$0x1]  ;;  %v282_v60 = vrot.slane %v235_v44, 1  ;;  %v500_v63 = vld [vmem:[%s2438_s3 + $0x38] sm:$0xff] }
  0x37   :  { %745 = vmatmul.f32.gmra.mxu1 %v1592_v50  ;;  %979 = vmatpush.msrb.mxu3 %v542_v11  ;;  %v136_v40 = vrot.slane %v93_v32, 7  ;;  %v534_v55 = vld [vmem:[%s2438_s3 + $0x148] sm:$0xff]  ;;  %v661_v62 = vld [vmem:[%s2438_s3 + $0x540] sm:$0xff]  ;;  %v627_v0 = vld [vmem:[%s2438_s3 + $0x430] sm:$0xff]  ;;  %v284_v1 = vrot.slane %v236_v54, 1 }
  0x38   :  { %897 = vmatpush.msrb.mxu1 %v669_v14  ;;  %939 = vmatpush.msrb.mxu2 %v508_v15  ;;  %v138_v43 = vrot.slane %v94_v37, 7  ;;  %v532_v3 = vld [vmem:[%s2438_s3 + $0x138] sm:$0xff]  ;;  %v659_v4 = vld [vmem:[%s2438_s3 + $0x530] sm:$0xff]  ;;  %v498_v5 = vld [vmem:[%s2438_s3 + $0x28] sm:$0xff]  ;;  %v1864_v9 = vsel %vm267_vm2, %v278_v28, %v282_v60 }
  0x39   :  { %786 = vmatmul.f32.gmra.mxu2 %v1740_v10  ;;  %827 = vmatmul.f32.gmra.mxu3 %v1763_v20  ;;  %v1822_v48 = vsel %vm111_vm1, %v132_v16, %v136_v40  ;;  %178 = vst [vmem:[#allocation2 + $0x90] sm:$0x1] %v136_v40  ;;  %v625_v7 = vld [vmem:[%s2438_s3 + $0x420] sm:$0xff]  ;;  %v530_v11 = vld [vmem:[%s2438_s3 + $0x128] sm:$0xff]  ;;  %v237_v12 = vld [vmem:[#allocation2 + $0x50] sm:$0xfe]  ;;  %v1870_v13 = vsel %vm267_vm2, %v280_v33, %v284_v1 }
  0x3a   :  { %857 = vmatpush.msrb.mxu0 %v635_v21  ;;  %980 = vmatpush.msrb.mxu3 %v540_v24  ;;  %v1834_v53 = vsel %vm111_vm1, %v134_v23, %v138_v43  ;;  %179 = vst [vmem:[#allocation2 + $0x98] sm:$0x1] %v138_v43  ;;  %v238_v14 = vld [vmem:[#allocation2 + $0x58] sm:$0xfe]  ;;  %v1874_v15 = vld [vmem:[#allocation2 + $0x50] sm:$0xff]  ;;  %v286_v16 = vrot.slane %v237_v12, 1 }
  0x3b   :  { %898 = vmatpush.msrb.mxu1 %v667_v25  ;;  %940 = vmatpush.msrb.mxu2 %v506_v57  ;;  %v657_v19 = vld [vmem:[%s2438_s3 + $0x520] sm:$0xff]  ;;  %v496_v21 = vld [vmem:[%s2438_s3 + $0x18] sm:$0xff]  ;;  %v623_v23 = vld [vmem:[%s2438_s3 + $0x410] sm:$0xff]  ;;  %v289_v56 = vrot.slane %v238_v14, 1  ;;  %v290_v24 = vrot.slane %v1732_v8, 1  ;;  %v294_v40 = vrot.slane %v1789_v30, 1 }
  0x3c   :  { %858 = vmatpush.msrb.mxu0 %v633_v29  ;;  %981 = vmatpush.msrb.mxu3 %v538_v58  ;;  %v528_v25 = vld [vmem:[%s2438_s3 + $0x118] sm:$0xff]  ;;  %v655_v27 = vld [vmem:[%s2438_s3 + $0x510] sm:$0xff]  ;;  %v494_v28 = vld [vmem:[%s2438_s3 + $0x8] sm:$0xff]  ;;  %v1907_v58 = vsel %vm267_vm2, %v286_v16, %v287_v17  ;;  %v296_v54 = vrot.slane %v1822_v48, 1 }
  0x3d   :  { %707 = vmatmul.f32.gmra.mxu0 %v1615_v2  ;;  %899 = vmatpush.msrb.mxu1 %v665_v34  ;;  %v1897_v57 = vld [vmem:[#allocation2 + $0x58] sm:$0xff]  ;;  %v621_v29 = vld [vmem:[%s2438_s3 + $0x400] sm:$0xff]  ;;  %v526_v31 = vld [vmem:[%s2438_s3 + $0x108] sm:$0xff]  ;;  %v1913_v33 = vsel %vm267_vm2, %v289_v56, %v290_v24  ;;  %v292_v34 = vrot.slane %v1778_v26, 1 }
  0x3e   :  { %941 = vmatpush.msrb.mxu2 %v504_v59  ;;  %859 = vmatpush.msrb.mxu0 %v631_v38  ;;  %v653_v32 = vld [vmem:[%s2438_s3 + $0x500] sm:$0xff]  ;;  %v652_v59 = vld [vmem:[%s2438_s3 + $0x4f8] sm:$0xff]  ;;  %v650_v43 = vld [vmem:[%s2438_s3 + $0x4e8] sm:$0xff] }
  0x3f   :  { %748 = vmatmul.f32.gmra.mxu1 %v1625_v6  ;;  %982 = vmatpush.msrb.mxu3 %v536_v42  ;;  %v588_v37 = vld [vmem:[%s2438_s3 + $0x2f8] sm:$0xff]  ;;  %v586_v44 = vld [vmem:[%s2438_s3 + $0x2e8] sm:$0xff] }
  0x40   :  { %900 = vmatpush.msrb.mxu1 %v663_v46  ;;  %942 = vmatpush.msrb.mxu2 %v502_v47  ;;  %v684_v38 = vld [vmem:[%s2438_s3 + $0x5f8] sm:$0xff]  ;;  %v682_v46 = vld [vmem:[%s2438_s3 + $0x5e8] sm:$0xff]  ;;  %v1943_v47 = vsel %vm267_vm2, %v287_v17, %v292_v34  ;;  %v336_v17 = vld [vmem:[#allocation2] sm:$0xfc] }
  0x41   :  { %789 = vmatmul.f32.gmra.mxu2 %v1810_v41  ;;  %830 = vmatmul.f32.gmra.mxu3 %v1827_v49  ;;  %v620_v42 = vld [vmem:[%s2438_s3 + $0x3f8] sm:$0xff] }
  0x42   :  { %860 = vmatpush.msrb.mxu0 %v629_v52  ;;  %983 = vmatpush.msrb.mxu3 %v534_v55  ;;  %v1946_v52 = vsel %vm267_vm2, %v290_v24, %v294_v40  ;;  %v618_v55 = vld [vmem:[%s2438_s3 + $0x3e8] sm:$0xff]  ;;  %v648_v60 = vld [vmem:[%s2438_s3 + $0x4d8] sm:$0xff] }
  0x43   :  { %901 = vmatpush.msrb.mxu1 %v661_v62  ;;  %943 = vmatpush.msrb.mxu2 %v500_v63  ;;  %v584_v62 = vld [vmem:[%s2438_s3 + $0x2d8] sm:$0xff]  ;;  %v298_v63 = vrot.slane %v1834_v53, 1 }
  0x44   :  { %861 = vmatpush.msrb.mxu0 %v627_v0  ;;  %984 = vmatpush.msrb.mxu3 %v532_v3  ;;  %v680_v0 = vld [vmem:[%s2438_s3 + $0x5d8] sm:$0xff]  ;;  %v646_v3 = vld [vmem:[%s2438_s3 + $0x4c8] sm:$0xff] }
  0x45   :  { %710 = vmatmul.f32.gmra.mxu0 %v1647_v18  ;;  %902 = vmatpush.msrb.mxu1 %v659_v4  ;;  %v616_v1 = vld [vmem:[%s2438_s3 + $0x3d8] sm:$0xff]  ;;  %v582_v4 = vld [vmem:[%s2438_s3 + $0x2c8] sm:$0xff]  ;;  %v1982_v12 = vsel %vm267_vm2, %v294_v40, %v298_v63  ;;  %v381_v40 = vrot.slane %v1592_v50, 2 }
  0x46   :  { %944 = vmatpush.msrb.mxu2 %v498_v5  ;;  %862 = vmatpush.msrb.mxu0 %v625_v7  ;;  %v678_v5 = vld [vmem:[%s2438_s3 + $0x5c8] sm:$0xff]  ;;  %v1979_v7 = vsel %vm267_vm2, %v292_v34, %v296_v54  ;;  %v246_v14 = vld [vmem:[#allocation2 + $0x98] sm:$0x1]  ;;  %v377_v34 = vrot.slane %v336_v17, 2 }
  0x47   :  { %751 = vmatmul.f32.gmra.mxu1 %v1676_v36  ;;  %985 = vmatpush.msrb.mxu3 %v530_v11  ;;  %v245_v11 = vld [vmem:[#allocation2 + $0x90] sm:$0x1]  ;;  %v302_v56 = vrot.slane %v246_v14, 1  ;;  %v676_v24 = vld [vmem:[%s2438_s3 + $0x5b8] sm:$0xff] }
  0x48   :  { %903 = vmatpush.msrb.mxu1 %v657_v19  ;;  %945 = vmatpush.msrb.mxu2 %v496_v21  ;;  %v300_v16 = vrot.slane %v245_v11, 1  ;;  %v614_v19 = vld [vmem:[%s2438_s3 + $0x3c8] sm:$0xff]  ;;  %v644_v21 = vld [vmem:[%s2438_s3 + $0x4b8] sm:$0xff] }
  0x49   :  { %792 = vmatmul.f32.gmra.mxu2 %v1864_v9  ;;  %833 = vmatmul.f32.gmra.mxu3 %v1870_v13  ;;  %v636_v11 = vld [vmem:[%s2438_s3 + $0x478] sm:$0xff] }
  0x4a   :  { %863 = vmatpush.msrb.mxu0 %v623_v23  ;;  %986 = vmatpush.msrb.mxu3 %v528_v25  ;;  %v580_v23 = vld [vmem:[%s2438_s3 + $0x2b8] sm:$0xff] }
  0x4b   :  { %904 = vmatpush.msrb.mxu1 %v655_v27  ;;  %946 = vmatpush.msrb.mxu2 %v494_v28  ;;  %v612_v25 = vld [vmem:[%s2438_s3 + $0x3b8] sm:$0xff]  ;;  %v642_v27 = vld [vmem:[%s2438_s3 + $0x4a8] sm:$0xff] }
  0x4c   :  { %864 = vmatpush.msrb.mxu0 %v621_v29  ;;  %987 = vmatpush.msrb.mxu3 %v526_v31  ;;  %v578_v28 = vld [vmem:[%s2438_s3 + $0x2a8] sm:$0xff]  ;;  %v2013_v31 = vsel %vm267_vm2, %v296_v54, %v300_v16  ;;  %v672_v54 = vld [vmem:[%s2438_s3 + $0x598] sm:$0xff] }
  0x4d   :  { %713 = vmatmul.f32.gmra.mxu0 %v1874_v15  ;;  %905 = vmatpush.msrb.mxu1 %v653_v32  ;;  %v674_v29 = vld [vmem:[%s2438_s3 + $0x5a8] sm:$0xff]  ;;  %v572_v14 = vld [vmem:[%s2438_s3 + $0x278] sm:$0xff] }
  0x4e   :  { %1095 = vmatpush.msra.mxu2 %v652_v59  ;;  %1013 = vmatpush.msra.mxu0 %v588_v37  ;;  %v337_v32 = vld [vmem:[#allocation2 + $0x8] sm:$0xfc]  ;;  %v378_v59 = vrot.slane %v1579_v45, 2  ;;  %v2017_v37 = vsel %vm267_vm2, %v298_v63, %v302_v56  ;;  %v389_v56 = vrot.slane %v1676_v36, 2 }
  0x4f   :  { %754 = vmatmul.f32.gmra.mxu1 %v1897_v57  ;;  %1136 = vmatpush.msra.mxu3 %v684_v38  ;;  %v380_v38 = vrot.slane %v337_v32, 2  ;;  %v574_v63 = vld [vmem:[%s2438_s3 + $0x288] sm:$0xff] }
  0x50   :  { %1054 = vmatpush.msra.mxu1 %v620_v42  ;;  %1096 = vmatpush.msra.mxu2 %v650_v43  ;;  %v2024_v42 = vsel %vm376_vm3, %v377_v34, %v378_v59  ;;  %v610_v43 = vld [vmem:[%s2438_s3 + $0x3a8] sm:$0xff] }
  0x51   :  { %795 = vmatmul.f32.gmra.mxu2 %v1907_v58  ;;  %836 = vmatmul.f32.gmra.mxu3 %v1913_v33  ;;  %v634_v16 = vld [vmem:[%s2438_s3 + $0x468] sm:$0xff] }
  0x52   :  { %1014 = vmatpush.msra.mxu0 %v586_v44  ;;  %1137 = vmatpush.msra.mxu3 %v682_v46  ;;  %v640_v44 = vld [vmem:[%s2438_s3 + $0x498] sm:$0xff]  ;;  %v630_v32 = vld [vmem:[%s2438_s3 + $0x448] sm:$0xff] }
  0x53   :  { %1055 = vmatpush.msra.mxu1 %v618_v55  ;;  %1097 = vmatpush.msra.mxu2 %v648_v60  ;;  %v576_v46 = vld [vmem:[%s2438_s3 + $0x298] sm:$0xff]  ;;  %v638_v60 = vld [vmem:[%s2438_s3 + $0x488] sm:$0xff] }
  0x54   :  { %1015 = vmatpush.msra.mxu0 %v584_v62  ;;  %1138 = vmatpush.msra.mxu3 %v680_v0  ;;  %v608_v55 = vld [vmem:[%s2438_s3 + $0x398] sm:$0xff]  ;;  %v2045_v62 = vsel %vm376_vm3, %v380_v38, %v381_v40  ;;  %v670_v0 = vld [vmem:[%s2438_s3 + $0x588] sm:$0xff] }
  0x55   :  { %716 = vmatmul.f32.gmra.mxu0 %v1717_v61  ;;  %1056 = vmatpush.msra.mxu1 %v616_v1  ;;  %v383_v1 = vrot.slane %v1615_v2, 2  ;;  %v662_v38 = vld [vmem:[%s2438_s3 + $0x548] sm:$0xff] }
  0x56   :  { %1098 = vmatpush.msra.mxu2 %v646_v3  ;;  %1016 = vmatpush.msra.mxu0 %v582_v4  ;;  %v385_v3 = vrot.slane %v1625_v6, 2 }
  0x57   :  { %757 = vmatmul.f32.gmra.mxu1 %v1732_v8  ;;  %1139 = vmatpush.msra.mxu3 %v678_v5  ;;  %v2060_v4 = vsel %vm376_vm3, %v378_v59, %v383_v1  ;;  %v606_v5 = vld [vmem:[%s2438_s3 + $0x388] sm:$0xff] }
  0x58   :  { %1057 = vmatpush.msra.mxu1 %v614_v19  ;;  %1099 = vmatpush.msra.mxu2 %v644_v21  ;;  %v2081_v17 = vsel %vm376_vm3, %v381_v40, %v385_v3  ;;  %v570_v19 = vld [vmem:[%s2438_s3 + $0x268] sm:$0xff]  ;;  %v2117_v34 = vsel %vm376_vm3, %v385_v3, %v389_v56 }
  0x59   :  { %798 = vmatmul.f32.gmra.mxu2 %v1943_v47  ;;  %839 = vmatmul.f32.gmra.mxu3 %v1946_v52  ;;  %v666_v21 = vld [vmem:[%s2438_s3 + $0x568] sm:$0xff] }
  0x5a   :  { %1017 = vmatpush.msra.mxu0 %v580_v23  ;;  %1140 = vmatpush.msra.mxu3 %v676_v24  ;;  %v387_v23 = vrot.slane %v1647_v18, 2  ;;  %v344_v24 = vld [vmem:[#allocation2 + $0x40] sm:$0x3]  ;;  %v566_v59 = vld [vmem:[%s2438_s3 + $0x248] sm:$0xff] }
  0x5b   :  { %1058 = vmatpush.msra.mxu1 %v612_v25  ;;  %1100 = vmatpush.msra.mxu2 %v642_v27  ;;  %v602_v27 = vld [vmem:[%s2438_s3 + $0x368] sm:$0xff] }
  0x5c   :  { %1018 = vmatpush.msra.mxu0 %v578_v28  ;;  %1141 = vmatpush.msra.mxu3 %v674_v29  ;;  %v2096_v25 = vsel %vm376_vm3, %v383_v1, %v387_v23  ;;  %v632_v28 = vld [vmem:[%s2438_s3 + $0x458] sm:$0xff]  ;;  %v345_v40 = vld [vmem:[#allocation2 + $0x48] sm:$0x3] }
  0x5d   :  { %719 = vmatmul.f32.gmra.mxu0 %v1778_v26  ;;  %1059 = vmatpush.msra.mxu1 %v610_v43  ;;  %v600_v29 = vld [vmem:[%s2438_s3 + $0x358] sm:$0xff]  ;;  %v391_v43 = vrot.slane %v344_v24, 2  ;;  %v562_v3 = vld [vmem:[%s2438_s3 + $0x228] sm:$0xff] }
  0x5e   :  { %1101 = vmatpush.msra.mxu2 %v640_v44  ;;  %1019 = vmatpush.msra.mxu0 %v576_v46  ;;  %v393_v44 = vrot.slane %v345_v40, 2  ;;  %v346_v46 = vld [vmem:[#allocation2 + $0x50] sm:$0xfc]  ;;  %v622_v24 = vld [vmem:[%s2438_s3 + $0x408] sm:$0xff]  ;;  %v405_v40 = vrot.slane %v1822_v48, 2 }
  0x5f   :  { %760 = vmatmul.f32.gmra.mxu1 %v1789_v30  ;;  %1142 = vmatpush.msra.mxu3 %v672_v54  ;;  %v2130_v54 = vsel %vm376_vm3, %v387_v23, %v391_v43  ;;  %v624_v23 = vld [vmem:[%s2438_s3 + $0x418] sm:$0xff]  ;;  %v354_v43 = vld [vmem:[#allocation2 + $0x90] sm:$0x3] }
  0x60   :  { %1060 = vmatpush.msra.mxu1 %v608_v55  ;;  %1102 = vmatpush.msra.mxu2 %v638_v60  ;;  %v598_v55 = vld [vmem:[%s2438_s3 + $0x348] sm:$0xff]  ;;  %v628_v60 = vld [vmem:[%s2438_s3 + $0x438] sm:$0xff]  ;;  %v2151_v1 = vsel %vm376_vm3, %v389_v56, %v393_v44 }
  0x61   :  { %801 = vmatmul.f32.gmra.mxu2 %v1979_v7  ;;  %842 = vmatmul.f32.gmra.mxu3 %v1982_v12  ;;  %v592_v56 = vld [vmem:[%s2438_s3 + $0x318] sm:$0xff] }
  0x62   :  { %1020 = vmatpush.msra.mxu0 %v574_v63  ;;  %1143 = vmatpush.msra.mxu3 %v670_v0  ;;  %v564_v63 = vld [vmem:[%s2438_s3 + $0x238] sm:$0xff]  ;;  %v626_v0 = vld [vmem:[%s2438_s3 + $0x428] sm:$0xff] }
  0x63   :  { %1061 = vmatpush.msra.mxu1 %v606_v5  ;;  %1103 = vmatpush.msra.mxu2 %v636_v11  ;;  %v658_v5 = vld [vmem:[%s2438_s3 + $0x528] sm:$0xff]  ;;  %v347_v11 = vld [vmem:[#allocation2 + $0x58] sm:$0xfc] }
  0x64   :  { %1021 = vmatpush.msra.mxu0 %v572_v14  ;;  %v395_v14 = vrot.slane %v346_v46, 2  ;;  %v355_v46 = vld [vmem:[#allocation2 + $0x98] sm:$0x3] }
  0x65   :  { %722 = vmatmul.f32.gmra.mxu0 %v1822_v48  ;;  %1104 = vmatpush.msra.mxu2 %v634_v16  ;;  %v399_v16 = vrot.slane %v1732_v8, 2 }
  0x66   :  { %1022 = vmatpush.msra.mxu0 %v570_v19 }
  0x67   :  { %763 = vmatmul.f32.gmra.mxu1 %v1834_v53  ;;  %1105 = vmatpush.msra.mxu2 %v632_v28  ;;  %v558_v28 = vld [vmem:[%s2438_s3 + $0x208] sm:$0xff] }
  0x69   :  { %804 = vmatmul.f32.gmra.mxu2 %v2013_v31  ;;  %845 = vmatmul.f32.gmra.mxu3 %v2017_v37 }
  0x6a   :  { %1106 = vmatpush.msra.mxu2 %v630_v32  ;;  %v403_v32 = vrot.slane %v1789_v30, 2 }
  0x6c   :  { %1107 = vmatpush.msra.mxu2 %v628_v60 }
  0x6d   :  { %865 = vmatmul.f32.vlgmr.msrb.gmra.mxu0 %v2024_v42 }
  0x6e   :  { %1108 = vmatpush.msra.mxu2 %v626_v0 }
  0x6f   :  { %906 = vmatmul.f32.vlgmr.msrb.gmra.mxu1 %v2045_v62 }
  0x70   :  { %1109 = vmatpush.msra.mxu2 %v624_v23 }
  0x71   :  { %947 = vmatmul.f32.vlgmr.msrb.gmra.mxu2 %v1658_v22  ;;  %988 = vmatmul.f32.vlgmr.msrb.gmra.mxu3 %v1673_v35  ;;  %v668_v22 = vld [vmem:[%s2438_s3 + $0x578] sm:$0xff] }
  0x72   :  { %v604_v35 = vld [vmem:[%s2438_s3 + $0x378] sm:$0xff]  ;;  %1144 = vmatpush.msra.mxu3 %v668_v22  ;;  %v396_v22 = vrot.slane %v1717_v61, 2  ;;  %1110 = vmatpush.msra.mxu2 %v622_v24 }
  0x73   :  { %1062 = vmatpush.msra.mxu1 %v604_v35  ;;  %v398_v35 = vrot.slane %v347_v11, 2 }
  0x74   :  { %1145 = vmatpush.msra.mxu3 %v666_v21  ;;  %v2166_v19 = vsel %vm376_vm3, %v395_v14, %v396_v22  ;;  %v594_v21 = vld [vmem:[%s2438_s3 + $0x328] sm:$0xff] }
  0x75   :  { %868 = vmatmul.f32.gmra.mxu0 %v2060_v4  ;;  %1063 = vmatpush.msra.mxu1 %v602_v27  ;;  %v2187_v27 = vsel %vm376_vm3, %v398_v35, %v399_v16 }
  0x77   :  { %909 = vmatmul.f32.gmra.mxu1 %v2081_v17 }
  0x78   :  { %1064 = vmatpush.msra.mxu1 %v600_v29  ;;  %v401_v29 = vrot.slane %v1778_v26, 2 }
  0x79   :  { %950 = vmatmul.f32.gmra.mxu2 %v1579_v45  ;;  %991 = vmatmul.f32.gmra.mxu3 %v1592_v50  ;;  %v568_v45 = vld [vmem:[%s2438_s3 + $0x258] sm:$0xff] }
  0x7a   :  { %v664_v50 = vld [vmem:[%s2438_s3 + $0x558] sm:$0xff]  ;;  %1023 = vmatpush.msra.mxu0 %v568_v45  ;;  %1065 = vmatpush.msra.mxu1 %v598_v55  ;;  %v654_v45 = vld [vmem:[%s2438_s3 + $0x508] sm:$0xff]  ;;  %v409_v55 = vrot.slane %v354_v43, 2 }
  0x7b   :  { %1146 = vmatpush.msra.mxu3 %v664_v50  ;;  %v590_v50 = vld [vmem:[%s2438_s3 + $0x308] sm:$0xff] }
  0x7c   :  { %1024 = vmatpush.msra.mxu0 %v566_v59  ;;  %v2205_v59 = vsel %vm376_vm3, %v396_v22, %v401_v29 }
  0x7d   :  { %871 = vmatmul.f32.gmra.mxu0 %v2096_v25  ;;  %1147 = vmatpush.msra.mxu3 %v662_v38  ;;  %v2208_v38 = vsel %vm376_vm3, %v399_v16, %v403_v32 }
  0x7e   :  { %1025 = vmatpush.msra.mxu0 %v564_v63 }
  0x7f   :  { %912 = vmatmul.f32.gmra.mxu1 %v2117_v34 }
  0x80   :  { %1026 = vmatpush.msra.mxu0 %v562_v3 }
  0x81   :  { %953 = vmatmul.f32.gmra.mxu2 %v1615_v2  ;;  %994 = vmatmul.f32.gmra.mxu3 %v1625_v6  ;;  %v660_v2 = vld [vmem:[%s2438_s3 + $0x538] sm:$0xff] }
  0x82   :  { %v596_v6 = vld [vmem:[%s2438_s3 + $0x338] sm:$0xff]  ;;  %1148 = vmatpush.msra.mxu3 %v660_v2 }
  0x83   :  { %1066 = vmatpush.msra.mxu1 %v596_v6 }
  0x84   :  { %1149 = vmatpush.msra.mxu3 %v658_v5 }
  0x85   :  { %874 = vmatmul.f32.gmra.mxu0 %v2130_v54  ;;  %1067 = vmatpush.msra.mxu1 %v594_v21 }
  0x87   :  { %915 = vmatmul.f32.gmra.mxu1 %v2151_v1 }
  0x88   :  { %1068 = vmatpush.msra.mxu1 %v592_v56 }
  0x89   :  { %956 = vmatmul.f32.gmra.mxu2 %v1647_v18  ;;  %997 = vmatmul.f32.gmra.mxu3 %v1676_v36  ;;  %v560_v18 = vld [vmem:[%s2438_s3 + $0x218] sm:$0xff] }
  0x8a   :  { %v656_v36 = vld [vmem:[%s2438_s3 + $0x518] sm:$0xff]  ;;  %1027 = vmatpush.msra.mxu0 %v560_v18  ;;  %1069 = vmatpush.msra.mxu1 %v590_v50 }
  0x8b   :  { %1150 = vmatpush.msra.mxu3 %v656_v36 }
  0x8c   :  { %1028 = vmatpush.msra.mxu0 %v558_v28 }
  0x8d   :  { %877 = vmatmul.f32.gmra.mxu0 %v2166_v19  ;;  %1151 = vmatpush.msra.mxu3 %v654_v45 }
  0x8f   :  { %918 = vmatmul.f32.gmra.mxu1 %v2187_v27 }
  0x91   :  { %959 = vmatmul.f32.gmra.mxu2 %v1874_v15  ;;  %1000 = vmatmul.f32.gmra.mxu3 %v1897_v57  ;;  %v407_v15 = vrot.slane %v1834_v53, 2  ;;  %v2217_v57 = vsel %vm376_vm3, %v401_v29, %v405_v40 }
  0x93   :  { %v2220_v44 = vsel %vm376_vm3, %v403_v32, %v407_v15 }
  0x95   :  { %880 = vmatmul.f32.gmra.mxu0 %v2205_v59 }
  0x97   :  { %921 = vmatmul.f32.gmra.mxu1 %v2208_v38 }
  0x99   :  { %962 = vmatmul.f32.gmra.mxu2 %v1717_v61  ;;  %1003 = vmatmul.f32.gmra.mxu3 %v1732_v8  ;;  %v411_v61 = vrot.slane %v355_v46, 2  ;;  %v2227_v8 = vsel %vm376_vm3, %v405_v40, %v409_v55 }
  0x9b   :  { %v2230_v60 = vsel %vm376_vm3, %v407_v15, %v411_v61 }
  0x9d   :  { %883 = vmatmul.f32.gmra.mxu0 %v2217_v57 }
  0x9f   :  { %924 = vmatmul.f32.gmra.mxu1 %v2220_v44 }
  0xa1   :  { %965 = vmatmul.f32.gmra.mxu2 %v1778_v26  ;;  %1006 = vmatmul.f32.gmra.mxu3 %v1789_v30 }
  0xa5   :  { %886 = vmatmul.f32.gmra.mxu0 %v2227_v8 }
  0xa7   :  { %927 = vmatmul.f32.gmra.mxu1 %v2230_v60 }
  0xa9   :  { %968 = vmatmul.f32.gmra.mxu2 %v1822_v48  ;;  %1009 = vmatmul.f32.gmra.mxu3 %v1834_v53 }
  0xaa   :  { %v702_v63 = vpop.f32.mrf.mxu0 }
  0xac   :  { %v743_v2 = vpop.f32.mrf.mxu1 }
  0xad   :  { %1029 = vmatmul.f32.vlgmr.msra.gmra.mxu0 %v1685_v39 }
  0xaf   :  { %1070 = vmatmul.f32.vlgmr.msra.gmra.mxu1 %v1702_v51 }
  0xb1   :  { %1111 = vmatmul.f32.vlgmr.msra.gmra.mxu2 %v2024_v42  ;;  %1152 = vmatmul.f32.vlgmr.msra.gmra.mxu3 %v2045_v62 }
  0xb2   :  { %v705_v26 = vpop.f32.mrf.mxu0 }
  0xb4   :  { %v784_v30 = vpop.f32.mrf.mxu2  ;;  %v746_v6 = vpop.f32.mrf.mxu1 }
  0xb5   :  { %v825_v0 = vpop.f32.mrf.mxu3  ;;  %1032 = vmatmul.f32.gmra.mxu0 %v1740_v10  ;;  %v747_v22 = vadd.f32 %v746_v6, %v705_v26 }
  0xb7   :  { %1073 = vmatmul.f32.gmra.mxu1 %v1763_v20 }
  0xb9   :  { %1114 = vmatmul.f32.gmra.mxu2 %v2060_v4  ;;  %1155 = vmatmul.f32.gmra.mxu3 %v2081_v17 }
  0xba   :  { %v2244_v48 = vpop.f32.mrf.mxu0 }
  0xbc   :  { %v787_v39 = vpop.f32.mrf.mxu2  ;;  %v749_v51 = vpop.f32.mrf.mxu1 }
  0xbd   :  { %v828_v53 = vpop.f32.mrf.mxu3  ;;  %1035 = vmatmul.f32.gmra.mxu0 %v1810_v41  ;;  %v788_v21 = vadd.f32 %v787_v39, %v747_v22  ;;  %v750_v36 = vadd.f32 %v749_v51, %v2244_v48 }
  0xbf   :  { %1076 = vmatmul.f32.gmra.mxu1 %v1827_v49 }
  0xc1   :  { %1117 = vmatmul.f32.gmra.mxu2 %v2096_v25  ;;  %1158 = vmatmul.f32.gmra.mxu3 %v2117_v34 }
  0xc2   :  { %v2250_v10 = vpop.f32.mrf.mxu0 }
  0xc4   :  { %v790_v20 = vpop.f32.mrf.mxu2  ;;  %v2252_v42 = vpop.f32.mrf.mxu1 }
  0xc5   :  { %v2254_v62 = vpop.f32.mrf.mxu3  ;;  %1038 = vmatmul.f32.gmra.mxu0 %v1864_v9  ;;  %v791_v28 = vadd.f32 %v790_v20, %v750_v36 }
  0xc7   :  { %1079 = vmatmul.f32.gmra.mxu1 %v1870_v13 }
  0xc9   :  { %1120 = vmatmul.f32.gmra.mxu2 %v2130_v54  ;;  %1161 = vmatmul.f32.gmra.mxu3 %v2151_v1 }
  0xca   :  { %v2260_v41 = vpop.f32.mrf.mxu0 }
  0xcc   :  { %v2262_v49 = vpop.f32.mrf.mxu2  ;;  %v2264_v4 = vpop.f32.mrf.mxu1 }
  0xcd   :  { %v2266_v17 = vpop.f32.mrf.mxu3  ;;  %1041 = vmatmul.f32.gmra.mxu0 %v1907_v58  ;;  %v756_v6 = vadd.f32 %v2264_v4, %v2260_v41 }
  0xcf   :  { %1082 = vmatmul.f32.gmra.mxu1 %v1913_v33 }
  0xd1   :  { %1123 = vmatmul.f32.gmra.mxu2 %v2166_v19  ;;  %1164 = vmatmul.f32.gmra.mxu3 %v2187_v27 }
  0xd2   :  { %v2272_v9 = vpop.f32.mrf.mxu0 }
  0xd4   :  { %v2274_v13 = vpop.f32.mrf.mxu2  ;;  %v2276_v25 = vpop.f32.mrf.mxu1 }
  0xd5   :  { %v2278_v34 = vpop.f32.mrf.mxu3  ;;  %1044 = vmatmul.f32.gmra.mxu0 %v1943_v47  ;;  %v797_v51 = vadd.f32 %v2274_v13, %v756_v6  ;;  %v759_v41 = vadd.f32 %v2276_v25, %v2272_v9 }
  0xd7   :  { %1085 = vmatmul.f32.gmra.mxu1 %v1946_v52  ;;  %v744_v52 = vadd.f32 %v743_v2, %v702_v63 }
  0xd9   :  { %1126 = vmatmul.f32.gmra.mxu2 %v2205_v59  ;;  %1167 = vmatmul.f32.gmra.mxu3 %v2208_v38  ;;  %v785_v11 = vadd.f32 %v784_v30, %v744_v52  ;;  %v832_v38 = vadd.f32 %v2254_v62, %v791_v28  ;;  %v838_v62 = vadd.f32 %v2278_v34, %v797_v51 }
  0xda   :  { %v2284_v58 = vpop.f32.mrf.mxu0 }
  0xdc   :  { %v2286_v33 = vpop.f32.mrf.mxu2  ;;  %v2288_v54 = vpop.f32.mrf.mxu1 }
  0xdd   :  { %v2290_v1 = vpop.f32.mrf.mxu3  ;;  %1047 = vmatmul.f32.gmra.mxu0 %v1979_v7  ;;  %v826_v7 = vadd.f32 %v825_v0, %v785_v11  ;;  %v800_v11 = vadd.f32 %v2286_v33, %v759_v41  ;;  %v762_v9 = vadd.f32 %v2288_v54, %v2284_v58 }
  0xdf   :  { %1088 = vmatmul.f32.gmra.mxu1 %v1982_v12 }
  0xe1   :  { %1129 = vmatmul.f32.gmra.mxu2 %v2217_v57  ;;  %1170 = vmatmul.f32.gmra.mxu3 %v2220_v44  ;;  %v753_v57 = vadd.f32 %v2252_v42, %v2250_v10 }
  0xe2   :  { %v2296_v47 = vpop.f32.mrf.mxu0 }
  0xe3   :  { %v794_v55 = vadd.f32 %v2262_v49, %v753_v57 }
  0xe4   :  { %v2298_v3 = vpop.f32.mrf.mxu2  ;;  %v2300_v5 = vpop.f32.mrf.mxu1 }
  0xe5   :  { %v2302_v14 = vpop.f32.mrf.mxu3  ;;  %1050 = vmatmul.f32.gmra.mxu0 %v2013_v31  ;;  %v829_v31 = vadd.f32 %v828_v53, %v788_v21  ;;  %v835_v2 = vadd.f32 %v2266_v17, %v794_v55  ;;  %v765_v58 = vadd.f32 %v2300_v5, %v2296_v47 }
  0xe7   :  { %1091 = vmatmul.f32.gmra.mxu1 %v2017_v37 }
  0xe9   :  { %1132 = vmatmul.f32.gmra.mxu2 %v2227_v8  ;;  %1173 = vmatmul.f32.gmra.mxu3 %v2230_v60 }
  0xea   :  { %v866_v12 = vpop.f32.mrf.mxu0 }
  0xeb   :  { %v867_v16 = vadd.f32 %v866_v12, %v826_v7 }
  0xec   :  { %v2308_v35 = vpop.f32.mrf.mxu2  ;;  %v907_v19 = vpop.f32.mrf.mxu1 }
  0xed   :  { %v2310_v23 = vpop.f32.mrf.mxu3  ;;  %v908_v18 = vadd.f32 %v907_v19, %v867_v16  ;;  %v841_v16 = vadd.f32 %v2290_v1, %v800_v11 }
  0xef   :  { %1177 = vst [vmem:[%s2442_s4] sm:$0xff] %v908_v18  ;;  %v1219_v29 = vmul.f32 %v908_v18, %v908_v18 }
  0xf2   :  { %v869_v37 = vpop.f32.mrf.mxu0 }
  0xf3   :  { %v870_v24 = vadd.f32 %v869_v37, %v829_v31  ;;  %v803_v31 = vadd.f32 %v2298_v3, %v762_v9 }
  0xf4   :  { %v2316_v56 = vpop.f32.mrf.mxu2  ;;  %v910_v27 = vpop.f32.mrf.mxu1 }
  0xf5   :  { %v2318_v45 = vpop.f32.mrf.mxu3  ;;  %v911_v50 = vadd.f32 %v910_v27, %v870_v24  ;;  %v844_v27 = vadd.f32 %v2302_v14, %v803_v31 }
  0xf7   :  { %1179 = vst [vmem:[%s2442_s4 + $0x10] sm:$0xff] %v911_v50  ;;  %v1193_v32 = vadd.f32 %v911_v50, %v908_v18  ;;  %v1221_v59 = vmul.f32 %v911_v50, %v911_v50 }
  0xf9   :  { %v1235_v40 = vadd.f32 %v1221_v59, %v1219_v29 }
  0xfa   :  { %v872_v15 = vpop.f32.mrf.mxu0 }
  0xfb   :  { %v873_v44 = vadd.f32 %v872_v15, %v832_v38 }
  0xfc   :  { %v2326_v43 = vpop.f32.mrf.mxu2  ;;  %v913_v46 = vpop.f32.mrf.mxu1 }
  0xfd   :  { %v2329_v61 = vpop.f32.mrf.mxu3  ;;  %v914_v8 = vadd.f32 %v913_v46, %v873_v44 }
  0xff   :  { %1181 = vst [vmem:[%s2442_s4 + $0x20] sm:$0xff] %v914_v8  ;;  %v1194_v60 = vadd.f32 %v1193_v32, %v914_v8  ;;  %v1223_v63 = vmul.f32 %v914_v8, %v914_v8  ;;  %v806_v32 = vadd.f32 %v2308_v35, %v765_v58 }
 0x101   :  { %v1236_v26 = vadd.f32 %v1235_v40, %v1223_v63  ;;  %v847_v15 = vadd.f32 %v2310_v23, %v806_v32 }
 0x102   :  { %v875_v30 = vpop.f32.mrf.mxu0 }
 0x103   :  { %v876_v48 = vadd.f32 %v875_v30, %v835_v2 }
 0x104   :  { %v2337_v0 = vpop.f32.mrf.mxu2  ;;  %v916_v39 = vpop.f32.mrf.mxu1 }
 0x105   :  { %v2340_v53 = vpop.f32.mrf.mxu3  ;;  %v917_v10 = vadd.f32 %v916_v39, %v876_v48  ;;  %v990_v48 = vadd.f32 %v2318_v45, %v2316_v56 }
 0x107   :  { %1183 = vst [vmem:[%s2442_s4 + $0x30] sm:$0xff] %v917_v10  ;;  %v1195_v20 = vadd.f32 %v1194_v60, %v917_v10  ;;  %v1225_v42 = vmul.f32 %v917_v10, %v917_v10 }
 0x109   :  { %v1237_v49 = vadd.f32 %v1236_v26, %v1225_v42 }
 0x10a   :  { %v878_v17 = vpop.f32.mrf.mxu0 }
 0x10b   :  { %v879_v52 = vadd.f32 %v878_v17, %v838_v62 }
 0x10c   :  { %v2348_v4 = vpop.f32.mrf.mxu2  ;;  %v919_v13 = vpop.f32.mrf.mxu1 }
 0x10d   :  { %v2351_v7 = vpop.f32.mrf.mxu3  ;;  %v920_v12 = vadd.f32 %v919_v13, %v879_v52 }
 0x10f   :  { %1185 = vst [vmem:[%s2442_s4 + $0x40] sm:$0xff] %v920_v12  ;;  %v1196_v22 = vadd.f32 %v1195_v20, %v920_v12  ;;  %v1227_v34 = vmul.f32 %v920_v12, %v920_v12 }
 0x111   :  { %v1238_v19 = vadd.f32 %v1237_v49, %v1227_v34 }
 0x112   :  { %v881_v21 = vpop.f32.mrf.mxu0 }
 0x113   :  { %v882_v18 = vadd.f32 %v881_v21, %v841_v16 }
 0x114   :  { %v2359_v25 = vpop.f32.mrf.mxu2  ;;  %v922_v33 = vpop.f32.mrf.mxu1 }
 0x115   :  { %v2362_v37 = vpop.f32.mrf.mxu3  ;;  %v923_v36 = vadd.f32 %v922_v33, %v882_v18 }
 0x117   :  { %1187 = vst [vmem:[%s2442_s4 + $0x50] sm:$0xff] %v923_v36  ;;  %v1197_v24 = vadd.f32 %v1196_v22, %v923_v36  ;;  %v1229_v1 = vmul.f32 %v923_v36, %v923_v36  ;;  %v993_v22 = vadd.f32 %v2329_v61, %v2326_v43  ;;  %v996_v43 = vadd.f32 %v2340_v53, %v2337_v0 }
 0x119   :  { %v1239_v28 = vadd.f32 %v1238_v19, %v1229_v1 }
 0x11a   :  { %v884_v50 = vpop.f32.mrf.mxu0 }
 0x11b   :  { %v885_v29 = vadd.f32 %v884_v50, %v844_v27 }
 0x11c   :  { %v2370_v54 = vpop.f32.mrf.mxu2  ;;  %v925_v3 = vpop.f32.mrf.mxu1 }
 0x11d   :  { %v2373_v59 = vpop.f32.mrf.mxu3  ;;  %v926_v38 = vadd.f32 %v925_v3, %v885_v29  ;;  %v999_v3 = vadd.f32 %v2351_v7, %v2348_v4 }
 0x11f   :  { %1189 = vst [vmem:[%s2442_s4 + $0x60] sm:$0xff] %v926_v38  ;;  %v1198_v40 = vadd.f32 %v1197_v24, %v926_v38  ;;  %v1231_v14 = vmul.f32 %v926_v38, %v926_v38 }
 0x121   :  { %v1240_v57 = vadd.f32 %v1239_v28, %v1231_v14 }
 0x122   :  { %v887_v44 = vpop.f32.mrf.mxu0 }
 0x123   :  { %v888_v5 = vadd.f32 %v887_v44, %v847_v15  ;;  %v1002_v44 = vadd.f32 %v2362_v37, %v2359_v25 }
 0x124   :  { %v2379_v47 = vpop.f32.mrf.mxu2  ;;  %v928_v46 = vpop.f32.mrf.mxu1 }
 0x125   :  { %v2381_v55 = vpop.f32.mrf.mxu3  ;;  %v929_v35 = vadd.f32 %v928_v46, %v888_v5 }
 0x127   :  { %1191 = vst [vmem:[%s2442_s4 + $0x70] sm:$0xff] %v929_v35  ;;  %v1199_v8 = vadd.f32 %v1198_v40, %v929_v35  ;;  %v1233_v60 = vmul.f32 %v929_v35, %v929_v35 }
 0x129   :  { %v1200_v63 = vrot.slane %v1199_v8, 4  ;;  %v1241_v2 = vadd.f32 %v1240_v57, %v1233_v60 }
 0x12a   :  { %v1030_v26 = vpop.f32.mrf.mxu0 }
 0x12b   :  { %v1201_v30 = vadd.f32 %v1200_v63, %v1199_v8  ;;  %v1242_v23 = vrot.slane %v1241_v2, 4  ;;  %v1031_v42 = vadd.f32 %v1030_v26, %v990_v48 }
 0x12c   :  { %v2386_v6 = vpop.f32.mrf.mxu2  ;;  %v1071_v39 = vpop.f32.mrf.mxu1 }
 0x12d   :  { %v1202_v51 = vrot.slane %v1201_v30, 2  ;;  %v1243_v10 = vadd.f32 %v1242_v23, %v1241_v2  ;;  %v2390_v20 = vpop.f32.mrf.mxu3  ;;  %v1072_v52 = vadd.f32 %v1071_v39, %v1031_v42  ;;  %v1005_v2 = vadd.f32 %v2373_v59, %v2370_v54 }
 0x12f   :  { %v1203_v62 = vadd.f32 %v1202_v51, %v1201_v30  ;;  %v1244_v49 = vrot.slane %v1243_v10, 2 }
 0x131   :  { %v1204_v17 = vrot.slane %v1203_v62, 1  ;;  %v1245_v41 = vadd.f32 %v1244_v49, %v1243_v10  ;;  %v1008_v10 = vadd.f32 %v2381_v55, %v2379_v47 }
 0x132   :  { %v1033_v13 = vpop.f32.mrf.mxu0 }
 0x133   :  { %v1246_v11 = vrot.slane %v1245_v41, 1  ;;  %v1205_v56 = vadd.f32 %v1204_v17, %v1203_v62  ;;  %v1034_v21 = vadd.f32 %v1033_v13, %v993_v22 }
 0x134   :  { %v1112_v12 = vpop.f32.mrf.mxu2  ;;  %v1074_v16 = vpop.f32.mrf.mxu1 }
 0x135   :  { %v1113_v34 = vadd.f32 %v1112_v12, %v1072_v52  ;;  %v1247_v45 = vadd.f32 %v1246_v11, %v1245_v41  ;;  %v1153_v19 = vpop.f32.mrf.mxu3  ;;  %v1075_v33 = vadd.f32 %v1074_v16, %v1034_v21  ;;  %v1011_v12 = vadd.f32 %v2390_v20, %v2386_v6 }
 0x137   :  { %v1154_v9 = vadd.f32 %v1153_v19, %v1113_v34  ;;  %v2395_v18 = vsel %vm111_vm1, %v1205_v56, %v1247_v45 }
 0x139   :  { %1178 = vst [vmem:[%s2442_s4 + $0x8] sm:$0xff] %v1154_v9  ;;  %v1220_v52 = vmul.f32 %v1154_v9, %v1154_v9 }
 0x13a   :  { %v1036_v31 = vpop.f32.mrf.mxu0 }
 0x13b   :  { %v1037_v27 = vadd.f32 %v1036_v31, %v996_v43 }
 0x13c   :  { %v1115_v36 = vpop.f32.mrf.mxu2  ;;  %v1077_v24 = vpop.f32.mrf.mxu1 }
 0x13d   :  { %v1116_v61 = vadd.f32 %v1115_v36, %v1075_v33  ;;  %v1156_v1 = vpop.f32.mrf.mxu3  ;;  %v1078_v50 = vadd.f32 %v1077_v24, %v1037_v27 }
 0x13f   :  { %v1157_v28 = vadd.f32 %v1156_v1, %v1116_v61 }
 0x141   :  { %1180 = vst [vmem:[%s2442_s4 + $0x18] sm:$0xff] %v1157_v28  ;;  %v1222_v59 = vmul.f32 %v1157_v28, %v1157_v28  ;;  %v1206_v22 = vadd.f32 %v1157_v28, %v1154_v9 }
 0x142   :  { %v1039_v58 = vpop.f32.mrf.mxu0 }
 0x143   :  { %v1040_v14 = vadd.f32 %v1039_v58, %v999_v3  ;;  %v1248_v55 = vadd.f32 %v1222_v59, %v1220_v52 }
 0x144   :  { %v1118_v29 = vpop.f32.mrf.mxu2  ;;  %v1080_v38 = vpop.f32.mrf.mxu1 }
 0x145   :  { %v1119_v32 = vadd.f32 %v1118_v29, %v1078_v50  ;;  %v1159_v40 = vpop.f32.mrf.mxu3  ;;  %v1081_v53 = vadd.f32 %v1080_v38, %v1040_v14 }
 0x147   :  { %v1160_v0 = vadd.f32 %v1159_v40, %v1119_v32 }
 0x149   :  { %1182 = vst [vmem:[%s2442_s4 + $0x28] sm:$0xff] %v1160_v0  ;;  %v1224_v34 = vmul.f32 %v1160_v0, %v1160_v0  ;;  %v1207_v56 = vadd.f32 %v1206_v22, %v1160_v0 }
 0x14a   :  { %v1042_v15 = vpop.f32.mrf.mxu0 }
 0x14b   :  { %v1043_v8 = vadd.f32 %v1042_v15, %v1002_v44  ;;  %v1249_v31 = vadd.f32 %v1248_v55, %v1224_v34 }
 0x14c   :  { %v1121_v57 = vpop.f32.mrf.mxu2  ;;  %v1083_v46 = vpop.f32.mrf.mxu1 }
 0x14d   :  { %v1122_v5 = vadd.f32 %v1121_v57, %v1081_v53  ;;  %v1162_v35 = vpop.f32.mrf.mxu3  ;;  %v1084_v7 = vadd.f32 %v1083_v46, %v1043_v8 }
 0x14f   :  { %v1163_v4 = vadd.f32 %v1162_v35, %v1122_v5 }
 0x151   :  { %1184 = vst [vmem:[%s2442_s4 + $0x38] sm:$0xff] %v1163_v4  ;;  %v1226_v45 = vmul.f32 %v1163_v4, %v1163_v4  ;;  %v1208_v36 = vadd.f32 %v1207_v56, %v1163_v4 }
 0x152   :  { %v1045_v60 = vpop.f32.mrf.mxu0 }
 0x153   :  { %v1046_v48 = vadd.f32 %v1045_v60, %v1005_v2  ;;  %v1250_v61 = vadd.f32 %v1249_v31, %v1226_v45 }
 0x154   :  { %v1124_v63 = vpop.f32.mrf.mxu2  ;;  %v1086_v30 = vpop.f32.mrf.mxu1 }
 0x155   :  { %v1125_v26 = vadd.f32 %v1124_v63, %v1084_v7  ;;  %v1165_v23 = vpop.f32.mrf.mxu3  ;;  %v1087_v37 = vadd.f32 %v1086_v30, %v1046_v48 }
 0x157   :  { %v1166_v25 = vadd.f32 %v1165_v23, %v1125_v26 }
 0x159   :  { %1186 = vst [vmem:[%s2442_s4 + $0x48] sm:$0xff] %v1166_v25  ;;  %v1228_v43 = vmul.f32 %v1166_v25, %v1166_v25  ;;  %v1209_v24 = vadd.f32 %v1208_v36, %v1166_v25 }
 0x15a   :  { %v1048_v39 = vpop.f32.mrf.mxu0 }
 0x15b   :  { %v1049_v17 = vadd.f32 %v1048_v39, %v1008_v10  ;;  %v1251_v1 = vadd.f32 %v1250_v61, %v1228_v43 }
 0x15c   :  { %v1127_v51 = vpop.f32.mrf.mxu2  ;;  %v1089_v49 = vpop.f32.mrf.mxu1 }
 0x15d   :  { %v1128_v42 = vadd.f32 %v1127_v51, %v1087_v37  ;;  %v1168_v62 = vpop.f32.mrf.mxu3  ;;  %v1090_v41 = vadd.f32 %v1089_v49, %v1049_v17 }
 0x15f   :  { %v1169_v54 = vadd.f32 %v1168_v62, %v1128_v42 }
 0x161   :  { %1188 = vst [vmem:[%s2442_s4 + $0x58] sm:$0xff] %v1169_v54  ;;  %v1230_v6 = vmul.f32 %v1169_v54, %v1169_v54  ;;  %v1210_v27 = vadd.f32 %v1209_v24, %v1169_v54 }
 0x162   :  { %v1051_v11 = vpop.f32.mrf.mxu0 }
 0x163   :  { %v1052_v19 = vadd.f32 %v1051_v11, %v1011_v12  ;;  %v1252_v29 = vadd.f32 %v1251_v1, %v1230_v6 }
 0x164   :  { %v1130_v13 = vpop.f32.mrf.mxu2  ;;  %v1092_v33 = vpop.f32.mrf.mxu1 }
 0x165   :  { %v1131_v47 = vadd.f32 %v1130_v13, %v1090_v41  ;;  %v1171_v16 = vpop.f32.mrf.mxu3  ;;  %v1093_v20 = vadd.f32 %v1092_v33, %v1052_v19 }
 0x167   :  { %v1172_v21 = vadd.f32 %v1171_v16, %v1131_v47 }
 0x169   :  { %1190 = vst [vmem:[%s2442_s4 + $0x68] sm:$0xff] %v1172_v21  ;;  %v1232_v28 = vmul.f32 %v1172_v21, %v1172_v21  ;;  %v1211_v3 = vadd.f32 %v1210_v27, %v1172_v21 }
 0x16b   :  { %v1253_v38 = vadd.f32 %v1252_v29, %v1232_v28 }
 0x16c   :  { %v1133_v9 = vpop.f32.mrf.mxu2 }
 0x16d   :  { %v1134_v50 = vadd.f32 %v1133_v9, %v1093_v20  ;;  %v1174_v58 = vpop.f32.mrf.mxu3 }
 0x16f   :  { %v1175_v32 = vadd.f32 %v1174_v58, %v1134_v50 }
 0x171   :  { %1192 = vst [vmem:[%s2442_s4 + $0x78] sm:$0xff] %v1175_v32  ;;  %v1212_v40 = vadd.f32 %v1211_v3, %v1175_v32  ;;  %v1234_v14 = vmul.f32 %v1175_v32, %v1175_v32 }
 0x173   :  { %v1213_v0 = vrot.slane %v1212_v40, 4  ;;  %v1254_v53 = vadd.f32 %v1253_v38, %v1234_v14 }
 0x175   :  { %v1214_v15 = vadd.f32 %v1213_v0, %v1212_v40  ;;  %v1255_v57 = vrot.slane %v1254_v53, 4 }
 0x177   :  { %v1215_v44 = vrot.slane %v1214_v15, 2  ;;  %v1256_v5 = vadd.f32 %v1255_v57, %v1254_v53 }
 0x179   :  { %v1216_v46 = vadd.f32 %v1215_v44, %v1214_v15  ;;  %v1257_v35 = vrot.slane %v1256_v5, 2 }
 0x17b   :  { %v1217_v8 = vrot.slane %v1216_v46, 1  ;;  %v1258_v4 = vadd.f32 %v1257_v35, %v1256_v5 }
 0x17d   :  { %v1259_v7 = vrot.slane %v1258_v4, 1  ;;  %v1218_v60 = vadd.f32 %v1217_v8, %v1216_v46 }
 0x17f   :  { %v1260_v63 = vadd.f32 %v1259_v7, %v1258_v4 }
 0x181   :  { %v1262_v2 = vsel %vm111_vm1, %v1218_v60, %v1260_v63 }
 0x182   :  { %v1265_v26 = vrot.slane %v1262_v2, 6 }
 0x184   :  { %v1267_v30 = vsel %vm1266_vm4, %v2395_v18, %v1265_v26 }
 0x185   :  { %1269 = vst [vmem:[%s2443_s5] sm:$0xf] %v1267_v30 }

// kernel: skip_up_forward.5
= control target key start
LH: loop header
LB: loop body
LE: loop exit
PB: predicated region body
PF: predicated region fallthrough
CT: control target
= control target key end

     0   :  { %s252_s0 = inlined_call_operand.vmem [shape: f32[2,32,256], index: 0, kind: input, shape index: {}]   ;;  %s253_s1 = inlined_call_operand.vmem [shape: f32[1,256], index: 1, kind: input, shape index: {}]   ;;  %s254_s2 = inlined_call_operand.vmem [shape: f32[1,256], index: 2, kind: input, shape index: {}]   ;;  %s255_s3 = inlined_call_operand.vmem [shape: f32[2,32,256], index: 3, kind: output, shape index: {}]  }
   0x1   :  { %v14_v0 = vld [vmem:[%s252_s0] sm:$0xff]  ;;  %v15_v5 = vld [vmem:[%s252_s0 + $0x8] sm:$0xff]  ;;  %v16_v8 = vld [vmem:[%s252_s0 + $0x10] sm:$0xff] }
   0x2   :  { %v30_v1 = vld [vmem:[%s253_s1] sm:$0x3]  ;;  %v17_v9 = vld [vmem:[%s252_s0 + $0x18] sm:$0xff]  ;;  %v19_v11 = vld [vmem:[%s252_s0 + $0x28] sm:$0xff] }
   0x3   :  { %v52_v2 = vld [vmem:[%s254_s2] sm:$0x3]  ;;  %v32_v3 = vperm.slane %v30_v1, 0  ;;  %v33_v6 = vperm.slane %v30_v1, 1  ;;  %v20_v16 = vld [vmem:[%s252_s0 + $0x30] sm:$0xff]  ;;  %v21_v17 = vld [vmem:[%s252_s0 + $0x38] sm:$0xff] }
   0x4   :  { %v139_v4 = vperm.slane %v52_v2, 0  ;;  %v144_v7 = vperm.slane %v52_v2, 1  ;;  %v18_v10 = vld [vmem:[%s252_s0 + $0x20] sm:$0xff]  ;;  %v23_v30 = vld [vmem:[%s252_s0 + $0x48] sm:$0xff]  ;;  %v24_v31 = vld [vmem:[%s252_s0 + $0x50] sm:$0xff] }
   0x5   :  { %v36_v12 = vmul.f32 %v32_v3, %v14_v0  ;;  %v37_v13 = vmul.f32 %v33_v6, %v15_v5  ;;  %v38_v14 = vmul.f32 %v32_v3, %v16_v8  ;;  %v39_v15 = vmul.f32 %v33_v6, %v17_v9  ;;  %v22_v26 = vld [vmem:[%s252_s0 + $0x40] sm:$0xff]  ;;  %v25_v32 = vld [vmem:[%s252_s0 + $0x58] sm:$0xff]  ;;  %v27_v37 = vld [vmem:[%s252_s0 + $0x68] sm:$0xff] }
   0x6   :  { %v40_v18 = vmul.f32 %v32_v3, %v18_v10  ;;  %v41_v19 = vmul.f32 %v33_v6, %v19_v11  ;;  %v42_v20 = vmul.f32 %v32_v3, %v20_v16  ;;  %v43_v21 = vmul.f32 %v33_v6, %v21_v17  ;;  %v26_v36 = vld [vmem:[%s252_s0 + $0x60] sm:$0xff]  ;;  %v28_v41 = vld [vmem:[%s252_s0 + $0x70] sm:$0xff]  ;;  %v29_v46 = vld [vmem:[%s252_s0 + $0x78] sm:$0xff] }
   0x7   :  { %v58_v22 = vadd.f32 %v139_v4, %v36_v12  ;;  %v59_v23 = vadd.f32 %v144_v7, %v37_v13  ;;  %v60_v24 = vadd.f32 %v139_v4, %v38_v14  ;;  %v61_v25 = vadd.f32 %v144_v7, %v39_v15 }
   0x8   :  { %v62_v27 = vadd.f32 %v139_v4, %v40_v18  ;;  %v63_v28 = vadd.f32 %v144_v7, %v41_v19  ;;  %v64_v29 = vadd.f32 %v139_v4, %v42_v20  ;;  %v65_v40 = vadd.f32 %v144_v7, %v43_v21 }
   0x9   :  { %v74_v33 = vmax.f32 %v58_v22, 0.0  ;;  %v75_v34 = vmax.f32 %v59_v23, 0.0  ;;  %v76_v35 = vmax.f32 %v60_v24, 0.0  ;;  %v77_v38 = vmax.f32 %v61_v25, 0.0 }
   0xa   :  { %v78_v39 = vmax.f32 %v62_v27, 0.0  ;;  %v44_v42 = vmul.f32 %v32_v3, %v22_v26  ;;  %v45_v43 = vmul.f32 %v33_v6, %v23_v30  ;;  %v46_v44 = vmul.f32 %v32_v3, %v24_v31 }
   0xb   :  { %90 = vst [vmem:[%s255_s3] sm:$0xff] %v74_v33  ;;  %v47_v45 = vmul.f32 %v33_v6, %v25_v32  ;;  %v79_v47 = vmax.f32 %v63_v28, 0.0  ;;  %v80_v48 = vmax.f32 %v64_v29, 0.0  ;;  %v48_v49 = vmul.f32 %v32_v3, %v26_v36 }
   0xc   :  { %91 = vst [vmem:[%s255_s3 + $0x8] sm:$0xff] %v75_v34  ;;  %v49_v50 = vmul.f32 %v33_v6, %v27_v37  ;;  %v66_v51 = vadd.f32 %v139_v4, %v44_v42  ;;  %v67_v52 = vadd.f32 %v144_v7, %v45_v43  ;;  %v68_v53 = vadd.f32 %v139_v4, %v46_v44 }
   0xd   :  { %92 = vst [vmem:[%s255_s3 + $0x10] sm:$0xff] %v76_v35  ;;  %v50_v54 = vmul.f32 %v32_v3, %v28_v41  ;;  %v81_v55 = vmax.f32 %v65_v40, 0.0  ;;  %v69_v56 = vadd.f32 %v144_v7, %v47_v45  ;;  %v51_v57 = vmul.f32 %v33_v6, %v29_v46 }
   0xe   :  { %93 = vst [vmem:[%s255_s3 + $0x18] sm:$0xff] %v77_v38  ;;  %v82_v58 = vmax.f32 %v66_v51, 0.0  ;;  %v70_v59 = vadd.f32 %v139_v4, %v48_v49  ;;  %v83_v60 = vmax.f32 %v67_v52, 0.0  ;;  %v71_v61 = vadd.f32 %v144_v7, %v49_v50 }
   0xf   :  { %94 = vst [vmem:[%s255_s3 + $0x20] sm:$0xff] %v78_v39  ;;  %v84_v62 = vmax.f32 %v68_v53, 0.0  ;;  %v72_v63 = vadd.f32 %v139_v4, %v50_v54  ;;  %v85_v0 = vmax.f32 %v69_v56, 0.0  ;;  %v73_v1 = vadd.f32 %v144_v7, %v51_v57 }
  0x10   :  { %95 = vst [vmem:[%s255_s3 + $0x28] sm:$0xff] %v79_v47  ;;  %v86_v2 = vmax.f32 %v70_v59, 0.0  ;;  %v87_v3 = vmax.f32 %v71_v61, 0.0 }
  0x11   :  { %96 = vst [vmem:[%s255_s3 + $0x30] sm:$0xff] %v80_v48  ;;  %v88_v4 = vmax.f32 %v72_v63, 0.0  ;;  %v89_v5 = vmax.f32 %v73_v1, 0.0 }
  0x12   :  { %97 = vst [vmem:[%s255_s3 + $0x38] sm:$0xff] %v81_v55 }
  0x13   :  { %98 = vst [vmem:[%s255_s3 + $0x40] sm:$0xff] %v82_v58 }
  0x14   :  { %99 = vst [vmem:[%s255_s3 + $0x48] sm:$0xff] %v83_v60 }
  0x15   :  { %100 = vst [vmem:[%s255_s3 + $0x50] sm:$0xff] %v84_v62 }
  0x16   :  { %101 = vst [vmem:[%s255_s3 + $0x58] sm:$0xff] %v85_v0 }
  0x17   :  { %102 = vst [vmem:[%s255_s3 + $0x60] sm:$0xff] %v86_v2 }
  0x18   :  { %103 = vst [vmem:[%s255_s3 + $0x68] sm:$0xff] %v87_v3 }
  0x19   :  { %104 = vst [vmem:[%s255_s3 + $0x70] sm:$0xff] %v88_v4 }
  0x1a   :  { %105 = vst [vmem:[%s255_s3 + $0x78] sm:$0xff] %v89_v5 }

</bundles_post_ra>
